<compile_context>
chip_gen: v5e
topology: v5e:2x2
jax: 0.10.0
libtpu: 0.0.40
codegen_flags: <defaults>
</compile_context>

<pallas_src>
import numpy as np
import jax
import jax.numpy as jnp
from jax.experimental import pallas as pl
from jax.experimental.pallas import tpu as pltpu

EPS = 1e-3                 # BatchNorm eps in the reference module
ACT_DTYPE = jnp.bfloat16   # activation storage dtype (HBM traffic halved vs f32)


def _tpu_budgets():
    """Generation-aware scoped-VMEM limit and tile caps."""
    try:
        vmem_cap = pltpu.get_tpu_info().vmem_capacity_bytes
    except Exception:
        vmem_cap = None
    if vmem_cap is not None and vmem_cap >= 96 * 1024 * 1024:
        # 128 MiB VMEM parts (v5e / v6e): larger tiles amortize per-step overhead.
        return 64 * 1024 * 1024, 1024, 2048
    # 64 MiB parts (v7x) or unknown: conservative, double-buffer safe.
    return 32 * 1024 * 1024, 512, 1024


VMEM_LIMIT, MM_TILE_CAP, EW_TILE_CAP = _tpu_budgets()


def _round_up(x, m):
    return ((x + m - 1) // m) * m


def _choose_tile(m, cap):
    """Row tile: multiple of 8, <= cap, and >= 2 grid steps whenever m > 8."""
    if m <= 8:
        return m
    half = max(8, (_round_up(m, 8) // 2) // 8 * 8)   # guarantees >= 2 grid steps
    cap = max(8, min(cap, half)) // 8 * 8
    for t in range(cap, 7, -8):                       # prefer an exact divisor
        if m % t == 0:
            return t
    return cap                                        # caller pads rows up to a multiple


def _pad_rows(arr, m_pad):
    m = arr.shape[0]
    if m_pad == m:
        return arr
    pad_cfg = ((0, m_pad - m),) + ((0, 0),) * (arr.ndim - 1)
    return jnp.pad(arr, pad_cfg)


def _cparams():
    return pltpu.CompilerParams(dimension_semantics=("parallel",),
                                vmem_limit_bytes=VMEM_LIMIT)


# ----------------------------- Pallas kernels ------------------------------

def _mm_bn_act_kernel(x_ref, w_ref, shift_ref, alpha_ref, o_ref):
    # Conv-as-matmul: bf16 (TM,K)@(K,N) on the MXU, f32 accumulation, BN affine
    # (scale pre-folded into w, only "+shift" left) + PReLU in f32, bf16 store.
    y = jnp.dot(x_ref[...], w_ref[...], preferred_element_type=jnp.float32)
    y = y + shift_ref[...]
    y = jnp.where(y >= 0.0, y, y * alpha_ref[...])
    o_ref[...] = y.astype(o_ref.dtype)


def _mid_expand_fused_kernel(p_ref, w1_ref, s1_ref, a1_ref,
                             w2_ref, s2_ref, a2_ref,
                             skip_ref, a3_ref, o_ref):
    # mid conv (im2col matmul) + BN + PReLU, immediately chained into the 1x1
    # expand conv + BN + PReLU, residual add and output PReLU.  The (TM, red)
    # mid result never leaves the kernel (no lane-sparse HBM store).
    h = jnp.dot(p_ref[...], w1_ref[...], preferred_element_type=jnp.float32)
    h = h + s1_ref[...]
    h = jnp.where(h >= 0.0, h, h * a1_ref[...])
    y = jnp.dot(h.astype(w2_ref.dtype), w2_ref[...],
                preferred_element_type=jnp.float32)
    y = y + s2_ref[...]
    y = jnp.where(y >= 0.0, y, y * a2_ref[...])
    z = y + skip_ref[...].astype(jnp.float32)
    z = jnp.where(z >= 0.0, z, z * a3_ref[...])
    o_ref[...] = z.astype(o_ref.dtype)


def _initial_block_kernel(p_ref, w_ref, sel_ref, shift_ref, alpha_ref, o_ref):
    # Whole InitialBlock in one kernel.  p is the 3x3/stride-2 im2col patch of the
    # 3-channel input (TM, 27).  The 2x2 max-pool candidates for the same output
    # pixel are patch taps (1,1),(1,2),(2,1),(2,2) -> columns 12:15,15:18,21:24,
    # 24:27.  Conv weights are zero-padded to 16 output columns (BN scale folded
    # in); the pooled 3 channels are scattered into lanes 13..15 via a tiny
    # selector matmul that also carries their BN scale.
    p = p_ref[...]
    y = jnp.dot(p, w_ref[...], preferred_element_type=jnp.float32)   # (TM, 16)
    a = p[:, 12:15]
    b = p[:, 15:18]
    c = p[:, 21:24]
    d = p[:, 24:27]
    pool = jnp.maximum(jnp.maximum(a, b), jnp.maximum(c, d)).astype(jnp.float32)
    y = y + jnp.dot(pool, sel_ref[...], preferred_element_type=jnp.float32)
    y = y + shift_ref[...]
    y = jnp.where(y >= 0.0, y, y * alpha_ref[...])
    o_ref[...] = y.astype(o_ref.dtype)


def _maxpool4_idx_kernel(a_ref, b_ref, c_ref, d_ref, omax_ref, oidx_ref):
    # 2x2 max-pool over four pre-strided candidates; argmax picks the first max
    # in row-major window order (matches torch for non-tied values).
    a, b, c, d = a_ref[...], b_ref[...], c_ref[...], d_ref[...]
    m01 = jnp.maximum(a, b)
    i01 = jnp.where(b > a, 1, 0)
    m23 = jnp.maximum(c, d)
    i23 = jnp.where(d > c, 3, 2)
    omax_ref[...] = jnp.maximum(m01, m23)
    oidx_ref[...] = jnp.where(m23 > m01, i23, i01).astype(jnp.int32)


# ----------------------------- kernel wrappers ------------------------------

def matmul_bn_act(patches, w, shift, alpha):
    M, K = patches.shape
    N = w.shape[1]
    TM = _choose_tile(M, MM_TILE_CAP)
    Mp = _round_up(M, TM)
    patches = _pad_rows(patches, Mp)
    y = pl.pallas_call(
        _mm_bn_act_kernel,
        out_shape=jax.ShapeDtypeStruct((Mp, N), ACT_DTYPE),
        grid=(Mp // TM,),
        in_specs=[
            pl.BlockSpec((TM, K), lambda i: (i, 0)),
            pl.BlockSpec((K, N), lambda i: (0, 0)),
            pl.BlockSpec((1, N), lambda i: (0, 0)),
            pl.BlockSpec((1, N), lambda i: (0, 0)),
        ],
        out_specs=pl.BlockSpec((TM, N), lambda i: (i, 0)),
        compiler_params=_cparams(),
    )(patches, w, shift.reshape(1, N), alpha.reshape(1, N))
    return y[:M]


def mid_expand_fused(patches, mid_p, exp_p, skip2d, alpha_out):
    M, K1 = patches.shape
    red = mid_p['w'].shape[1]
    cout = exp_p['w'].shape[1]
    TM = _choose_tile(M, MM_TILE_CAP)
    Mp = _round_up(M, TM)
    patches = _pad_rows(patches, Mp)
    skip2d = _pad_rows(skip2d, Mp)
    y = pl.pallas_call(
        _mid_expand_fused_kernel,
        out_shape=jax.ShapeDtypeStruct((Mp, cout), ACT_DTYPE),
        grid=(Mp // TM,),
        in_specs=[
            pl.BlockSpec((TM, K1), lambda i: (i, 0)),
            pl.BlockSpec((K1, red), lambda i: (0, 0)),
            pl.BlockSpec((1, red), lambda i: (0, 0)),
            pl.BlockSpec((1, red), lambda i: (0, 0)),
            pl.BlockSpec((red, cout), lambda i: (0, 0)),
            pl.BlockSpec((1, cout), lambda i: (0, 0)),
            pl.BlockSpec((1, cout), lambda i: (0, 0)),
            pl.BlockSpec((TM, cout), lambda i: (i, 0)),
            pl.BlockSpec((1, cout), lambda i: (0, 0)),
        ],
        out_specs=pl.BlockSpec((TM, cout), lambda i: (i, 0)),
        compiler_params=_cparams(),
    )(patches, mid_p['w'], mid_p['shift'].reshape(1, red), mid_p['alpha'].reshape(1, red),
      exp_p['w'], exp_p['shift'].reshape(1, cout), exp_p['alpha'].reshape(1, cout),
      skip2d, alpha_out.reshape(1, cout))
    return y[:M]


def maxpool2x2_with_indices(x):
    """2x2/stride-2 max pool on NHWC x with PyTorch-style flat (h*W+w) indices."""
    B, H, W, C = x.shape
    Ho, Wo = H // 2, W // 2
    M = B * Ho * Wo
    quads = [x[:, i::2, j::2, :].reshape(M, C) for i in (0, 1) for j in (0, 1)]
    # lane-dense repack when channels divide 128 (C = 16, 64)
    if C < 128 and 128 % C == 0 and (M * C) % 128 == 0:
        quads = [q.reshape(M * C // 128, 128) for q in quads]
    R, L = quads[0].shape
    TR = _choose_tile(R, EW_TILE_CAP)
    Rp = _round_up(R, TR)
    quads = [_pad_rows(q, Rp) for q in quads]
    row_spec = pl.BlockSpec((TR, L), lambda i: (i, 0))
    mx, k = pl.pallas_call(
        _maxpool4_idx_kernel,
        out_shape=(jax.ShapeDtypeStruct((Rp, L), ACT_DTYPE),
                   jax.ShapeDtypeStruct((Rp, L), jnp.int32)),
        grid=(Rp // TR,),
        in_specs=[row_spec] * 4,
        out_specs=(row_spec, row_spec),
        compiler_params=_cparams(),
    )(*quads)
    mx = mx[:R].reshape(B, Ho, Wo, C)
    k = k[:R].reshape(B, Ho, Wo, C)
    ho = jnp.arange(Ho, dtype=jnp.int32).reshape(1, Ho, 1, 1)
    wo = jnp.arange(Wo, dtype=jnp.int32).reshape(1, 1, Wo, 1)
    flat_idx = (2 * ho + k // 2) * W + (2 * wo + k % 2)
    return mx, flat_idx


# ----------------------------- conv glue (im2col) ---------------------------

def im2col(x, kh, kw, stride, pad, dil=(1, 1)):
    B, H, W, C = x.shape
    ph, pw = pad
    dh, dw = dil
    Ho = (H + 2 * ph - dh * (kh - 1) - 1) // stride + 1
    Wo = (W + 2 * pw - dw * (kw - 1) - 1) // stride + 1
    xp = jnp.pad(x, ((0, 0), (ph, ph), (pw, pw), (0, 0)))
    cols = []
    for i in range(kh):
        for j in range(kw):
            r0, c0 = i * dh, j * dw
            patch = xp[:, r0:r0 + stride * (Ho - 1) + 1:stride,
                          c0:c0 + stride * (Wo - 1) + 1:stride, :]
            cols.append(patch)
    patches = jnp.concatenate(cols, axis=-1)   # (B, Ho, Wo, kh*kw*C), bf16
    return patches.reshape(B * Ho * Wo, kh * kw * C), (B, Ho, Wo)


def conv_bn_act(x, p, kh, kw, stride, pad, dil=(1, 1)):
    """Conv (im2col matmul) + shift + PReLU (identity act when alpha==1)."""
    B, H, W, C = x.shape
    if kh == 1 and kw == 1 and stride == 1:
        patches = x.reshape(B * H * W, C)     # 1x1 conv: no im2col / pad needed
        Bo, Ho, Wo = B, H, W
    else:
        patches, (Bo, Ho, Wo) = im2col(x, kh, kw, stride, pad, dil)
    y = matmul_bn_act(patches, p['w'], p['shift'], p['alpha'])
    return y.reshape(Bo, Ho, Wo, -1)


# ----------------------------- parameter init -------------------------------

def _prelu(c):
    return jnp.full((c,), 0.25, jnp.float32)   # torch PReLU default init


def _bn(key, c):
    k1, k2 = jax.random.split(key)
    gamma = 1.0 + 0.1 * jax.random.normal(k1, (c,), jnp.float32)
    beta = 0.1 * jax.random.normal(k2, (c,), jnp.float32)
    # eval-mode BN with fresh running stats: mean=0, var=1
    scale = gamma / jnp.sqrt(1.0 + EPS)
    shift = beta
    return scale, shift


def _conv_w(key, kh, kw, cin, cout):
    fan_in = kh * kw * cin
    w = jax.random.normal(key, (kh, kw, cin, cout), jnp.float32) / np.sqrt(fan_in)
    return w.reshape(fan_in, cout)   # matches im2col feature ordering (i, j, cin)


def _conv_bn_prelu_params(key, kh, kw, cin, cout, bias=False):
    kw_, kb, kbn = jax.random.split(key, 3)
    w = _conv_w(kw_, kh, kw, cin, cout)
    scale, shift = _bn(kbn, cout)
    if bias:
        b = 0.1 * jax.random.normal(kb, (cout,), jnp.float32)
        shift = shift + scale * b                   # fold conv bias through BN affine
    w = (w * scale[None, :]).astype(ACT_DTYPE)      # fold BN scale into weights; bf16 MXU
    return dict(w=w, shift=shift, alpha=_prelu(cout))


def _conv_identity_params(key, kh, kw, cin, cout):
    # bare conv (no bias / BN / activation): asymmetric conv1
    w = _conv_w(key, kh, kw, cin, cout).astype(ACT_DTYPE)
    return dict(w=w, shift=jnp.zeros((cout,), jnp.float32),
                alpha=jnp.ones((cout,), jnp.float32))


def _initial_params(key):
    k1, k2 = jax.random.split(key)
    w = _conv_w(k1, 3, 3, 3, 13)                    # (27, 13)
    scale, shift = _bn(k2, 16)                      # BN over the 16 concat channels
    w13 = w * scale[None, :13]                      # fold BN scale for conv channels
    w16 = jnp.concatenate([w13, jnp.zeros((27, 3), jnp.float32)], axis=1)
    sel = jnp.zeros((3, 16), jnp.float32)
    sel = sel.at[jnp.arange(3), 13 + jnp.arange(3)].set(scale[13:16])  # pool scatter+scale
    return dict(w16=w16.astype(ACT_DTYPE), sel=sel, shift=shift, alpha=_prelu(16))


def _bn_cfg(cin, cout, down=False, dil=None, asym=False):
    return dict(type='bottleneck', cin=cin, cout=cout, down=down, dil=dil, asym=asym)


def init_encoder_params(key):
    cfgs = [('initial', dict(type='initial'))]
    cfgs += [
        ('bottleneck_1_0', _bn_cfg(16, 64, down=True)),
        ('bottleneck_1_1', _bn_cfg(64, 64)),
        ('bottleneck_1_2', _bn_cfg(64, 64)),
        ('bottleneck_1_3', _bn_cfg(64, 64)),
        ('bottleneck_1_4', _bn_cfg(64, 64)),
        ('bottleneck_2_0', _bn_cfg(64, 128, down=True)),
        ('bottleneck_2_1', _bn_cfg(128, 128)),
        ('bottleneck_2_2', _bn_cfg(128, 128, dil=2)),
        ('bottleneck_2_3', _bn_cfg(128, 128, asym=True)),
        ('bottleneck_2_4', _bn_cfg(128, 128, dil=4)),
        ('bottleneck_2_5', _bn_cfg(128, 128)),
        ('bottleneck_2_6', _bn_cfg(128, 128, dil=8)),
        ('bottleneck_2_7', _bn_cfg(128, 128, asym=True)),
        ('bottleneck_2_8', _bn_cfg(128, 128, dil=16)),
        ('bottleneck_3_1', _bn_cfg(128, 128)),
        ('bottleneck_3_2', _bn_cfg(128, 128, dil=2)),
        ('bottleneck_3_3', _bn_cfg(128, 128, asym=True)),
        ('bottleneck_3_4', _bn_cfg(128, 128, dil=4)),
        ('bottleneck_3_5', _bn_cfg(128, 128)),
        ('bottleneck_3_6', _bn_cfg(128, 128, dil=8)),
        ('bottleneck_3_7', _bn_cfg(128, 128, asym=True)),
        ('bottleneck_3_8', _bn_cfg(128, 128, dil=16)),
    ]
    params = []
    keys = jax.random.split(key, len(cfgs))
    for (name, cfg), k in zip(cfgs, keys):
        if cfg['type'] == 'initial':
            p = _initial_params(k)
        else:
            cin, cout = cfg['cin'], cfg['cout']
            red = cout // 4
            ks = jax.random.split(k, 5)
            if cfg['down']:
                b1 = _conv_bn_prelu_params(ks[0], 2, 2, cin, red, bias=False)
            else:
                b1 = _conv_bn_prelu_params(ks[0], 1, 1, cin, red, bias=False)
            if cfg['asym']:
                mid = dict(conv1=_conv_identity_params(ks[1], 5, 1, red, red),
                           conv2=_conv_bn_prelu_params(ks[2], 1, 5, red, red, bias=True))
            else:
                mid = _conv_bn_prelu_params(ks[1], 3, 3, red, red, bias=True)
            b2 = _conv_bn_prelu_params(ks[3], 1, 1, red, cout, bias=False)
            p = dict(b1=b1, mid=mid, b2=b2, alpha_out=_prelu(cout))
        params.append((name, cfg, p))
    return params


# ----------------------------- forward passes -------------------------------

def initial_block(x, p):
    """Fused InitialBlock: 3->13 stride-2 conv + 2x2 maxpool + concat + BN + PReLU."""
    patches, (Bo, Ho, Wo) = im2col(x, 3, 3, stride=2, pad=(1, 1))
    M = Bo * Ho * Wo
    TM = _choose_tile(M, MM_TILE_CAP)
    Mp = _round_up(M, TM)
    patches = _pad_rows(patches, Mp)
    y = pl.pallas_call(
        _initial_block_kernel,
        out_shape=jax.ShapeDtypeStruct((Mp, 16), ACT_DTYPE),
        grid=(Mp // TM,),
        in_specs=[
            pl.BlockSpec((TM, 27), lambda i: (i, 0)),
            pl.BlockSpec((27, 16), lambda i: (0, 0)),
            pl.BlockSpec((3, 16), lambda i: (0, 0)),
            pl.BlockSpec((1, 16), lambda i: (0, 0)),
            pl.BlockSpec((1, 16), lambda i: (0, 0)),
        ],
        out_specs=pl.BlockSpec((TM, 16), lambda i: (i, 0)),
        compiler_params=_cparams(),
    )(patches, p['w16'], p['sel'], p['shift'].reshape(1, 16), p['alpha'].reshape(1, 16))
    return y[:M].reshape(Bo, Ho, Wo, 16)


def bottleneck(x, cfg, p):
    cin, cout = cfg['cin'], cfg['cout']
    # convolution branch: reduce
    if cfg['down']:
        h = conv_bn_act(x, p['b1'], 2, 2, stride=2, pad=(0, 0))
    else:
        h = conv_bn_act(x, p['b1'], 1, 1, stride=1, pad=(0, 0))
    # pooling (skip) branch
    indices = None
    if cfg['down']:
        skip, indices = maxpool2x2_with_indices(x)
        if cout != cin:
            # TODO(synk): fold the channel zero-pad of the skip into the fused kernel.
            skip = jnp.pad(skip, ((0, 0), (0, 0), (0, 0), (0, cout - cin)))
    else:
        skip = x
    B, Hs, Ws, _ = skip.shape
    skip2d = skip.reshape(B * Hs * Ws, cout)
    # mid conv + BN + PReLU + 1x1 expand + BN + PReLU + residual + output PReLU,
    # all in one fused kernel (Dropout2d: eval-mode identity).
    if cfg['asym']:
        h = conv_bn_act(h, p['mid']['conv1'], 5, 1, stride=1, pad=(2, 0))  # bare 5x1 conv
        patches, (Bo, Ho, Wo) = im2col(h, 1, 5, stride=1, pad=(0, 2))
        out = mid_expand_fused(patches, p['mid']['conv2'], p['b2'], skip2d, p['alpha_out'])
    elif cfg['dil'] is not None:
        d = cfg['dil']
        patches, (Bo, Ho, Wo) = im2col(h, 3, 3, stride=1, pad=(d, d), dil=(d, d))
        out = mid_expand_fused(patches, p['mid'], p['b2'], skip2d, p['alpha_out'])
    else:
        patches, (Bo, Ho, Wo) = im2col(h, 3, 3, stride=1, pad=(1, 1))
        out = mid_expand_fused(patches, p['mid'], p['b2'], skip2d, p['alpha_out'])
    out = out.reshape(Bo, Ho, Wo, cout)
    if cfg['down']:
        return out, indices
    return out


def encoder_forward(x_nchw, params):
    x = jnp.transpose(x_nchw, (0, 2, 3, 1)).astype(ACT_DTYPE)   # NCHW -> NHWC, bf16
    pooling_stack = []
    for _, cfg, p in params:
        if cfg['type'] == 'initial':
            x = initial_block(x, p)
        elif cfg['down']:
            x, idx = bottleneck(x, cfg, p)
            pooling_stack.append(jnp.transpose(idx, (0, 3, 1, 2)))   # indices in NCHW
        else:
            x = bottleneck(x, cfg, p)
    out = jnp.transpose(x, (0, 3, 1, 2)).astype(jnp.float32)
    return out, pooling_stack


# ----------------------------- main ------------------------------------------

if __name__ == "__main__":
    key = jax.random.PRNGKey(0)
    kp, kx = jax.random.split(key)
    params = init_encoder_params(kp)

    # small but structure-consistent input: Encoder needs 3 input channels and
    # spatial dims divisible by 8 (three /2 stages).
    x = jax.random.normal(kx, (2, 3, 32, 32), jnp.float32)

    fwd = jax.jit(lambda inp: encoder_forward(inp, params))
    out, pooling_stack = fwd(x)

    out = jax.block_until_ready(out)
    pooling_stack = [jax.block_until_ready(i) for i in pooling_stack]

    assert out.shape == (2, 128, 4, 4), out.shape
    assert pooling_stack[0].shape == (2, 16, 8, 8), pooling_stack[0].shape
    assert pooling_stack[1].shape == (2, 64, 4, 4), pooling_stack[1].shape
    assert jnp.all(jnp.isfinite(out))

    print("KERNEL_OK")
</pallas_src>

<mosaic_0001>
module attributes {stable_mosaic.version = 11 : i64} {
  func.func @_initial_block_kernel(%arg0: i32, %arg1: memref<256x27xbf16, #tpu.memory_space<vmem>>, %arg2: memref<27x16xbf16, #tpu.memory_space<vmem>>, %arg3: memref<3x16xf32, #tpu.memory_space<vmem>>, %arg4: memref<1x16xf32, #tpu.memory_space<vmem>>, %arg5: memref<1x16xf32, #tpu.memory_space<vmem>>, %arg6: memref<256x16xbf16, #tpu.memory_space<vmem>>) attributes {dimension_semantics = [#tpu.dimension_semantics<parallel>], iteration_bounds = array<i64: 2>, scalar_prefetch = 0 : i64, scratch_operands = 0 : i64, tpu.core_type = #tpu.core_type<tc>, window_params = [{transform_indices = @transform_0, window_bounds = array<i64: 256, 27>}, {pipeline_mode = #tpu.pipeline_mode<synchronous>, transform_indices = @transform_1, window_bounds = array<i64: 27, 16>}, {pipeline_mode = #tpu.pipeline_mode<synchronous>, transform_indices = @transform_2, window_bounds = array<i64: 3, 16>}, {pipeline_mode = #tpu.pipeline_mode<synchronous>, transform_indices = @transform_3, window_bounds = array<i64: 1, 16>}, {pipeline_mode = #tpu.pipeline_mode<synchronous>, transform_indices = @transform_4, window_bounds = array<i64: 1, 16>}, {transform_indices = @transform_5, window_bounds = array<i64: 256, 16>}]} {
    %c0 = arith.constant 0 : index
    %c0_0 = arith.constant 0 : index
    %0 = vector.load %arg1[%c0, %c0_0] : memref<256x27xbf16, #tpu.memory_space<vmem>>, vector<256x27xbf16>
    %c0_1 = arith.constant 0 : index
    %c0_2 = arith.constant 0 : index
    %1 = vector.load %arg2[%c0_1, %c0_2] : memref<27x16xbf16, #tpu.memory_space<vmem>>, vector<27x16xbf16>
    %cst = arith.constant dense<0.000000e+00> : vector<256x16xf32>
    %2 = tpu.matmul %0, %1, %cst {dimension_numbers = #tpu.dot_dimension_numbers<[1], [0], [0], [1], [0, 0, 1, 1], [], []>} : vector<256x27xbf16>, vector<27x16xbf16>, vector<256x16xf32> -> vector<256x16xf32>
    %3 = vector.extract_strided_slice %0 {offsets = [0, 12], sizes = [256, 3], strides = [1, 1]} : vector<256x27xbf16> to vector<256x3xbf16>
    %4 = vector.extract_strided_slice %0 {offsets = [0, 15], sizes = [256, 3], strides = [1, 1]} : vector<256x27xbf16> to vector<256x3xbf16>
    %5 = vector.extract_strided_slice %0 {offsets = [0, 21], sizes = [256, 3], strides = [1, 1]} : vector<256x27xbf16> to vector<256x3xbf16>
    %6 = vector.extract_strided_slice %0 {offsets = [0, 24], sizes = [256, 3], strides = [1, 1]} : vector<256x27xbf16> to vector<256x3xbf16>
    %7 = arith.maximumf %3, %4 : vector<256x3xbf16>
    %8 = arith.maximumf %5, %6 : vector<256x3xbf16>
    %9 = arith.maximumf %7, %8 : vector<256x3xbf16>
    %10 = arith.extf %9 : vector<256x3xbf16> to vector<256x3xf32>
    %c0_3 = arith.constant 0 : index
    %c0_4 = arith.constant 0 : index
    %11 = vector.load %arg3[%c0_3, %c0_4] : memref<3x16xf32, #tpu.memory_space<vmem>>, vector<3x16xf32>
    %cst_5 = arith.constant dense<0.000000e+00> : vector<256x16xf32>
    %12 = tpu.matmul %10, %11, %cst_5 {dimension_numbers = #tpu.dot_dimension_numbers<[1], [0], [0], [1], [0, 0, 1, 1], [], []>} : vector<256x3xf32>, vector<3x16xf32>, vector<256x16xf32> -> vector<256x16xf32>
    %13 = arith.addf %2, %12 : vector<256x16xf32>
    %c0_6 = arith.constant 0 : index
    %c0_7 = arith.constant 0 : index
    %14 = vector.load %arg4[%c0_6, %c0_7] : memref<1x16xf32, #tpu.memory_space<vmem>>, vector<1x16xf32>
    %15 = vector.broadcast %14 : vector<1x16xf32> to vector<256x16xf32>
    %16 = arith.addf %13, %15 : vector<256x16xf32>
    %cst_8 = arith.constant 0.000000e+00 : f32
    %17 = vector.broadcast %cst_8 : f32 to vector<256x16xf32>
    %18 = arith.cmpf oge, %16, %17 : vector<256x16xf32>
    %c0_9 = arith.constant 0 : index
    %c0_10 = arith.constant 0 : index
    %19 = vector.load %arg5[%c0_9, %c0_10] : memref<1x16xf32, #tpu.memory_space<vmem>>, vector<1x16xf32>
    %20 = vector.broadcast %19 : vector<1x16xf32> to vector<256x16xf32>
    %21 = arith.mulf %16, %20 : vector<256x16xf32>
    %22 = arith.select %18, %16, %21 : vector<256x16xi1>, vector<256x16xf32>
    %23 = arith.truncf %22 : vector<256x16xf32> to vector<256x16xbf16>
    %c0_11 = arith.constant 0 : index
    %c0_12 = arith.constant 0 : index
    %24 = vector.load %arg6[%c0_11, %c0_12] : memref<256x16xbf16, #tpu.memory_space<vmem>>, vector<256x16xbf16>
    tpu.vector_store %arg6[%c0_11, %c0_12], %23 {strides = array<i32>} : memref<256x16xbf16, #tpu.memory_space<vmem>>, vector<256x16xbf16>,
    return
  }
  func.func @transform_0(%arg0: i32) -> (i32, i32) {
    %c0_i32 = arith.constant 0 : i32
    %c0_i32_0 = arith.constant 0 : i32
    return %arg0, %c0_i32 : i32, i32
  }
  func.func @transform_1(%arg0: i32) -> (i32, i32) {
    %c0_i32 = arith.constant 0 : i32
    %c0_i32_0 = arith.constant 0 : i32
    %c0_i32_1 = arith.constant 0 : i32
    return %c0_i32, %c0_i32_0 : i32, i32
  }
  func.func @transform_2(%arg0: i32) -> (i32, i32) {
    %c0_i32 = arith.constant 0 : i32
    %c0_i32_0 = arith.constant 0 : i32
    %c0_i32_1 = arith.constant 0 : i32
    return %c0_i32, %c0_i32_0 : i32, i32
  }
  func.func @transform_3(%arg0: i32) -> (i32, i32) {
    %c0_i32 = arith.constant 0 : i32
    %c0_i32_0 = arith.constant 0 : i32
    %c0_i32_1 = arith.constant 0 : i32
    return %c0_i32, %c0_i32_0 : i32, i32
  }
  func.func @transform_4(%arg0: i32) -> (i32, i32) {
    %c0_i32 = arith.constant 0 : i32
    %c0_i32_0 = arith.constant 0 : i32
    %c0_i32_1 = arith.constant 0 : i32
    return %c0_i32, %c0_i32_0 : i32, i32
  }
  func.func @transform_5(%arg0: i32) -> (i32, i32) {
    %c0_i32 = arith.constant 0 : i32
    %c0_i32_0 = arith.constant 0 : i32
    return %arg0, %c0_i32 : i32, i32
  }
}

module attributes {stable_mosaic.version = 11 : i64} {
  func.func @_mm_bn_act_kernel(%arg0: i32, %arg1: memref<64x64xbf16, #tpu.memory_space<vmem>>, %arg2: memref<64x16xbf16, #tpu.memory_space<vmem>>, %arg3: memref<1x16xf32, #tpu.memory_space<vmem>>, %arg4: memref<1x16xf32, #tpu.memory_space<vmem>>, %arg5: memref<64x16xbf16, #tpu.memory_space<vmem>>) attributes {dimension_semantics = [#tpu.dimension_semantics<parallel>], iteration_bounds = array<i64: 2>, scalar_prefetch = 0 : i64, scratch_operands = 0 : i64, tpu.core_type = #tpu.core_type<tc>, window_params = [{transform_indices = @transform_0, window_bounds = array<i64: 64, 64>}, {pipeline_mode = #tpu.pipeline_mode<synchronous>, transform_indices = @transform_1, window_bounds = array<i64: 64, 16>}, {pipeline_mode = #tpu.pipeline_mode<synchronous>, transform_indices = @transform_2, window_bounds = array<i64: 1, 16>}, {pipeline_mode = #tpu.pipeline_mode<synchronous>, transform_indices = @transform_3, window_bounds = array<i64: 1, 16>}, {transform_indices = @transform_4, window_bounds = array<i64: 64, 16>}]} {
    %c0 = arith.constant 0 : index
    %c0_0 = arith.constant 0 : index
    %0 = vector.load %arg1[%c0, %c0_0] : memref<64x64xbf16, #tpu.memory_space<vmem>>, vector<64x64xbf16>
    %c0_1 = arith.constant 0 : index
    %c0_2 = arith.constant 0 : index
    %1 = vector.load %arg2[%c0_1, %c0_2] : memref<64x16xbf16, #tpu.memory_space<vmem>>, vector<64x16xbf16>
    %cst = arith.constant dense<0.000000e+00> : vector<64x16xf32>
    %2 = tpu.matmul %0, %1, %cst {dimension_numbers = #tpu.dot_dimension_numbers<[1], [0], [0], [1], [0, 0, 1, 1], [], []>} : vector<64x64xbf16>, vector<64x16xbf16>, vector<64x16xf32> -> vector<64x16xf32>
    %c0_3 = arith.constant 0 : index
    %c0_4 = arith.constant 0 : index
    %3 = vector.load %arg3[%c0_3, %c0_4] : memref<1x16xf32, #tpu.memory_space<vmem>>, vector<1x16xf32>
    %4 = vector.broadcast %3 : vector<1x16xf32> to vector<64x16xf32>
    %5 = arith.addf %2, %4 : vector<64x16xf32>
    %cst_5 = arith.constant 0.000000e+00 : f32
    %6 = vector.broadcast %cst_5 : f32 to vector<64x16xf32>
    %7 = arith.cmpf oge, %5, %6 : vector<64x16xf32>
    %c0_6 = arith.constant 0 : index
    %c0_7 = arith.constant 0 : index
    %8 = vector.load %arg4[%c0_6, %c0_7] : memref<1x16xf32, #tpu.memory_space<vmem>>, vector<1x16xf32>
    %9 = vector.broadcast %8 : vector<1x16xf32> to vector<64x16xf32>
    %10 = arith.mulf %5, %9 : vector<64x16xf32>
    %11 = arith.select %7, %5, %10 : vector<64x16xi1>, vector<64x16xf32>
    %12 = arith.truncf %11 : vector<64x16xf32> to vector<64x16xbf16>
    %c0_8 = arith.constant 0 : index
    %c0_9 = arith.constant 0 : index
    %13 = vector.load %arg5[%c0_8, %c0_9] : memref<64x16xbf16, #tpu.memory_space<vmem>>, vector<64x16xbf16>
    tpu.vector_store %arg5[%c0_8, %c0_9], %12 {strides = array<i32>} : memref<64x16xbf16, #tpu.memory_space<vmem>>, vector<64x16xbf16>,
    return
  }
  func.func @transform_0(%arg0: i32) -> (i32, i32) {
    %c0_i32 = arith.constant 0 : i32
    %c0_i32_0 = arith.constant 0 : i32
    return %arg0, %c0_i32 : i32, i32
  }
  func.func @transform_1(%arg0: i32) -> (i32, i32) {
    %c0_i32 = arith.constant 0 : i32
    %c0_i32_0 = arith.constant 0 : i32
    %c0_i32_1 = arith.constant 0 : i32
    return %c0_i32, %c0_i32_0 : i32, i32
  }
  func.func @transform_2(%arg0: i32) -> (i32, i32) {
    %c0_i32 = arith.constant 0 : i32
    %c0_i32_0 = arith.constant 0 : i32
    %c0_i32_1 = arith.constant 0 : i32
    return %c0_i32, %c0_i32_0 : i32, i32
  }
  func.func @transform_3(%arg0: i32) -> (i32, i32) {
    %c0_i32 = arith.constant 0 : i32
    %c0_i32_0 = arith.constant 0 : i32
    %c0_i32_1 = arith.constant 0 : i32
    return %c0_i32, %c0_i32_0 : i32, i32
  }
  func.func @transform_4(%arg0: i32) -> (i32, i32) {
    %c0_i32 = arith.constant 0 : i32
    %c0_i32_0 = arith.constant 0 : i32
    return %arg0, %c0_i32 : i32, i32
  }
}

module attributes {stable_mosaic.version = 11 : i64} {
  func.func @_mid_expand_fused_kernel(%arg0: i32, %arg1: memref<64x144xbf16, #tpu.memory_space<vmem>>, %arg2: memref<144x16xbf16, #tpu.memory_space<vmem>>, %arg3: memref<1x16xf32, #tpu.memory_space<vmem>>, %arg4: memref<1x16xf32, #tpu.memory_space<vmem>>, %arg5: memref<16x64xbf16, #tpu.memory_space<vmem>>, %arg6: memref<1x64xf32, #tpu.memory_space<vmem>>, %arg7: memref<1x64xf32, #tpu.memory_space<vmem>>, %arg8: memref<64x64xbf16, #tpu.memory_space<vmem>>, %arg9: memref<1x64xf32, #tpu.memory_space<vmem>>, %arg10: memref<64x64xbf16, #tpu.memory_space<vmem>>) attributes {dimension_semantics = [#tpu.dimension_semantics<parallel>], iteration_bounds = array<i64: 2>, scalar_prefetch = 0 : i64, scratch_operands = 0 : i64, tpu.core_type = #tpu.core_type<tc>, window_params = [{transform_indices = @transform_0, window_bounds = array<i64: 64, 144>}, {pipeline_mode = #tpu.pipeline_mode<synchronous>, transform_indices = @transform_1, window_bounds = array<i64: 144, 16>}, {pipeline_mode = #tpu.pipeline_mode<synchronous>, transform_indices = @transform_2, window_bounds = array<i64: 1, 16>}, {pipeline_mode = #tpu.pipeline_mode<synchronous>, transform_indices = @transform_3, window_bounds = array<i64: 1, 16>}, {pipeline_mode = #tpu.pipeline_mode<synchronous>, transform_indices = @transform_4, window_bounds = array<i64: 16, 64>}, {pipeline_mode = #tpu.pipeline_mode<synchronous>, transform_indices = @transform_5, window_bounds = array<i64: 1, 64>}, {pipeline_mode = #tpu.pipeline_mode<synchronous>, transform_indices = @transform_6, window_bounds = array<i64: 1, 64>}, {transform_indices = @transform_7, window_bounds = array<i64: 64, 64>}, {pipeline_mode = #tpu.pipeline_mode<synchronous>, transform_indices = @transform_8, window_bounds = array<i64: 1, 64>}, {transform_indices = @transform_9, window_bounds = array<i64: 64, 64>}]} {
    %c0 = arith.constant 0 : index
    %c0_0 = arith.constant 0 : index
    %0 = vector.load %arg1[%c0, %c0_0] : memref<64x144xbf16, #tpu.memory_space<vmem>>, vector<64x144xbf16>
    %c0_1 = arith.constant 0 : index
    %c0_2 = arith.constant 0 : index
    %1 = vector.load %arg2[%c0_1, %c0_2] : memref<144x16xbf16, #tpu.memory_space<vmem>>, vector<144x16xbf16>
    %cst = arith.constant dense<0.000000e+00> : vector<64x16xf32>
    %2 = tpu.matmul %0, %1, %cst {dimension_numbers = #tpu.dot_dimension_numbers<[1], [0], [0], [1], [0, 0, 1, 1], [], []>} : vector<64x144xbf16>, vector<144x16xbf16>, vector<64x16xf32> -> vector<64x16xf32>
    %c0_3 = arith.constant 0 : index
    %c0_4 = arith.constant 0 : index
    %3 = vector.load %arg3[%c0_3, %c0_4] : memref<1x16xf32, #tpu.memory_space<vmem>>, vector<1x16xf32>
    %4 = vector.broadcast %3 : vector<1x16xf32> to vector<64x16xf32>
    %5 = arith.addf %2, %4 : vector<64x16xf32>
    %cst_5 = arith.constant 0.000000e+00 : f32
    %6 = vector.broadcast %cst_5 : f32 to vector<64x16xf32>
    %7 = arith.cmpf oge, %5, %6 : vector<64x16xf32>
    %c0_6 = arith.constant 0 : index
    %c0_7 = arith.constant 0 : index
    %8 = vector.load %arg4[%c0_6, %c0_7] : memref<1x16xf32, #tpu.memory_space<vmem>>, vector<1x16xf32>
    %9 = vector.broadcast %8 : vector<1x16xf32> to vector<64x16xf32>
    %10 = arith.mulf %5, %9 : vector<64x16xf32>
    %11 = arith.select %7, %5, %10 : vector<64x16xi1>, vector<64x16xf32>
    %12 = arith.truncf %11 : vector<64x16xf32> to vector<64x16xbf16>
    %c0_8 = arith.constant 0 : index
    %c0_9 = arith.constant 0 : index
    %13 = vector.load %arg5[%c0_8, %c0_9] : memref<16x64xbf16, #tpu.memory_space<vmem>>, vector<16x64xbf16>
    %cst_10 = arith.constant dense<0.000000e+00> : vector<64x64xf32>
    %14 = tpu.matmul %12, %13, %cst_10 {dimension_numbers = #tpu.dot_dimension_numbers<[1], [0], [0], [1], [0, 0, 1, 1], [], []>} : vector<64x16xbf16>, vector<16x64xbf16>, vector<64x64xf32> -> vector<64x64xf32>
    %c0_11 = arith.constant 0 : index
    %c0_12 = arith.constant 0 : index
    %15 = vector.load %arg6[%c0_11, %c0_12] : memref<1x64xf32, #tpu.memory_space<vmem>>, vector<1x64xf32>
    %16 = vector.broadcast %15 : vector<1x64xf32> to vector<64x64xf32>
    %17 = arith.addf %14, %16 : vector<64x64xf32>
    %cst_13 = arith.constant 0.000000e+00 : f32
    %18 = vector.broadcast %cst_13 : f32 to vector<64x64xf32>
    %19 = arith.cmpf oge, %17, %18 : vector<64x64xf32>
    %c0_14 = arith.constant 0 : index
    %c0_15 = arith.constant 0 : index
    %20 = vector.load %arg7[%c0_14, %c0_15] : memref<1x64xf32, #tpu.memory_space<vmem>>, vector<1x64xf32>
    %21 = vector.broadcast %20 : vector<1x64xf32> to vector<64x64xf32>
    %22 = arith.mulf %17, %21 : vector<64x64xf32>
    %23 = arith.select %19, %17, %22 : vector<64x64xi1>, vector<64x64xf32>
    %c0_16 = arith.constant 0 : index
    %c0_17 = arith.constant 0 : index
    %24 = vector.load %arg8[%c0_16, %c0_17] : memref<64x64xbf16, #tpu.memory_space<vmem>>, vector<64x64xbf16>
    %25 = arith.extf %24 : vector<64x64xbf16> to vector<64x64xf32>
    %26 = arith.addf %23, %25 : vector<64x64xf32>
    %cst_18 = arith.constant 0.000000e+00 : f32
    %27 = vector.broadcast %cst_18 : f32 to vector<64x64xf32>
    %28 = arith.cmpf oge, %26, %27 : vector<64x64xf32>
    %c0_19 = arith.constant 0 : index
    %c0_20 = arith.constant 0 : index
    %29 = vector.load %arg9[%c0_19, %c0_20] : memref<1x64xf32, #tpu.memory_space<vmem>>, vector<1x64xf32>
    %30 = vector.broadcast %29 : vector<1x64xf32> to vector<64x64xf32>
    %31 = arith.mulf %26, %30 : vector<64x64xf32>
    %32 = arith.select %28, %26, %31 : vector<64x64xi1>, vector<64x64xf32>
    %33 = arith.truncf %32 : vector<64x64xf32> to vector<64x64xbf16>
    %c0_21 = arith.constant 0 : index
    %c0_22 = arith.constant 0 : index
    %34 = vector.load %arg10[%c0_21, %c0_22] : memref<64x64xbf16, #tpu.memory_space<vmem>>, vector<64x64xbf16>
    tpu.vector_store %arg10[%c0_21, %c0_22], %33 {strides = array<i32>} : memref<64x64xbf16, #tpu.memory_space<vmem>>, vector<64x64xbf16>,
    return
  }
  func.func @transform_0(%arg0: i32) -> (i32, i32) {
    %c0_i32 = arith.constant 0 : i32
    %c0_i32_0 = arith.constant 0 : i32
    return %arg0, %c0_i32 : i32, i32
  }
  func.func @transform_1(%arg0: i32) -> (i32, i32) {
    %c0_i32 = arith.constant 0 : i32
    %c0_i32_0 = arith.constant 0 : i32
    %c0_i32_1 = arith.constant 0 : i32
    return %c0_i32, %c0_i32_0 : i32, i32
  }
  func.func @transform_2(%arg0: i32) -> (i32, i32) {
    %c0_i32 = arith.constant 0 : i32
    %c0_i32_0 = arith.constant 0 : i32
    %c0_i32_1 = arith.constant 0 : i32
    return %c0_i32, %c0_i32_0 : i32, i32
  }
  func.func @transform_3(%arg0: i32) -> (i32, i32) {
    %c0_i32 = arith.constant 0 : i32
    %c0_i32_0 = arith.constant 0 : i32
    %c0_i32_1 = arith.constant 0 : i32
    return %c0_i32, %c0_i32_0 : i32, i32
  }
  func.func @transform_4(%arg0: i32) -> (i32, i32) {
    %c0_i32 = arith.constant 0 : i32
    %c0_i32_0 = arith.constant 0 : i32
    %c0_i32_1 = arith.constant 0 : i32
    return %c0_i32, %c0_i32_0 : i32, i32
  }
  func.func @transform_5(%arg0: i32) -> (i32, i32) {
    %c0_i32 = arith.constant 0 : i32
    %c0_i32_0 = arith.constant 0 : i32
    %c0_i32_1 = arith.constant 0 : i32
    return %c0_i32, %c0_i32_0 : i32, i32
  }
  func.func @transform_6(%arg0: i32) -> (i32, i32) {
    %c0_i32 = arith.constant 0 : i32
    %c0_i32_0 = arith.constant 0 : i32
    %c0_i32_1 = arith.constant 0 : i32
    return %c0_i32, %c0_i32_0 : i32, i32
  }
  func.func @transform_7(%arg0: i32) -> (i32, i32) {
    %c0_i32 = arith.constant 0 : i32
    %c0_i32_0 = arith.constant 0 : i32
    return %arg0, %c0_i32 : i32, i32
  }
  func.func @transform_8(%arg0: i32) -> (i32, i32) {
    %c0_i32 = arith.constant 0 : i32
    %c0_i32_0 = arith.constant 0 : i32
    %c0_i32_1 = arith.constant 0 : i32
    return %c0_i32, %c0_i32_0 : i32, i32
  }
  func.func @transform_9(%arg0: i32) -> (i32, i32) {
    %c0_i32 = arith.constant 0 : i32
    %c0_i32_0 = arith.constant 0 : i32
    return %arg0, %c0_i32 : i32, i32
  }
}

module attributes {stable_mosaic.version = 11 : i64} {
  func.func @_maxpool4_idx_kernel(%arg0: i32, %arg1: memref<8x128xbf16, #tpu.memory_space<vmem>>, %arg2: memref<8x128xbf16, #tpu.memory_space<vmem>>, %arg3: memref<8x128xbf16, #tpu.memory_space<vmem>>, %arg4: memref<8x128xbf16, #tpu.memory_space<vmem>>, %arg5: memref<8x128xbf16, #tpu.memory_space<vmem>>, %arg6: memref<8x128xi32, #tpu.memory_space<vmem>>) attributes {dimension_semantics = [#tpu.dimension_semantics<parallel>], iteration_bounds = array<i64: 2>, scalar_prefetch = 0 : i64, scratch_operands = 0 : i64, tpu.core_type = #tpu.core_type<tc>, window_params = [{transform_indices = @transform_0, window_bounds = array<i64: 8, 128>}, {transform_indices = @transform_1, window_bounds = array<i64: 8, 128>}, {transform_indices = @transform_2, window_bounds = array<i64: 8, 128>}, {transform_indices = @transform_3, window_bounds = array<i64: 8, 128>}, {transform_indices = @transform_4, window_bounds = array<i64: 8, 128>}, {transform_indices = @transform_5, window_bounds = array<i64: 8, 128>}]} {
    %c0 = arith.constant 0 : index
    %c0_0 = arith.constant 0 : index
    %0 = vector.load %arg1[%c0, %c0_0] : memref<8x128xbf16, #tpu.memory_space<vmem>>, vector<8x128xbf16>
    %c0_1 = arith.constant 0 : index
    %c0_2 = arith.constant 0 : index
    %1 = vector.load %arg2[%c0_1, %c0_2] : memref<8x128xbf16, #tpu.memory_space<vmem>>, vector<8x128xbf16>
    %c0_3 = arith.constant 0 : index
    %c0_4 = arith.constant 0 : index
    %2 = vector.load %arg3[%c0_3, %c0_4] : memref<8x128xbf16, #tpu.memory_space<vmem>>, vector<8x128xbf16>
    %c0_5 = arith.constant 0 : index
    %c0_6 = arith.constant 0 : index
    %3 = vector.load %arg4[%c0_5, %c0_6] : memref<8x128xbf16, #tpu.memory_space<vmem>>, vector<8x128xbf16>
    %4 = arith.maximumf %0, %1 : vector<8x128xbf16>
    %5 = arith.cmpf ogt, %1, %0 : vector<8x128xbf16>
    %c1_i32 = arith.constant 1 : i32
    %c0_i32 = arith.constant 0 : i32
    %6 = vector.broadcast %c1_i32 : i32 to vector<8x128xi32>
    %7 = vector.broadcast %c0_i32 : i32 to vector<8x128xi32>
    %8 = arith.select %5, %6, %7 : vector<8x128xi1>, vector<8x128xi32>
    %9 = arith.maximumf %2, %3 : vector<8x128xbf16>
    %10 = arith.cmpf ogt, %3, %2 : vector<8x128xbf16>
    %c3_i32 = arith.constant 3 : i32
    %c2_i32 = arith.constant 2 : i32
    %11 = vector.broadcast %c3_i32 : i32 to vector<8x128xi32>
    %12 = vector.broadcast %c2_i32 : i32 to vector<8x128xi32>
    %13 = arith.select %10, %11, %12 : vector<8x128xi1>, vector<8x128xi32>
    %14 = arith.maximumf %4, %9 : vector<8x128xbf16>
    %c0_7 = arith.constant 0 : index
    %c0_8 = arith.constant 0 : index
    %15 = vector.load %arg5[%c0_7, %c0_8] : memref<8x128xbf16, #tpu.memory_space<vmem>>, vector<8x128xbf16>
    tpu.vector_store %arg5[%c0_7, %c0_8], %14 {strides = array<i32>} : memref<8x128xbf16, #tpu.memory_space<vmem>>, vector<8x128xbf16>,
    %16 = arith.cmpf ogt, %9, %4 : vector<8x128xbf16>
    %17 = arith.select %16, %13, %8 : vector<8x128xi1>, vector<8x128xi32>
    %c0_9 = arith.constant 0 : index
    %c0_10 = arith.constant 0 : index
    %18 = vector.load %arg6[%c0_9, %c0_10] : memref<8x128xi32, #tpu.memory_space<vmem>>, vector<8x128xi32>
    tpu.vector_store %arg6[%c0_9, %c0_10], %17 {strides = array<i32>} : memref<8x128xi32, #tpu.memory_space<vmem>>, vector<8x128xi32>,
    return
  }
  func.func @transform_0(%arg0: i32) -> (i32, i32) {
    %c0_i32 = arith.constant 0 : i32
    %c0_i32_0 = arith.constant 0 : i32
    return %arg0, %c0_i32 : i32, i32
  }
  func.func @transform_1(%arg0: i32) -> (i32, i32) {
    %c0_i32 = arith.constant 0 : i32
    %c0_i32_0 = arith.constant 0 : i32
    return %arg0, %c0_i32 : i32, i32
  }
  func.func @transform_2(%arg0: i32) -> (i32, i32) {
    %c0_i32 = arith.constant 0 : i32
    %c0_i32_0 = arith.constant 0 : i32
    return %arg0, %c0_i32 : i32, i32
  }
  func.func @transform_3(%arg0: i32) -> (i32, i32) {
    %c0_i32 = arith.constant 0 : i32
    %c0_i32_0 = arith.constant 0 : i32
    return %arg0, %c0_i32 : i32, i32
  }
  func.func @transform_4(%arg0: i32) -> (i32, i32) {
    %c0_i32 = arith.constant 0 : i32
    %c0_i32_0 = arith.constant 0 : i32
    return %arg0, %c0_i32 : i32, i32
  }
  func.func @transform_5(%arg0: i32) -> (i32, i32) {
    %c0_i32 = arith.constant 0 : i32
    %c0_i32_0 = arith.constant 0 : i32
    return %arg0, %c0_i32 : i32, i32
  }
}

module attributes {stable_mosaic.version = 11 : i64} {
  func.func @_mm_bn_act_kernel(%arg0: i32, %arg1: memref<16x256xbf16, #tpu.memory_space<vmem>>, %arg2: memref<256x32xbf16, #tpu.memory_space<vmem>>, %arg3: memref<1x32xf32, #tpu.memory_space<vmem>>, %arg4: memref<1x32xf32, #tpu.memory_space<vmem>>, %arg5: memref<16x32xbf16, #tpu.memory_space<vmem>>) attributes {dimension_semantics = [#tpu.dimension_semantics<parallel>], iteration_bounds = array<i64: 2>, scalar_prefetch = 0 : i64, scratch_operands = 0 : i64, tpu.core_type = #tpu.core_type<tc>, window_params = [{transform_indices = @transform_0, window_bounds = array<i64: 16, 256>}, {pipeline_mode = #tpu.pipeline_mode<synchronous>, transform_indices = @transform_1, window_bounds = array<i64: 256, 32>}, {pipeline_mode = #tpu.pipeline_mode<synchronous>, transform_indices = @transform_2, window_bounds = array<i64: 1, 32>}, {pipeline_mode = #tpu.pipeline_mode<synchronous>, transform_indices = @transform_3, window_bounds = array<i64: 1, 32>}, {transform_indices = @transform_4, window_bounds = array<i64: 16, 32>}]} {
    %c0 = arith.constant 0 : index
    %c0_0 = arith.constant 0 : index
    %0 = vector.load %arg1[%c0, %c0_0] : memref<16x256xbf16, #tpu.memory_space<vmem>>, vector<16x256xbf16>
    %c0_1 = arith.constant 0 : index
    %c0_2 = arith.constant 0 : index
    %1 = vector.load %arg2[%c0_1, %c0_2] : memref<256x32xbf16, #tpu.memory_space<vmem>>, vector<256x32xbf16>
    %cst = arith.constant dense<0.000000e+00> : vector<16x32xf32>
    %2 = tpu.matmul %0, %1, %cst {dimension_numbers = #tpu.dot_dimension_numbers<[1], [0], [0], [1], [0, 0, 1, 1], [], []>} : vector<16x256xbf16>, vector<256x32xbf16>, vector<16x32xf32> -> vector<16x32xf32>
    %c0_3 = arith.constant 0 : index
    %c0_4 = arith.constant 0 : index
    %3 = vector.load %arg3[%c0_3, %c0_4] : memref<1x32xf32, #tpu.memory_space<vmem>>, vector<1x32xf32>
    %4 = vector.broadcast %3 : vector<1x32xf32> to vector<16x32xf32>
    %5 = arith.addf %2, %4 : vector<16x32xf32>
    %cst_5 = arith.constant 0.000000e+00 : f32
    %6 = vector.broadcast %cst_5 : f32 to vector<16x32xf32>
    %7 = arith.cmpf oge, %5, %6 : vector<16x32xf32>
    %c0_6 = arith.constant 0 : index
    %c0_7 = arith.constant 0 : index
    %8 = vector.load %arg4[%c0_6, %c0_7] : memref<1x32xf32, #tpu.memory_space<vmem>>, vector<1x32xf32>
    %9 = vector.broadcast %8 : vector<1x32xf32> to vector<16x32xf32>
    %10 = arith.mulf %5, %9 : vector<16x32xf32>
    %11 = arith.select %7, %5, %10 : vector<16x32xi1>, vector<16x32xf32>
    %12 = arith.truncf %11 : vector<16x32xf32> to vector<16x32xbf16>
    %c0_8 = arith.constant 0 : index
    %c0_9 = arith.constant 0 : index
    %13 = vector.load %arg5[%c0_8, %c0_9] : memref<16x32xbf16, #tpu.memory_space<vmem>>, vector<16x32xbf16>
    tpu.vector_store %arg5[%c0_8, %c0_9], %12 {strides = array<i32>} : memref<16x32xbf16, #tpu.memory_space<vmem>>, vector<16x32xbf16>,
    return
  }
  func.func @transform_0(%arg0: i32) -> (i32, i32) {
    %c0_i32 = arith.constant 0 : i32
    %c0_i32_0 = arith.constant 0 : i32
    return %arg0, %c0_i32 : i32, i32
  }
  func.func @transform_1(%arg0: i32) -> (i32, i32) {
    %c0_i32 = arith.constant 0 : i32
    %c0_i32_0 = arith.constant 0 : i32
    %c0_i32_1 = arith.constant 0 : i32
    return %c0_i32, %c0_i32_0 : i32, i32
  }
  func.func @transform_2(%arg0: i32) -> (i32, i32) {
    %c0_i32 = arith.constant 0 : i32
    %c0_i32_0 = arith.constant 0 : i32
    %c0_i32_1 = arith.constant 0 : i32
    return %c0_i32, %c0_i32_0 : i32, i32
  }
  func.func @transform_3(%arg0: i32) -> (i32, i32) {
    %c0_i32 = arith.constant 0 : i32
    %c0_i32_0 = arith.constant 0 : i32
    %c0_i32_1 = arith.constant 0 : i32
    return %c0_i32, %c0_i32_0 : i32, i32
  }
  func.func @transform_4(%arg0: i32) -> (i32, i32) {
    %c0_i32 = arith.constant 0 : i32
    %c0_i32_0 = arith.constant 0 : i32
    return %arg0, %c0_i32 : i32, i32
  }
}

module attributes {stable_mosaic.version = 11 : i64} {
  func.func @_mm_bn_act_kernel(%arg0: i32, %arg1: memref<16x128xbf16, #tpu.memory_space<vmem>>, %arg2: memref<128x32xbf16, #tpu.memory_space<vmem>>, %arg3: memref<1x32xf32, #tpu.memory_space<vmem>>, %arg4: memref<1x32xf32, #tpu.memory_space<vmem>>, %arg5: memref<16x32xbf16, #tpu.memory_space<vmem>>) attributes {dimension_semantics = [#tpu.dimension_semantics<parallel>], iteration_bounds = array<i64: 2>, scalar_prefetch = 0 : i64, scratch_operands = 0 : i64, tpu.core_type = #tpu.core_type<tc>, window_params = [{transform_indices = @transform_0, window_bounds = array<i64: 16, 128>}, {pipeline_mode = #tpu.pipeline_mode<synchronous>, transform_indices = @transform_1, window_bounds = array<i64: 128, 32>}, {pipeline_mode = #tpu.pipeline_mode<synchronous>, transform_indices = @transform_2, window_bounds = array<i64: 1, 32>}, {pipeline_mode = #tpu.pipeline_mode<synchronous>, transform_indices = @transform_3, window_bounds = array<i64: 1, 32>}, {transform_indices = @transform_4, window_bounds = array<i64: 16, 32>}]} {
    %c0 = arith.constant 0 : index
    %c0_0 = arith.constant 0 : index
    %0 = vector.load %arg1[%c0, %c0_0] : memref<16x128xbf16, #tpu.memory_space<vmem>>, vector<16x128xbf16>
    %c0_1 = arith.constant 0 : index
    %c0_2 = arith.constant 0 : index
    %1 = vector.load %arg2[%c0_1, %c0_2] : memref<128x32xbf16, #tpu.memory_space<vmem>>, vector<128x32xbf16>
    %cst = arith.constant dense<0.000000e+00> : vector<16x32xf32>
    %2 = tpu.matmul %0, %1, %cst {dimension_numbers = #tpu.dot_dimension_numbers<[1], [0], [0], [1], [0, 0, 1, 1], [], []>} : vector<16x128xbf16>, vector<128x32xbf16>, vector<16x32xf32> -> vector<16x32xf32>
    %c0_3 = arith.constant 0 : index
    %c0_4 = arith.constant 0 : index
    %3 = vector.load %arg3[%c0_3, %c0_4] : memref<1x32xf32, #tpu.memory_space<vmem>>, vector<1x32xf32>
    %4 = vector.broadcast %3 : vector<1x32xf32> to vector<16x32xf32>
    %5 = arith.addf %2, %4 : vector<16x32xf32>
    %cst_5 = arith.constant 0.000000e+00 : f32
    %6 = vector.broadcast %cst_5 : f32 to vector<16x32xf32>
    %7 = arith.cmpf oge, %5, %6 : vector<16x32xf32>
    %c0_6 = arith.constant 0 : index
    %c0_7 = arith.constant 0 : index
    %8 = vector.load %arg4[%c0_6, %c0_7] : memref<1x32xf32, #tpu.memory_space<vmem>>, vector<1x32xf32>
    %9 = vector.broadcast %8 : vector<1x32xf32> to vector<16x32xf32>
    %10 = arith.mulf %5, %9 : vector<16x32xf32>
    %11 = arith.select %7, %5, %10 : vector<16x32xi1>, vector<16x32xf32>
    %12 = arith.truncf %11 : vector<16x32xf32> to vector<16x32xbf16>
    %c0_8 = arith.constant 0 : index
    %c0_9 = arith.constant 0 : index
    %13 = vector.load %arg5[%c0_8, %c0_9] : memref<16x32xbf16, #tpu.memory_space<vmem>>, vector<16x32xbf16>
    tpu.vector_store %arg5[%c0_8, %c0_9], %12 {strides = array<i32>} : memref<16x32xbf16, #tpu.memory_space<vmem>>, vector<16x32xbf16>,
    return
  }
  func.func @transform_0(%arg0: i32) -> (i32, i32) {
    %c0_i32 = arith.constant 0 : i32
    %c0_i32_0 = arith.constant 0 : i32
    return %arg0, %c0_i32 : i32, i32
  }
  func.func @transform_1(%arg0: i32) -> (i32, i32) {
    %c0_i32 = arith.constant 0 : i32
    %c0_i32_0 = arith.constant 0 : i32
    %c0_i32_1 = arith.constant 0 : i32
    return %c0_i32, %c0_i32_0 : i32, i32
  }
  func.func @transform_2(%arg0: i32) -> (i32, i32) {
    %c0_i32 = arith.constant 0 : i32
    %c0_i32_0 = arith.constant 0 : i32
    %c0_i32_1 = arith.constant 0 : i32
    return %c0_i32, %c0_i32_0 : i32, i32
  }
  func.func @transform_3(%arg0: i32) -> (i32, i32) {
    %c0_i32 = arith.constant 0 : i32
    %c0_i32_0 = arith.constant 0 : i32
    %c0_i32_1 = arith.constant 0 : i32
    return %c0_i32, %c0_i32_0 : i32, i32
  }
  func.func @transform_4(%arg0: i32) -> (i32, i32) {
    %c0_i32 = arith.constant 0 : i32
    %c0_i32_0 = arith.constant 0 : i32
    return %arg0, %c0_i32 : i32, i32
  }
}

module attributes {stable_mosaic.version = 11 : i64} {
  func.func @_mid_expand_fused_kernel(%arg0: i32, %arg1: memref<16x288xbf16, #tpu.memory_space<vmem>>, %arg2: memref<288x32xbf16, #tpu.memory_space<vmem>>, %arg3: memref<1x32xf32, #tpu.memory_space<vmem>>, %arg4: memref<1x32xf32, #tpu.memory_space<vmem>>, %arg5: memref<32x128xbf16, #tpu.memory_space<vmem>>, %arg6: memref<1x128xf32, #tpu.memory_space<vmem>>, %arg7: memref<1x128xf32, #tpu.memory_space<vmem>>, %arg8: memref<16x128xbf16, #tpu.memory_space<vmem>>, %arg9: memref<1x128xf32, #tpu.memory_space<vmem>>, %arg10: memref<16x128xbf16, #tpu.memory_space<vmem>>) attributes {dimension_semantics = [#tpu.dimension_semantics<parallel>], iteration_bounds = array<i64: 2>, scalar_prefetch = 0 : i64, scratch_operands = 0 : i64, tpu.core_type = #tpu.core_type<tc>, window_params = [{transform_indices = @transform_0, window_bounds = array<i64: 16, 288>}, {pipeline_mode = #tpu.pipeline_mode<synchronous>, transform_indices = @transform_1, window_bounds = array<i64: 288, 32>}, {pipeline_mode = #tpu.pipeline_mode<synchronous>, transform_indices = @transform_2, window_bounds = array<i64: 1, 32>}, {pipeline_mode = #tpu.pipeline_mode<synchronous>, transform_indices = @transform_3, window_bounds = array<i64: 1, 32>}, {pipeline_mode = #tpu.pipeline_mode<synchronous>, transform_indices = @transform_4, window_bounds = array<i64: 32, 128>}, {pipeline_mode = #tpu.pipeline_mode<synchronous>, transform_indices = @transform_5, window_bounds = array<i64: 1, 128>}, {pipeline_mode = #tpu.pipeline_mode<synchronous>, transform_indices = @transform_6, window_bounds = array<i64: 1, 128>}, {transform_indices = @transform_7, window_bounds = array<i64: 16, 128>}, {pipeline_mode = #tpu.pipeline_mode<synchronous>, transform_indices = @transform_8, window_bounds = array<i64: 1, 128>}, {transform_indices = @transform_9, window_bounds = array<i64: 16, 128>}]} {
    %c0 = arith.constant 0 : index
    %c0_0 = arith.constant 0 : index
    %0 = vector.load %arg1[%c0, %c0_0] : memref<16x288xbf16, #tpu.memory_space<vmem>>, vector<16x288xbf16>
    %c0_1 = arith.constant 0 : index
    %c0_2 = arith.constant 0 : index
    %1 = vector.load %arg2[%c0_1, %c0_2] : memref<288x32xbf16, #tpu.memory_space<vmem>>, vector<288x32xbf16>
    %cst = arith.constant dense<0.000000e+00> : vector<16x32xf32>
    %2 = tpu.matmul %0, %1, %cst {dimension_numbers = #tpu.dot_dimension_numbers<[1], [0], [0], [1], [0, 0, 1, 1], [], []>} : vector<16x288xbf16>, vector<288x32xbf16>, vector<16x32xf32> -> vector<16x32xf32>
    %c0_3 = arith.constant 0 : index
    %c0_4 = arith.constant 0 : index
    %3 = vector.load %arg3[%c0_3, %c0_4] : memref<1x32xf32, #tpu.memory_space<vmem>>, vector<1x32xf32>
    %4 = vector.broadcast %3 : vector<1x32xf32> to vector<16x32xf32>
    %5 = arith.addf %2, %4 : vector<16x32xf32>
    %cst_5 = arith.constant 0.000000e+00 : f32
    %6 = vector.broadcast %cst_5 : f32 to vector<16x32xf32>
    %7 = arith.cmpf oge, %5, %6 : vector<16x32xf32>
    %c0_6 = arith.constant 0 : index
    %c0_7 = arith.constant 0 : index
    %8 = vector.load %arg4[%c0_6, %c0_7] : memref<1x32xf32, #tpu.memory_space<vmem>>, vector<1x32xf32>
    %9 = vector.broadcast %8 : vector<1x32xf32> to vector<16x32xf32>
    %10 = arith.mulf %5, %9 : vector<16x32xf32>
    %11 = arith.select %7, %5, %10 : vector<16x32xi1>, vector<16x32xf32>
    %12 = arith.truncf %11 : vector<16x32xf32> to vector<16x32xbf16>
    %c0_8 = arith.constant 0 : index
    %c0_9 = arith.constant 0 : index
    %13 = vector.load %arg5[%c0_8, %c0_9] : memref<32x128xbf16, #tpu.memory_space<vmem>>, vector<32x128xbf16>
    %cst_10 = arith.constant dense<0.000000e+00> : vector<16x128xf32>
    %14 = tpu.matmul %12, %13, %cst_10 {dimension_numbers = #tpu.dot_dimension_numbers<[1], [0], [0], [1], [0, 0, 1, 1], [], []>} : vector<16x32xbf16>, vector<32x128xbf16>, vector<16x128xf32> -> vector<16x128xf32>
    %c0_11 = arith.constant 0 : index
    %c0_12 = arith.constant 0 : index
    %15 = vector.load %arg6[%c0_11, %c0_12] : memref<1x128xf32, #tpu.memory_space<vmem>>, vector<1x128xf32>
    %16 = vector.broadcast %15 : vector<1x128xf32> to vector<16x128xf32>
    %17 = arith.addf %14, %16 : vector<16x128xf32>
    %cst_13 = arith.constant 0.000000e+00 : f32
    %18 = vector.broadcast %cst_13 : f32 to vector<16x128xf32>
    %19 = arith.cmpf oge, %17, %18 : vector<16x128xf32>
    %c0_14 = arith.constant 0 : index
    %c0_15 = arith.constant 0 : index
    %20 = vector.load %arg7[%c0_14, %c0_15] : memref<1x128xf32, #tpu.memory_space<vmem>>, vector<1x128xf32>
    %21 = vector.broadcast %20 : vector<1x128xf32> to vector<16x128xf32>
    %22 = arith.mulf %17, %21 : vector<16x128xf32>
    %23 = arith.select %19, %17, %22 : vector<16x128xi1>, vector<16x128xf32>
    %c0_16 = arith.constant 0 : index
    %c0_17 = arith.constant 0 : index
    %24 = vector.load %arg8[%c0_16, %c0_17] : memref<16x128xbf16, #tpu.memory_space<vmem>>, vector<16x128xbf16>
    %25 = arith.extf %24 : vector<16x128xbf16> to vector<16x128xf32>
    %26 = arith.addf %23, %25 : vector<16x128xf32>
    %cst_18 = arith.constant 0.000000e+00 : f32
    %27 = vector.broadcast %cst_18 : f32 to vector<16x128xf32>
    %28 = arith.cmpf oge, %26, %27 : vector<16x128xf32>
    %c0_19 = arith.constant 0 : index
    %c0_20 = arith.constant 0 : index
    %29 = vector.load %arg9[%c0_19, %c0_20] : memref<1x128xf32, #tpu.memory_space<vmem>>, vector<1x128xf32>
    %30 = vector.broadcast %29 : vector<1x128xf32> to vector<16x128xf32>
    %31 = arith.mulf %26, %30 : vector<16x128xf32>
    %32 = arith.select %28, %26, %31 : vector<16x128xi1>, vector<16x128xf32>
    %33 = arith.truncf %32 : vector<16x128xf32> to vector<16x128xbf16>
    %c0_21 = arith.constant 0 : index
    %c0_22 = arith.constant 0 : index
    %34 = vector.load %arg10[%c0_21, %c0_22] : memref<16x128xbf16, #tpu.memory_space<vmem>>, vector<16x128xbf16>
    tpu.vector_store %arg10[%c0_21, %c0_22], %33 {strides = array<i32>} : memref<16x128xbf16, #tpu.memory_space<vmem>>, vector<16x128xbf16>,
    return
  }
  func.func @transform_0(%arg0: i32) -> (i32, i32) {
    %c0_i32 = arith.constant 0 : i32
    %c0_i32_0 = arith.constant 0 : i32
    return %arg0, %c0_i32 : i32, i32
  }
  func.func @transform_1(%arg0: i32) -> (i32, i32) {
    %c0_i32 = arith.constant 0 : i32
    %c0_i32_0 = arith.constant 0 : i32
    %c0_i32_1 = arith.constant 0 : i32
    return %c0_i32, %c0_i32_0 : i32, i32
  }
  func.func @transform_2(%arg0: i32) -> (i32, i32) {
    %c0_i32 = arith.constant 0 : i32
    %c0_i32_0 = arith.constant 0 : i32
    %c0_i32_1 = arith.constant 0 : i32
    return %c0_i32, %c0_i32_0 : i32, i32
  }
  func.func @transform_3(%arg0: i32) -> (i32, i32) {
    %c0_i32 = arith.constant 0 : i32
    %c0_i32_0 = arith.constant 0 : i32
    %c0_i32_1 = arith.constant 0 : i32
    return %c0_i32, %c0_i32_0 : i32, i32
  }
  func.func @transform_4(%arg0: i32) -> (i32, i32) {
    %c0_i32 = arith.constant 0 : i32
    %c0_i32_0 = arith.constant 0 : i32
    %c0_i32_1 = arith.constant 0 : i32
    return %c0_i32, %c0_i32_0 : i32, i32
  }
  func.func @transform_5(%arg0: i32) -> (i32, i32) {
    %c0_i32 = arith.constant 0 : i32
    %c0_i32_0 = arith.constant 0 : i32
    %c0_i32_1 = arith.constant 0 : i32
    return %c0_i32, %c0_i32_0 : i32, i32
  }
  func.func @transform_6(%arg0: i32) -> (i32, i32) {
    %c0_i32 = arith.constant 0 : i32
    %c0_i32_0 = arith.constant 0 : i32
    %c0_i32_1 = arith.constant 0 : i32
    return %c0_i32, %c0_i32_0 : i32, i32
  }
  func.func @transform_7(%arg0: i32) -> (i32, i32) {
    %c0_i32 = arith.constant 0 : i32
    %c0_i32_0 = arith.constant 0 : i32
    return %arg0, %c0_i32 : i32, i32
  }
  func.func @transform_8(%arg0: i32) -> (i32, i32) {
    %c0_i32 = arith.constant 0 : i32
    %c0_i32_0 = arith.constant 0 : i32
    %c0_i32_1 = arith.constant 0 : i32
    return %c0_i32, %c0_i32_0 : i32, i32
  }
  func.func @transform_9(%arg0: i32) -> (i32, i32) {
    %c0_i32 = arith.constant 0 : i32
    %c0_i32_0 = arith.constant 0 : i32
    return %arg0, %c0_i32 : i32, i32
  }
}

module attributes {stable_mosaic.version = 11 : i64} {
  func.func @_mm_bn_act_kernel(%arg0: i32, %arg1: memref<16x160xbf16, #tpu.memory_space<vmem>>, %arg2: memref<160x32xbf16, #tpu.memory_space<vmem>>, %arg3: memref<1x32xf32, #tpu.memory_space<vmem>>, %arg4: memref<1x32xf32, #tpu.memory_space<vmem>>, %arg5: memref<16x32xbf16, #tpu.memory_space<vmem>>) attributes {dimension_semantics = [#tpu.dimension_semantics<parallel>], iteration_bounds = array<i64: 2>, scalar_prefetch = 0 : i64, scratch_operands = 0 : i64, tpu.core_type = #tpu.core_type<tc>, window_params = [{transform_indices = @transform_0, window_bounds = array<i64: 16, 160>}, {pipeline_mode = #tpu.pipeline_mode<synchronous>, transform_indices = @transform_1, window_bounds = array<i64: 160, 32>}, {pipeline_mode = #tpu.pipeline_mode<synchronous>, transform_indices = @transform_2, window_bounds = array<i64: 1, 32>}, {pipeline_mode = #tpu.pipeline_mode<synchronous>, transform_indices = @transform_3, window_bounds = array<i64: 1, 32>}, {transform_indices = @transform_4, window_bounds = array<i64: 16, 32>}]} {
    %c0 = arith.constant 0 : index
    %c0_0 = arith.constant 0 : index
    %0 = vector.load %arg1[%c0, %c0_0] : memref<16x160xbf16, #tpu.memory_space<vmem>>, vector<16x160xbf16>
    %c0_1 = arith.constant 0 : index
    %c0_2 = arith.constant 0 : index
    %1 = vector.load %arg2[%c0_1, %c0_2] : memref<160x32xbf16, #tpu.memory_space<vmem>>, vector<160x32xbf16>
    %cst = arith.constant dense<0.000000e+00> : vector<16x32xf32>
    %2 = tpu.matmul %0, %1, %cst {dimension_numbers = #tpu.dot_dimension_numbers<[1], [0], [0], [1], [0, 0, 1, 1], [], []>} : vector<16x160xbf16>, vector<160x32xbf16>, vector<16x32xf32> -> vector<16x32xf32>
    %c0_3 = arith.constant 0 : index
    %c0_4 = arith.constant 0 : index
    %3 = vector.load %arg3[%c0_3, %c0_4] : memref<1x32xf32, #tpu.memory_space<vmem>>, vector<1x32xf32>
    %4 = vector.broadcast %3 : vector<1x32xf32> to vector<16x32xf32>
    %5 = arith.addf %2, %4 : vector<16x32xf32>
    %cst_5 = arith.constant 0.000000e+00 : f32
    %6 = vector.broadcast %cst_5 : f32 to vector<16x32xf32>
    %7 = arith.cmpf oge, %5, %6 : vector<16x32xf32>
    %c0_6 = arith.constant 0 : index
    %c0_7 = arith.constant 0 : index
    %8 = vector.load %arg4[%c0_6, %c0_7] : memref<1x32xf32, #tpu.memory_space<vmem>>, vector<1x32xf32>
    %9 = vector.broadcast %8 : vector<1x32xf32> to vector<16x32xf32>
    %10 = arith.mulf %5, %9 : vector<16x32xf32>
    %11 = arith.select %7, %5, %10 : vector<16x32xi1>, vector<16x32xf32>
    %12 = arith.truncf %11 : vector<16x32xf32> to vector<16x32xbf16>
    %c0_8 = arith.constant 0 : index
    %c0_9 = arith.constant 0 : index
    %13 = vector.load %arg5[%c0_8, %c0_9] : memref<16x32xbf16, #tpu.memory_space<vmem>>, vector<16x32xbf16>
    tpu.vector_store %arg5[%c0_8, %c0_9], %12 {strides = array<i32>} : memref<16x32xbf16, #tpu.memory_space<vmem>>, vector<16x32xbf16>,
    return
  }
  func.func @transform_0(%arg0: i32) -> (i32, i32) {
    %c0_i32 = arith.constant 0 : i32
    %c0_i32_0 = arith.constant 0 : i32
    return %arg0, %c0_i32 : i32, i32
  }
  func.func @transform_1(%arg0: i32) -> (i32, i32) {
    %c0_i32 = arith.constant 0 : i32
    %c0_i32_0 = arith.constant 0 : i32
    %c0_i32_1 = arith.constant 0 : i32
    return %c0_i32, %c0_i32_0 : i32, i32
  }
  func.func @transform_2(%arg0: i32) -> (i32, i32) {
    %c0_i32 = arith.constant 0 : i32
    %c0_i32_0 = arith.constant 0 : i32
    %c0_i32_1 = arith.constant 0 : i32
    return %c0_i32, %c0_i32_0 : i32, i32
  }
  func.func @transform_3(%arg0: i32) -> (i32, i32) {
    %c0_i32 = arith.constant 0 : i32
    %c0_i32_0 = arith.constant 0 : i32
    %c0_i32_1 = arith.constant 0 : i32
    return %c0_i32, %c0_i32_0 : i32, i32
  }
  func.func @transform_4(%arg0: i32) -> (i32, i32) {
    %c0_i32 = arith.constant 0 : i32
    %c0_i32_0 = arith.constant 0 : i32
    return %arg0, %c0_i32 : i32, i32
  }
}

module attributes {stable_mosaic.version = 11 : i64} {
  func.func @_mid_expand_fused_kernel(%arg0: i32, %arg1: memref<16x160xbf16, #tpu.memory_space<vmem>>, %arg2: memref<160x32xbf16, #tpu.memory_space<vmem>>, %arg3: memref<1x32xf32, #tpu.memory_space<vmem>>, %arg4: memref<1x32xf32, #tpu.memory_space<vmem>>, %arg5: memref<32x128xbf16, #tpu.memory_space<vmem>>, %arg6: memref<1x128xf32, #tpu.memory_space<vmem>>, %arg7: memref<1x128xf32, #tpu.memory_space<vmem>>, %arg8: memref<16x128xbf16, #tpu.memory_space<vmem>>, %arg9: memref<1x128xf32, #tpu.memory_space<vmem>>, %arg10: memref<16x128xbf16, #tpu.memory_space<vmem>>) attributes {dimension_semantics = [#tpu.dimension_semantics<parallel>], iteration_bounds = array<i64: 2>, scalar_prefetch = 0 : i64, scratch_operands = 0 : i64, tpu.core_type = #tpu.core_type<tc>, window_params = [{transform_indices = @transform_0, window_bounds = array<i64: 16, 160>}, {pipeline_mode = #tpu.pipeline_mode<synchronous>, transform_indices = @transform_1, window_bounds = array<i64: 160, 32>}, {pipeline_mode = #tpu.pipeline_mode<synchronous>, transform_indices = @transform_2, window_bounds = array<i64: 1, 32>}, {pipeline_mode = #tpu.pipeline_mode<synchronous>, transform_indices = @transform_3, window_bounds = array<i64: 1, 32>}, {pipeline_mode = #tpu.pipeline_mode<synchronous>, transform_indices = @transform_4, window_bounds = array<i64: 32, 128>}, {pipeline_mode = #tpu.pipeline_mode<synchronous>, transform_indices = @transform_5, window_bounds = array<i64: 1, 128>}, {pipeline_mode = #tpu.pipeline_mode<synchronous>, transform_indices = @transform_6, window_bounds = array<i64: 1, 128>}, {transform_indices = @transform_7, window_bounds = array<i64: 16, 128>}, {pipeline_mode = #tpu.pipeline_mode<synchronous>, transform_indices = @transform_8, window_bounds = array<i64: 1, 128>}, {transform_indices = @transform_9, window_bounds = array<i64: 16, 128>}]} {
    %c0 = arith.constant 0 : index
    %c0_0 = arith.constant 0 : index
    %0 = vector.load %arg1[%c0, %c0_0] : memref<16x160xbf16, #tpu.memory_space<vmem>>, vector<16x160xbf16>
    %c0_1 = arith.constant 0 : index
    %c0_2 = arith.constant 0 : index
    %1 = vector.load %arg2[%c0_1, %c0_2] : memref<160x32xbf16, #tpu.memory_space<vmem>>, vector<160x32xbf16>
    %cst = arith.constant dense<0.000000e+00> : vector<16x32xf32>
    %2 = tpu.matmul %0, %1, %cst {dimension_numbers = #tpu.dot_dimension_numbers<[1], [0], [0], [1], [0, 0, 1, 1], [], []>} : vector<16x160xbf16>, vector<160x32xbf16>, vector<16x32xf32> -> vector<16x32xf32>
    %c0_3 = arith.constant 0 : index
    %c0_4 = arith.constant 0 : index
    %3 = vector.load %arg3[%c0_3, %c0_4] : memref<1x32xf32, #tpu.memory_space<vmem>>, vector<1x32xf32>
    %4 = vector.broadcast %3 : vector<1x32xf32> to vector<16x32xf32>
    %5 = arith.addf %2, %4 : vector<16x32xf32>
    %cst_5 = arith.constant 0.000000e+00 : f32
    %6 = vector.broadcast %cst_5 : f32 to vector<16x32xf32>
    %7 = arith.cmpf oge, %5, %6 : vector<16x32xf32>
    %c0_6 = arith.constant 0 : index
    %c0_7 = arith.constant 0 : index
    %8 = vector.load %arg4[%c0_6, %c0_7] : memref<1x32xf32, #tpu.memory_space<vmem>>, vector<1x32xf32>
    %9 = vector.broadcast %8 : vector<1x32xf32> to vector<16x32xf32>
    %10 = arith.mulf %5, %9 : vector<16x32xf32>
    %11 = arith.select %7, %5, %10 : vector<16x32xi1>, vector<16x32xf32>
    %12 = arith.truncf %11 : vector<16x32xf32> to vector<16x32xbf16>
    %c0_8 = arith.constant 0 : index
    %c0_9 = arith.constant 0 : index
    %13 = vector.load %arg5[%c0_8, %c0_9] : memref<32x128xbf16, #tpu.memory_space<vmem>>, vector<32x128xbf16>
    %cst_10 = arith.constant dense<0.000000e+00> : vector<16x128xf32>
    %14 = tpu.matmul %12, %13, %cst_10 {dimension_numbers = #tpu.dot_dimension_numbers<[1], [0], [0], [1], [0, 0, 1, 1], [], []>} : vector<16x32xbf16>, vector<32x128xbf16>, vector<16x128xf32> -> vector<16x128xf32>
    %c0_11 = arith.constant 0 : index
    %c0_12 = arith.constant 0 : index
    %15 = vector.load %arg6[%c0_11, %c0_12] : memref<1x128xf32, #tpu.memory_space<vmem>>, vector<1x128xf32>
    %16 = vector.broadcast %15 : vector<1x128xf32> to vector<16x128xf32>
    %17 = arith.addf %14, %16 : vector<16x128xf32>
    %cst_13 = arith.constant 0.000000e+00 : f32
    %18 = vector.broadcast %cst_13 : f32 to vector<16x128xf32>
    %19 = arith.cmpf oge, %17, %18 : vector<16x128xf32>
    %c0_14 = arith.constant 0 : index
    %c0_15 = arith.constant 0 : index
    %20 = vector.load %arg7[%c0_14, %c0_15] : memref<1x128xf32, #tpu.memory_space<vmem>>, vector<1x128xf32>
    %21 = vector.broadcast %20 : vector<1x128xf32> to vector<16x128xf32>
    %22 = arith.mulf %17, %21 : vector<16x128xf32>
    %23 = arith.select %19, %17, %22 : vector<16x128xi1>, vector<16x128xf32>
    %c0_16 = arith.constant 0 : index
    %c0_17 = arith.constant 0 : index
    %24 = vector.load %arg8[%c0_16, %c0_17] : memref<16x128xbf16, #tpu.memory_space<vmem>>, vector<16x128xbf16>
    %25 = arith.extf %24 : vector<16x128xbf16> to vector<16x128xf32>
    %26 = arith.addf %23, %25 : vector<16x128xf32>
    %cst_18 = arith.constant 0.000000e+00 : f32
    %27 = vector.broadcast %cst_18 : f32 to vector<16x128xf32>
    %28 = arith.cmpf oge, %26, %27 : vector<16x128xf32>
    %c0_19 = arith.constant 0 : index
    %c0_20 = arith.constant 0 : index
    %29 = vector.load %arg9[%c0_19, %c0_20] : memref<1x128xf32, #tpu.memory_space<vmem>>, vector<1x128xf32>
    %30 = vector.broadcast %29 : vector<1x128xf32> to vector<16x128xf32>
    %31 = arith.mulf %26, %30 : vector<16x128xf32>
    %32 = arith.select %28, %26, %31 : vector<16x128xi1>, vector<16x128xf32>
    %33 = arith.truncf %32 : vector<16x128xf32> to vector<16x128xbf16>
    %c0_21 = arith.constant 0 : index
    %c0_22 = arith.constant 0 : index
    %34 = vector.load %arg10[%c0_21, %c0_22] : memref<16x128xbf16, #tpu.memory_space<vmem>>, vector<16x128xbf16>
    tpu.vector_store %arg10[%c0_21, %c0_22], %33 {strides = array<i32>} : memref<16x128xbf16, #tpu.memory_space<vmem>>, vector<16x128xbf16>,
    return
  }
  func.func @transform_0(%arg0: i32) -> (i32, i32) {
    %c0_i32 = arith.constant 0 : i32
    %c0_i32_0 = arith.constant 0 : i32
    return %arg0, %c0_i32 : i32, i32
  }
  func.func @transform_1(%arg0: i32) -> (i32, i32) {
    %c0_i32 = arith.constant 0 : i32
    %c0_i32_0 = arith.constant 0 : i32
    %c0_i32_1 = arith.constant 0 : i32
    return %c0_i32, %c0_i32_0 : i32, i32
  }
  func.func @transform_2(%arg0: i32) -> (i32, i32) {
    %c0_i32 = arith.constant 0 : i32
    %c0_i32_0 = arith.constant 0 : i32
    %c0_i32_1 = arith.constant 0 : i32
    return %c0_i32, %c0_i32_0 : i32, i32
  }
  func.func @transform_3(%arg0: i32) -> (i32, i32) {
    %c0_i32 = arith.constant 0 : i32
    %c0_i32_0 = arith.constant 0 : i32
    %c0_i32_1 = arith.constant 0 : i32
    return %c0_i32, %c0_i32_0 : i32, i32
  }
  func.func @transform_4(%arg0: i32) -> (i32, i32) {
    %c0_i32 = arith.constant 0 : i32
    %c0_i32_0 = arith.constant 0 : i32
    %c0_i32_1 = arith.constant 0 : i32
    return %c0_i32, %c0_i32_0 : i32, i32
  }
  func.func @transform_5(%arg0: i32) -> (i32, i32) {
    %c0_i32 = arith.constant 0 : i32
    %c0_i32_0 = arith.constant 0 : i32
    %c0_i32_1 = arith.constant 0 : i32
    return %c0_i32, %c0_i32_0 : i32, i32
  }
  func.func @transform_6(%arg0: i32) -> (i32, i32) {
    %c0_i32 = arith.constant 0 : i32
    %c0_i32_0 = arith.constant 0 : i32
    %c0_i32_1 = arith.constant 0 : i32
    return %c0_i32, %c0_i32_0 : i32, i32
  }
  func.func @transform_7(%arg0: i32) -> (i32, i32) {
    %c0_i32 = arith.constant 0 : i32
    %c0_i32_0 = arith.constant 0 : i32
    return %arg0, %c0_i32 : i32, i32
  }
  func.func @transform_8(%arg0: i32) -> (i32, i32) {
    %c0_i32 = arith.constant 0 : i32
    %c0_i32_0 = arith.constant 0 : i32
    %c0_i32_1 = arith.constant 0 : i32
    return %c0_i32, %c0_i32_0 : i32, i32
  }
  func.func @transform_9(%arg0: i32) -> (i32, i32) {
    %c0_i32 = arith.constant 0 : i32
    %c0_i32_0 = arith.constant 0 : i32
    return %arg0, %c0_i32 : i32, i32
  }
}

</mosaic_0001>

<bundles_post_ra>
// kernel: _lambda_.52
= control target key start
LH: loop header
LB: loop body
LE: loop exit
PB: predicated region body
PF: predicated region fallthrough
CT: control target
= control target key end

     0   :  { %s519_s15 = smov 0   ;;  %s579_s0 = inlined_call_operand.vmem [shape: bf16[128,64], index: 0, kind: input, shape index: {}]   ;;  %s580_s1 = inlined_call_operand.vmem [shape: bf16[64,16], index: 1, kind: input, shape index: {}]   ;;  %s581_s2 = inlined_call_operand.vmem [shape: f32[1,16], index: 2, kind: input, shape index: {}]   ;;  %s582_s3 = inlined_call_operand.vmem [shape: f32[1,16], index: 3, kind: input, shape index: {}]   ;;  %s583_s4 = inlined_call_operand.vmem [shape: bf16[128,16], index: 4, kind: output, shape index: {}]  }
   0x1 LB: > { %s409_s16 = sadd.s32 4294967295, %s492_s15   ;;  %p413_p0 = scmp.ge.s32.totalorder %s492_s15, 1  ;;  %s492_s15 = sphi %s519_s15, %s14_s15  }
   0x2   : > { %p163_p1 = scmp.lt.s32.totalorder %s492_s15, 3 }
   0x4   : > { %p164_p2 = pnand %p413_p0, %p163_p1 }
   0x5   : > { %s414_s19 = sshll.u32 (!%p164_p2), %s409_s16, 3 }
   0x6   : > { %167 = sbr.rel (%p164_p2) target bundleno = 177 (0xb1), region = 36  ;;  %p190_p3 = scmp.lt.s32.totalorder (!%p164_p2), %s414_s19, 15 }
   0xb   : > { %v463_v0 = vld [vmem:[%s580_s1 + $0x18] sm:$0xff]  ;;  %v462_v1 = vld [vmem:[%s580_s1 + $0x10] sm:$0xff]  ;;  %s585_s19 = smov (!%p190_p3, %s414_s19), 15  ;;  %v461_v2 = vld [vmem:[%s580_s1 + $0x8] sm:$0xff]  ;;  %vm266_vm0 = vcmask 523264   ;;  %vm344_vm3 = vcmask 125952  }
   0xc   : > { %283 = vmatpush.bf16.msra.mxu0 %v463_v0  ;;  %464 = vmatpush.bf16.msra.mxu1 %v463_v0  ;;  %s415_s24 = sshll.u32 %s585_s19, 2  ;;  %v460_v3 = vld [vmem:[%s580_s1] sm:$0xff] }
   0xd   : > { %465 = vmatpush.bf16.msra.mxu2 %v463_v0  ;;  %466 = vmatpush.bf16.msra.mxu3 %v463_v0  ;;  %s193_s29 = scalar_lea.vmem %s579_s0, %s415_s24  ;;  %v484_v8 = vld [vmem:[%s581_s2] ss:$0 sm:$0xff]  ;;  %s558_s10 = scalar_lea.vmem %s583_s4, %s415_s24 }
   0xe   : > { %v456_v4 = vld [vmem:[%s193_s29] sm:$0xff]  ;;  %v457_v5 = vld [vmem:[%s193_s29 + $0x8] sm:$0xff]  ;;  %v458_v6 = vld [vmem:[%s193_s29 + $0x10] sm:$0xff] }
   0xf   : > { %v459_v7 = vld [vmem:[%s193_s29 + $0x18] sm:$0xff]  ;;  %v485_v9 = vld [vmem:[%s582_s3] ss:$0 sm:$0xff] }
  0x10   : > { %284 = vmatpush.bf16.msra.mxu0 %v462_v1  ;;  %467 = vmatpush.bf16.msra.mxu1 %v462_v1 }
  0x11   : > { %468 = vmatpush.bf16.msra.mxu2 %v462_v1  ;;  %469 = vmatpush.bf16.msra.mxu3 %v462_v1 }
  0x14   : > { %285 = vmatpush.bf16.msra.mxu0 %v461_v2  ;;  %470 = vmatpush.bf16.msra.mxu1 %v461_v2 }
  0x15   : > { %471 = vmatpush.bf16.msra.mxu2 %v461_v2  ;;  %472 = vmatpush.bf16.msra.mxu3 %v461_v2 }
  0x18   : > { %286 = vmatpush.bf16.msra.mxu0 %v460_v3  ;;  %473 = vmatpush.bf16.msra.mxu1 %v460_v3 }
  0x19   : > { %474 = vmatpush.bf16.msra.mxu2 %v460_v3  ;;  %475 = vmatpush.bf16.msra.mxu3 %v460_v3 }
  0x1b   : > { %450 = vmatmul.msk.bf16.vlgmr.msra.gmra.mxu0 %vm266_vm0, %v456_v4  ;;  %451 = vmatmul.msk.bf16.vlgmr.msra.gmra.mxu1 %vm266_vm0, %v457_v5 }
  0x1c   : > { %452 = vmatmul.msk.bf16.vlgmr.msra.gmra.mxu2 %vm266_vm0, %v458_v6  ;;  %453 = vmatmul.msk.bf16.vlgmr.msra.gmra.mxu3 %vm266_vm0, %v459_v7 }
  0x98   : > { %v288_v10 = vpop.f32.mrf.mxu0  ;;  %v293_v11 = vpop.f32.mrf.mxu1 }
  0x99   : > { %v289_v12 = vadd.f32 %v484_v8, %v288_v10  ;;  %v294_v13 = vadd.f32 %v484_v8, %v293_v11 }
  0x9b   : > { %vm308_vm1 = vcmp.ge.f32.partialorder %v289_v12, 0.0  ;;  %v320_v14 = vmul.f32 %v485_v9, %v289_v12  ;;  %vm310_vm2 = vcmp.ge.f32.partialorder %v294_v13, 0.0  ;;  %v322_v15 = vmul.f32 %v485_v9, %v294_v13 }
  0x9d   : > { %v328_v16 = vsel %vm308_vm1, %v289_v12, %v320_v14  ;;  %v330_v17 = vsel %vm310_vm2, %v294_v13, %v322_v15 }
  0x9e   : > { %v336_v18 = vpack.c.bf16 %v328_v16, %v328_v16  ;;  %v338_v19 = vpack.c.bf16 %v330_v17, %v330_v17 }
  0x9f   : > { %v298_v20 = vpop.f32.mrf.mxu2  ;;  %v303_v21 = vpop.f32.mrf.mxu3 }
  0xa0   : > { %345 = vst.msk [vmem:[%s558_s10] sm:$0xf] %vm344_vm3, %v336_v18  ;;  %v299_v22 = vadd.f32 %v484_v8, %v298_v20  ;;  %v304_v23 = vadd.f32 %v484_v8, %v303_v21  ;;  %v290_v24 = vpop.f32.mrf.mxu0  ;;  %v295_v25 = vpop.f32.mrf.mxu1 }
  0xa1   : > { %347 = vst.msk [vmem:[%s558_s10 + $0x8] sm:$0xf] %vm344_vm3, %v338_v19  ;;  %v291_v26 = vadd.f32 %v484_v8, %v290_v24  ;;  %v296_v27 = vadd.f32 %v484_v8, %v295_v25 }
  0xa2   : > { %vm312_vm4 = vcmp.ge.f32.partialorder %v299_v22, 0.0  ;;  %v324_v28 = vmul.f32 %v485_v9, %v299_v22  ;;  %vm314_vm5 = vcmp.ge.f32.partialorder %v304_v23, 0.0  ;;  %v326_v29 = vmul.f32 %v485_v9, %v304_v23 }
  0xa3   : > { %vm309_vm6 = vcmp.ge.f32.partialorder %v291_v26, 0.0  ;;  %v321_v30 = vmul.f32 %v485_v9, %v291_v26  ;;  %vm311_vm7 = vcmp.ge.f32.partialorder %v296_v27, 0.0  ;;  %v323_v31 = vmul.f32 %v485_v9, %v296_v27 }
  0xa4   : > { %v332_v32 = vsel %vm312_vm4, %v299_v22, %v324_v28  ;;  %v334_v33 = vsel %vm314_vm5, %v304_v23, %v326_v29 }
  0xa5   : > { %v340_v34 = vpack.c.bf16 %v332_v32, %v332_v32  ;;  %v342_v35 = vpack.c.bf16 %v334_v33, %v334_v33  ;;  %v329_v36 = vsel %vm309_vm6, %v291_v26, %v321_v30  ;;  %v331_v37 = vsel %vm311_vm7, %v296_v27, %v323_v31 }
  0xa6   : > { %v337_v38 = vpack.c.bf16 %v329_v36, %v329_v36  ;;  %v339_v39 = vpack.c.bf16 %v331_v37, %v331_v37 }
  0xa7   : > { %349 = vst.msk [vmem:[%s558_s10 + $0x10] sm:$0xf] %vm344_vm3, %v340_v34  ;;  %v300_v40 = vpop.f32.mrf.mxu2  ;;  %v305_v41 = vpop.f32.mrf.mxu3 }
  0xa8   : > { %351 = vst.msk [vmem:[%s558_s10 + $0x18] sm:$0xf] %vm344_vm3, %v342_v35  ;;  %v301_v42 = vadd.f32 %v484_v8, %v300_v40  ;;  %v306_v43 = vadd.f32 %v484_v8, %v305_v41 }
  0xa9   : > { %346 = vst.msk [vmem:[%s558_s10 + $0x4] sm:$0xf] %vm344_vm3, %v337_v38 }
  0xaa   : > { %348 = vst.msk [vmem:[%s558_s10 + $0xc] sm:$0xf] %vm344_vm3, %v339_v39  ;;  %vm313_vm8 = vcmp.ge.f32.partialorder %v301_v42, 0.0  ;;  %v325_v44 = vmul.f32 %v485_v9, %v301_v42  ;;  %vm315_vm9 = vcmp.ge.f32.partialorder %v306_v43, 0.0  ;;  %v327_v45 = vmul.f32 %v485_v9, %v306_v43 }
  0xac   : > { %v333_v46 = vsel %vm313_vm8, %v301_v42, %v325_v44  ;;  %v335_v47 = vsel %vm315_vm9, %v306_v43, %v327_v45 }
  0xad   : > { %v341_v48 = vpack.c.bf16 %v333_v46, %v333_v46  ;;  %v343_v49 = vpack.c.bf16 %v335_v47, %v335_v47 }
  0xaf   : > { %350 = vst.msk [vmem:[%s558_s10 + $0x14] sm:$0xf] %vm344_vm3, %v341_v48 }
  0xb0   : > { %352 = vst.msk [vmem:[%s558_s10 + $0x1c] sm:$0xf] %vm344_vm3, %v343_v49 }
  0xb1 PF: > { %s14_s15 = sadd.s32 1, %s492_s15  }
  0xb2   : > { %p11_p4 = scmp.ge.s32.totalorder %s14_s15, 4  }
  0xb4   :  { %13 = sbr.rel (!%p11_p4) target bundleno = 1 (0x1), region = 66 }

// kernel: _lambda_.51
= control target key start
LH: loop header
LB: loop body
LE: loop exit
PB: predicated region body
PF: predicated region fallthrough
CT: control target
= control target key end

     0   :  { %s1945_s18 = smov 0   ;;  %s2527_s0 = inlined_call_operand.vmem [shape: bf16[512,27], index: 0, kind: input, shape index: {}]   ;;  %s2528_s1 = inlined_call_operand.vmem [shape: bf16[27,16], index: 1, kind: input, shape index: {}]   ;;  %s2529_s2 = inlined_call_operand.vmem [shape: f32[3,16], index: 2, kind: input, shape index: {}]   ;;  %s2530_s3 = inlined_call_operand.vmem [shape: f32[1,16], index: 3, kind: input, shape index: {}]   ;;  %s2531_s4 = inlined_call_operand.vmem [shape: f32[1,16], index: 4, kind: input, shape index: {}]   ;;  %s2532_s5 = inlined_call_operand.vmem [shape: bf16[512,16], index: 5, kind: output, shape index: {}]  }
   0x1 LB: > { %s1501_s19 = sadd.s32 4294967295, %s1909_s18   ;;  %p1505_p0 = scmp.ge.s32.totalorder %s1909_s18, 1  ;;  %s1909_s18 = sphi %s1945_s18, %s15_s18  }
   0x2   : > { %p188_p1 = scmp.lt.s32.totalorder %s1909_s18, 3 }
   0x4   : > { %p189_p2 = pnand %p1505_p0, %p188_p1 }
   0x5   : > { %s1506_s20 = sshll.u32 (!%p189_p2), %s1501_s19, 5  ;;  %s1911_s25 = smov (!%p189_p2), 125  }
   0x6   : > { %192 = sbr.rel (%p189_p2) target bundleno = 797 (0x31d), region = 40  ;;  %p217_p3 = scmp.lt.s32.totalorder (!%p189_p2), %s1506_s20, 63 }
   0x7   : > { %s1912_s26 = smov (!%p189_p2), 119   ;;  %s1913_s27 = smov (!%p189_p2), 116  }
   0xb   : > { %s2534_s20 = smov (!%p217_p3, %s1506_s20), 63  ;;  %vm1148_vm0 = vcmask 1044480   ;;  %vm1149_vm1 = vcmask 1045504   ;;  %vm1099_vm2 = vcmask 220160   ;;  %vm891_vm3 = vcmask 1042432  }
   0xc   : > { %s1507_s21 = sshll.u32 %s2534_s20, 2  ;;  %vm826_vm4 = vcmask 23552   ;;  %vm1412_vm6 = vcmask 125952  }
   0xd   : > { %s1961_s24 = scalar_lea.vmem %s2527_s0, %s1507_s21  ;;  %s2355_s17 = scalar_lea.vmem %s2532_s5, %s1507_s21 }
   0xe   : > { %v231_v0 = vld [vmem:[%s1961_s24 + $0x8] sm:$0xff]   ;;  %v229_v1 = vld [vmem:[%s1961_s24] sm:$0xff]   ;;  %v233_v6 = vld [vmem:[%s1961_s24 + $0x10] sm:$0xff]  }
   0xf   : > { %v267_v2 = vunpack.c.l.bf16 %v231_v0  ;;  %v268_v3 = vunpack.c.h.bf16 %v231_v0  ;;  %v265_v4 = vunpack.c.l.bf16 %v229_v1  ;;  %v266_v5 = vunpack.c.h.bf16 %v229_v1  ;;  %v247_v7 = vld [vmem:[%s1961_s24 + $0x48] sm:$0xff]   ;;  %v245_v8 = vld [vmem:[%s1961_s24 + $0x40] sm:$0xff]   ;;  %v1971_v17 = vld [vmem:[%s1961_s24 + $0x50] sm:$0xff]  }
  0x10   : > { %v269_v11 = vunpack.c.l.bf16 %v233_v6  ;;  %v270_v12 = vunpack.c.h.bf16 %v233_v6  ;;  %v283_v13 = vunpack.c.l.bf16 %v247_v7  ;;  %v284_v14 = vunpack.c.h.bf16 %v247_v7  ;;  %v1977_v23 = vld [vmem:[%s1961_s24 + $0x18] sm:$0xff]   ;;  %v2010_v51 = vld [vmem:[%s1961_s24 + $0x60] sm:$0xff]   ;;  %v2033_v0 = vld [vmem:[%s1961_s24 + $0x28] sm:$0xff]  }
  0x11   : > { %v1676_v9 = vpack.i.bf16 %v268_v3, %v267_v2  ;;  %v1666_v10 = vpack.i.bf16 %v266_v5, %v265_v4  ;;  %v281_v15 = vunpack.c.l.bf16 %v245_v8  ;;  %v282_v16 = vunpack.c.h.bf16 %v245_v8  ;;  %v1988_v27 = vld [vmem:[%s1961_s24 + $0x58] sm:$0xff]  }
  0x12   : > { %v1686_v18 = vpack.i.bf16 %v270_v12, %v269_v11  ;;  %v285_v19 = vunpack.c.l.bf16 %v1971_v17  ;;  %v286_v20 = vunpack.c.h.bf16 %v1971_v17  ;;  %v1681_v21 = vpack.i.bf16 %v284_v14, %v283_v13 }
  0x13   : > { %1677 = vrot.lane.b32.xlu1 %v1676_v9, %s1911_s25  ;;  %1667 = vrot.lane.b32.xlu0 %v1666_v10, %s1911_s25  ;;  %v1671_v22 = vpack.i.bf16 %v282_v16, %v281_v15  ;;  %v271_v25 = vunpack.c.l.bf16 %v1977_v23  ;;  %v272_v26 = vunpack.c.h.bf16 %v1977_v23  ;;  %v287_v28 = vunpack.c.l.bf16 %v1988_v27  ;;  %v2078_v23 = vld [vmem:[%s1961_s24 + $0x68] sm:$0xff]  }
  0x14   : > { %1687 = vrot.lane.b32.xlu2 %v1686_v18, %s1911_s25  ;;  %v1691_v24 = vpack.i.bf16 %v286_v20, %v285_v19  ;;  %v288_v29 = vunpack.c.h.bf16 %v1988_v27  ;;  %v289_v61 = vunpack.c.l.bf16 %v2010_v51  ;;  %v290_v62 = vunpack.c.h.bf16 %v2010_v51 }
  0x15   : > { %v1701_v30 = vpack.i.bf16 %v272_v26, %v271_v25  ;;  %v275_v9 = vunpack.c.l.bf16 %v2033_v0 }
  0x16   : > { %v1706_v31 = vpack.i.bf16 %v288_v29, %v287_v28  ;;  %v1731_v1 = vpack.i.bf16 %v290_v62, %v289_v61 }
  0x1b   : > { %1682 = vrot.lane.b32.xlu1 %v1681_v21, %s1911_s25  ;;  %1672 = vrot.lane.b32.xlu0 %v1671_v22, %s1911_s25 }
  0x1c   : > { %1692 = vrot.lane.b32.xlu2 %v1691_v24, %s1911_s25 }
  0x23   : > { %1702 = vrot.lane.b32.xlu1 %v1701_v30, %s1911_s25  ;;  %v292_v30 = vunpack.c.h.bf16 %v2078_v23 }
  0x24   : > { %1707 = vrot.lane.b32.xlu2 %v1706_v31, %s1911_s25 }
  0x6e   : > { %v1688_v38 = vpop.permute.xlu2 %1687 }
  0x6f   : > { %v1690_v43 = vunpack.i.h.bf16 %v1688_v38  ;;  %v1689_v44 = vunpack.i.l.bf16 %v1688_v38 }
  0x71   : > { %v2016_v54 = vmax.f32 %v270_v12, %v1690_v43  ;;  %v2018_v55 = vmax.f32 %v269_v11, %v1689_v44  ;;  %v276_v11 = vunpack.c.h.bf16 %v2033_v0  ;;  %v1613_v0 = vld [vmem:[%s2528_s1 + $0x8] sm:$0xf] }
  0x73   : > { %v1746_v21 = vpack.i.bf16 %v276_v11, %v275_v9 }
  0x76   : > { %v1693_v60 = vpop.permute.xlu2 %1692 }
  0x77   : > { %v1695_v63 = vunpack.i.h.bf16 %v1693_v60 }
  0x79   : > { %v2050_v10 = vmax.f32 %v286_v20, %v1695_v63  ;;  %v1736_v20 = vpack.i.bf16 %v2016_v54, %v2018_v55 }
  0x7e   : > { %v1708_v18 = vpop.permute.xlu2 %1707 }
  0x7f   : > { %v1709_v22 = vunpack.i.l.bf16 %v1708_v18 }
  0x85   : > { %v1678_v32 = vpop.permute.xlu1 %1677  ;;  %v1668_v33 = vpop.permute.xlu0 %1667 }
  0x86   : > { %v1680_v34 = vunpack.i.h.bf16 %v1678_v32  ;;  %v1679_v35 = vunpack.i.l.bf16 %v1678_v32  ;;  %v1670_v36 = vunpack.i.h.bf16 %v1668_v33  ;;  %v1669_v37 = vunpack.i.l.bf16 %v1668_v33 }
  0x88   : > { %v2001_v39 = vmax.f32 %v268_v3, %v1680_v34  ;;  %v2003_v40 = vmax.f32 %v267_v2, %v1679_v35  ;;  %v2005_v41 = vmax.f32 %v266_v5, %v1670_v36  ;;  %v2007_v42 = vmax.f32 %v265_v4, %v1669_v37  ;;  %v2040_v4 = vld [vmem:[%s1961_s24 + $0x20] sm:$0xff]  }
  0x89   : > { %v1694_v2 = vunpack.i.l.bf16 %v1693_v60  ;;  %v273_v12 = vunpack.c.l.bf16 %v2040_v4  ;;  %v2122_v60 = vld [vmem:[%s1961_s24 + $0x30] sm:$0xff]  }
  0x8a   : > { %v1716_v52 = vpack.i.bf16 %v2001_v39, %v2003_v40  ;;  %v1696_v53 = vpack.i.bf16 %v2005_v41, %v2007_v42 }
  0x8c   : > { %1717 = vrot.lane.b32.xlu1 %v1716_v52, %s1912_s26  ;;  %1697 = vrot.lane.b32.xlu0 %v1696_v53, %s1912_s26 }
  0x8d   : > { %v1683_v45 = vpop.permute.xlu1 %1682  ;;  %v1673_v46 = vpop.permute.xlu0 %1672 }
  0x8e   : > { %v1685_v47 = vunpack.i.h.bf16 %v1683_v45  ;;  %v1684_v48 = vunpack.i.l.bf16 %v1683_v45  ;;  %v1675_v49 = vunpack.i.h.bf16 %v1673_v46  ;;  %v1674_v50 = vunpack.i.l.bf16 %v1673_v46 }
  0x90   : > { %v2020_v56 = vmax.f32 %v284_v14, %v1685_v47  ;;  %v2022_v57 = vmax.f32 %v283_v13, %v1684_v48  ;;  %v2024_v58 = vmax.f32 %v282_v16, %v1675_v49  ;;  %v2026_v59 = vmax.f32 %v281_v15, %v1674_v50 }
  0x91   : > { %v274_v13 = vunpack.c.h.bf16 %v2040_v4  ;;  %v2059_v14 = vmax.f32 %v285_v19, %v1694_v2  ;;  %v1710_v19 = vunpack.i.h.bf16 %v1708_v18 }
  0x92   : > { %v1721_v5 = vpack.i.bf16 %v2020_v56, %v2022_v57  ;;  %v1711_v6 = vpack.i.bf16 %v2024_v58, %v2026_v59 }
  0x93   : > { %v1726_v17 = vpack.i.bf16 %v274_v13, %v273_v12  ;;  %v2083_v24 = vmax.f32 %v288_v29, %v1710_v19  ;;  %v1741_v27 = vpack.i.bf16 %v2050_v10, %v2059_v14 }
  0x94   : > { %1722 = vrot.lane.b32.xlu2 %v1721_v5, %s1912_s26  ;;  %1732 = vrot.lane.b32.xlu1 %v1731_v1, %s1911_s25 }
  0x95   : > { %v1703_v3 = vpop.permute.xlu1 %1702  ;;  %1712 = vrot.lane.b32.xlu0 %v1711_v6, %s1912_s26 }
  0x96   : > { %v1705_v7 = vunpack.i.h.bf16 %v1703_v3  ;;  %v1704_v8 = vunpack.i.l.bf16 %v1703_v3 }
  0x98   : > { %v2061_v15 = vmax.f32 %v272_v26, %v1705_v7  ;;  %v2065_v16 = vmax.f32 %v271_v25, %v1704_v8  ;;  %v2087_v25 = vmax.f32 %v287_v28, %v1709_v22  ;;  %v291_v26 = vunpack.c.l.bf16 %v2078_v23  ;;  %v2102_v28 = vld [vmem:[%s1961_s24 + $0x70] sm:$0xff]  }
  0x99   : > { %v293_v32 = vunpack.c.l.bf16 %v2102_v28  ;;  %v294_v33 = vunpack.c.h.bf16 %v2102_v28  ;;  %v278_v7 = vunpack.c.h.bf16 %v2122_v60  ;;  %v729_v28 = vld [vmem:[%s2529_s2] sm:$0x7] }
  0x9a   : > { %v1751_v31 = vpack.i.bf16 %v292_v30, %v291_v26  ;;  %v1756_v29 = vpack.i.bf16 %v2061_v15, %v2065_v16  ;;  %v1761_v34 = vpack.i.bf16 %v2083_v24, %v2087_v25  ;;  %1651 = vmatpush.msk.msra.mxu3 %vm891_vm3, %v729_v28  ;;  %1510 = vmatpush.msk.msra.mxu0 %vm891_vm3, %v729_v28 }
  0x9b   : > { %v1776_v35 = vpack.i.bf16 %v294_v33, %v293_v32 }
  0x9c   : > { %1737 = vrot.lane.b32.xlu2 %v1736_v20, %s1912_s26  ;;  %1747 = vrot.lane.b32.xlu1 %v1746_v21, %s1911_s25 }
  0x9d   : > { %1727 = vrot.lane.b32.xlu0 %v1726_v17, %s1911_s25 }
  0xa4   : > { %1752 = vrot.lane.b32.xlu2 %v1751_v31, %s1911_s25  ;;  %1757 = vrot.lane.b32.xlu1 %v1756_v29, %s1912_s26 }
  0xa5   : > { %1742 = vrot.lane.b32.xlu0 %v1741_v27, %s1912_s26 }
  0xac   : > { %1762 = vrot.lane.b32.xlu2 %v1761_v34, %s1912_s26  ;;  %1777 = vrot.lane.b32.xlu1 %v1776_v35, %s1911_s25 }
  0xee   : > { %v1723_v44 = vpop.permute.xlu2 %1722 }
  0xef   : > { %v1724_v8 = vunpack.i.l.bf16 %v1723_v44 }
  0xf6   : > { %v1738_v18 = vpop.permute.xlu2 %1737 }
  0xf7   : > { %v1740_v19 = vunpack.i.h.bf16 %v1738_v18  ;;  %v1739_v22 = vunpack.i.l.bf16 %v1738_v18 }
  0xf9   : > { %v653_v35 = vmax.f32 %v2018_v55, %v1739_v22 }
  0xfe   : > { %v1718_v36 = vpop.permute.xlu1 %1717  ;;  %v1698_v37 = vpop.permute.xlu0 %1697 }
  0xff   : > { %v1700_v38 = vunpack.i.h.bf16 %v1698_v37  ;;  %v1699_v43 = vunpack.i.l.bf16 %v1698_v37  ;;  %v1720_v47 = vunpack.i.h.bf16 %v1718_v36  ;;  %v1719_v48 = vunpack.i.l.bf16 %v1718_v36 }
 0x101   : > { %v650_v45 = vmax.f32 %v2005_v41, %v1700_v38  ;;  %v649_v46 = vmax.f32 %v2007_v42, %v1699_v43  ;;  %v652_v49 = vmax.f32 %v2001_v39, %v1720_v47  ;;  %v651_v50 = vmax.f32 %v2003_v40, %v1719_v48 }
 0x102   : > { %v277_v42 = vunpack.c.l.bf16 %v2122_v60 }
 0x103   : > { %v1766_v5 = vpack.i.bf16 %v650_v45, %v649_v46  ;;  %v2180_v45 = vld [vmem:[%s1961_s24 + $0x38] sm:$0xff]  }
 0x105   : > { %1767 = vrot.lane.b32.xlu0 %v1766_v5, %s1913_s27 }
 0x106   : > { %v1733_v52 = vpop.permute.xlu1 %1732 }
 0x107   : > { %v1713_v53 = vpop.permute.xlu0 %1712  ;;  %v1735_v63 = vunpack.i.h.bf16 %v1733_v52  ;;  %v1734_v1 = vunpack.i.l.bf16 %v1733_v52  ;;  %v280_v52 = vunpack.c.h.bf16 %v2180_v45 }
 0x108   : > { %v1715_v2 = vunpack.i.h.bf16 %v1713_v53  ;;  %v1714_v3 = vunpack.i.l.bf16 %v1713_v53 }
 0x109   : > { %v2133_v39 = vmax.f32 %v290_v62, %v1735_v63  ;;  %v2137_v40 = vmax.f32 %v289_v61, %v1734_v1  ;;  %v1771_v62 = vpack.i.bf16 %v278_v7, %v277_v42  ;;  %v667_v61 = vmax.f32 %v2022_v57, %v1724_v8 }
 0x10a   : > { %v2125_v6 = vmax.f32 %v2024_v58, %v1715_v2  ;;  %v2128_v41 = vmax.f32 %v2026_v59, %v1714_v3  ;;  %v1725_v58 = vunpack.i.h.bf16 %v1723_v44  ;;  %v2161_v57 = vmax.f32 %v2016_v54, %v1740_v19 }
 0x10b   : > { %v1791_v4 = vpack.i.bf16 %v2133_v39, %v2137_v40  ;;  %v1796_v48 = vpack.i.bf16 %v652_v49, %v667_v61  ;;  %v279_v49 = vunpack.c.l.bf16 %v2180_v45  ;;  %v1914_v3 = vmov 65535  }
 0x10c   : > { %v689_v59 = vpack.c.bf16 %v2125_v6, %v2128_v41  ;;  %v668_v51 = vmax.f32 %v2020_v56, %v1725_v58  ;;  %v1786_v31 = vpack.i.bf16 %v651_v50, %v2125_v6  ;;  %v1753_v56 = vpop.permute.xlu2 %1752  ;;  %v1150_v5 = vsel %vm1148_vm0, 4294967295, %v1914_v3  ;;  %v1646_v41 = vld [vmem:[%s1961_s24 + $0x68] sm:$0xff] }
 0x10d   : > { %1772 = vrot.lane.b32.xlu0 %v1771_v62, %s1911_s25  ;;  %v1755_v36 = vunpack.i.h.bf16 %v1753_v56  ;;  %v1754_v37 = vunpack.i.l.bf16 %v1753_v56  ;;  %v1801_v8 = vpack.i.bf16 %v280_v52, %v279_v49  ;;  %v1151_v62 = vsel %vm1149_vm1, %v1150_v5, 0 }
 0x10e   : > { %v1748_v34 = vpop.permute.xlu1 %1747  ;;  %1787 = vrot.lane.b32.xlu2 %v1786_v31, %s1913_s27 }
 0x10f   : > { %v1728_v20 = vpop.permute.xlu0 %1727  ;;  %v1749_v38 = vunpack.i.l.bf16 %v1748_v34  ;;  %v2171_v44 = vmax.f32 %v292_v30, %v1755_v36  ;;  %v2175_v54 = vmax.f32 %v291_v26, %v1754_v37 }
 0x110   : > { %v1730_v21 = vunpack.i.h.bf16 %v1728_v20  ;;  %v1729_v17 = vunpack.i.l.bf16 %v1728_v20 }
 0x111   : > { %v2188_v30 = vmax.f32 %v275_v9, %v1749_v38  ;;  %v1650_v9 = vld [vmem:[%s2528_s1 + $0x8] sm:$0x30] }
 0x112   : > { %v2152_v29 = vmax.f32 %v274_v13, %v1730_v21  ;;  %v2156_v27 = vmax.f32 %v273_v12, %v1729_v17  ;;  %v1750_v13 = vunpack.i.h.bf16 %v1748_v34  ;;  %v2167_v12 = vld [vmem:[%s1961_s24 + $0x78] sm:$0xff]   ;;  %v1614_v1 = vor.u32 %v1650_v9, %v1613_v0  ;;  %v1649_v17 = vld [vmem:[%s2528_s1] sm:$0xff]  ;;  %v1643_v0 = vld [vmem:[%s1961_s24 + $0x50] sm:$0xff] }
 0x113   : > { %v295_v23 = vunpack.c.l.bf16 %v2167_v12  ;;  %v296_v26 = vunpack.c.h.bf16 %v2167_v12 }
 0x114   : > { %v1781_v55 = vpack.i.bf16 %v2152_v29, %v2156_v27  ;;  %v2184_v50 = vmax.f32 %v276_v11, %v1750_v13  ;;  %v1763_v58 = vpop.permute.xlu2 %1762  ;;  %v1641_v13 = vld [vmem:[%s1961_s24 + $0x40] sm:$0xff] }
 0x115   : > { %1797 = vrot.lane.b32.xlu0 %v1796_v48, %s1913_s27  ;;  %v1806_v2 = vpack.i.bf16 %v296_v26, %v295_v23  ;;  %v1765_v61 = vunpack.i.h.bf16 %v1763_v58  ;;  %v1764_v21 = vunpack.i.l.bf16 %v1763_v58  ;;  %v1635_v48 = vld [vmem:[%s1961_s24 + $0x10] sm:$0xff] }
 0x116   : > { %1782 = vrot.lane.b32.xlu1 %v1781_v55, %s1912_s26  ;;  %1792 = vrot.lane.b32.xlu2 %v1791_v4, %s1912_s26  ;;  %v1758_v11 = vpop.permute.xlu1 %1757  ;;  %v1816_v56 = vpack.i.bf16 %v2184_v50, %v2188_v30  ;;  %v1634_v4 = vld [vmem:[%s1961_s24 + $0x8] sm:$0xff] }
 0x117   : > { %v1743_v43 = vpop.permute.xlu0 %1742  ;;  %v1760_v18 = vunpack.i.h.bf16 %v1758_v11  ;;  %v1759_v20 = vunpack.i.l.bf16 %v1758_v11  ;;  %v2222_v31 = vmax.f32 %v2083_v24, %v1765_v61  ;;  %v671_v34 = vmax.f32 %v2087_v25, %v1764_v21  ;;  %v1642_v55 = vld [vmem:[%s1961_s24 + $0x48] sm:$0xff] }
 0x118   : > { %v1745_v46 = vunpack.i.h.bf16 %v1743_v43  ;;  %v1744_v47 = vunpack.i.l.bf16 %v1743_v43 }
 0x119   : > { %v656_v19 = vmax.f32 %v2061_v15, %v1760_v18 }
 0x11a   : > { %v670_v53 = vmax.f32 %v2050_v10, %v1745_v46  ;;  %v669_v63 = vmax.f32 %v2059_v14, %v1744_v47  ;;  %v1811_v10 = vpack.i.bf16 %v653_v35, %v668_v51  ;;  %v1153_v14 = vand.u32 %v1614_v1, %v1151_v62 }
 0x11b   : > { %v655_v51 = vmax.f32 %v2065_v16, %v1759_v20  ;;  %v1821_v35 = vpack.i.bf16 %v2171_v44, %v2175_v54  ;;  %v1846_v25 = vpack.i.bf16 %v656_v19, %v671_v34  ;;  %v1636_v19 = vld [vmem:[%s1961_s24 + $0x18] sm:$0xff] }
 0x11c   : > { %1652 = vmatpush.bf16.msra.mxu2 %v1153_v14  ;;  %1161 = vmatpush.bf16.msra.mxu1 %v1153_v14  ;;  %v1826_v15 = vpack.i.bf16 %v2161_v57, %v669_v63 }
 0x11d   : > { %1802 = vrot.lane.b32.xlu0 %v1801_v8, %s1911_s25  ;;  %v1831_v57 = vpack.i.bf16 %v655_v51, %v670_v53 }
 0x11e   : > { %1807 = vrot.lane.b32.xlu1 %v1806_v2, %s1911_s25  ;;  %1812 = vrot.lane.b32.xlu2 %v1811_v10, %s1913_s27  ;;  %v1778_v22 = vpop.permute.xlu1 %1777 }
 0x11f   : > { %v1780_v36 = vunpack.i.h.bf16 %v1778_v22  ;;  %v1779_v37 = vunpack.i.l.bf16 %v1778_v22 }
 0x120   : > { %1653 = vmatpush.bf16.msra.mxu2 %v1649_v17  ;;  %1162 = vmatpush.bf16.msra.mxu1 %v1649_v17 }
 0x121   : > { %v2236_v16 = vmax.f32 %v294_v33, %v1780_v36  ;;  %v2240_v24 = vmax.f32 %v293_v32, %v1779_v37  ;;  %v1633_v32 = vld [vmem:[%s1961_s24] sm:$0xff] }
 0x123   : > { %1623 = vmatmul.msk.bf16.vlgmr.msra.gmra.mxu2 %vm1099_vm2, %v1641_v13  ;;  %v1841_v38 = vpack.i.bf16 %v2236_v16, %v2240_v24  ;;  %1615 = vmatmul.msk.bf16.vlgmr.msra.gmra.mxu1 %vm1099_vm2, %v1633_v32 }
 0x125   : > { %1827 = vrot.lane.b32.xlu0 %v1826_v15, %s1913_s27 }
 0x126   : > { %1817 = vrot.lane.b32.xlu1 %v1816_v56, %s1912_s26  ;;  %1822 = vrot.lane.b32.xlu2 %v1821_v35, %s1912_s26 }
 0x12d   : > { %1832 = vrot.lane.b32.xlu0 %v1831_v57, %s1913_s27 }
 0x12e   : > { %1847 = vrot.lane.b32.xlu1 %v1846_v25, %s1913_s27 }
 0x133   : > { %1616 = vmatmul.msk.bf16.gmra.mxu1 %vm1099_vm2, %v1634_v4  ;;  %1624 = vmatmul.msk.bf16.gmra.mxu2 %vm1099_vm2, %v1642_v55 }
 0x135   : > { %1842 = vrot.lane.b32.xlu0 %v1841_v38, %s1912_s26 }
 0x143   : > { %1617 = vmatmul.msk.bf16.gmra.mxu1 %vm1099_vm2, %v1635_v48  ;;  %1625 = vmatmul.msk.bf16.gmra.mxu2 %vm1099_vm2, %v1643_v0 }
 0x153   : > { %1618 = vmatmul.msk.bf16.gmra.mxu1 %vm1099_vm2, %v1636_v19 }
 0x168   : > { %v1788_v33 = vpop.permute.xlu2 %1787 }
 0x169   : > { %v1789_v43 = vunpack.i.l.bf16 %v1788_v33  ;;  %v1790_v18 = vunpack.i.h.bf16 %v1788_v33 }
 0x16b   : > { %1528 = vmatmul.msk.f32.vlgmr.msra.gmra.mxu3 %vm826_vm4, %v1789_v43 }
 0x170   : > { %v1793_v9 = vpop.permute.xlu2 %1792 }
 0x171   : > { %v1795_v5 = vunpack.i.h.bf16 %v1793_v9  ;;  %v1794_v58 = vunpack.i.l.bf16 %v1793_v9 }
 0x173   : > { %v674_v20 = vmax.f32 %v2133_v39, %v1795_v5  ;;  %v673_v62 = vmax.f32 %v2137_v40, %v1794_v58  ;;  %v1644_v39 = vld [vmem:[%s1961_s24 + $0x58] sm:$0xff] }
 0x174   : > { %1626 = vmatmul.msk.bf16.gmra.mxu2 %vm1099_vm2, %v1644_v39 }
 0x175   : > { %v693_v40 = vpack.c.bf16 %v674_v20, %v673_v62 }
 0x177   : > { %v1768_v46 = vpop.permute.xlu0 %1767  ;;  %v721_v35 = vunpack.c.l.bf16 %v693_v40 }
 0x178   : > { %v1769_v47 = vunpack.i.l.bf16 %v1768_v46  ;;  %v1770_v53 = vunpack.i.h.bf16 %v1768_v46  ;;  %v1813_v8 = vpop.permute.xlu2 %1812 }
 0x179   : > { %v1814_v36 = vunpack.i.l.bf16 %v1813_v8 }
 0x17a   : > { %1511 = vmatmul.msk.f32.vlgmr.msra.gmra.mxu0 %vm826_vm4, %v1769_v47 }
 0x17f   : > { %v1773_v11 = vpop.permute.xlu0 %1772 }
 0x180   : > { %v1775_v63 = vunpack.i.h.bf16 %v1773_v11  ;;  %v1774_v1 = vunpack.i.l.bf16 %v1773_v11  ;;  %v1823_v51 = vpop.permute.xlu2 %1822 }
 0x181   : > { %v1825_v25 = vunpack.i.h.bf16 %v1823_v51  ;;  %v1824_v57 = vunpack.i.l.bf16 %v1823_v51 }
 0x182   : > { %v2265_v2 = vmax.f32 %v278_v7, %v1775_v63  ;;  %v2269_v3 = vmax.f32 %v277_v42, %v1774_v1  ;;  %1512 = vmatmul.msk.f32.gmra.mxu0 %vm826_vm4, %v1770_v53 }
 0x183   : > { %v676_v12 = vmax.f32 %v2171_v44, %v1825_v25 }
 0x184   : > { %v1836_v60 = vpack.i.bf16 %v2265_v2, %v2269_v3 }
 0x186   : > { %1837 = vrot.lane.b32.xlu2 %v1836_v60, %s1912_s26  ;;  %v1637_v60 = vld [vmem:[%s1961_s24 + $0x20] sm:$0xff] }
 0x187   : > { %v1798_v61 = vpop.permute.xlu0 %1797  ;;  %1619 = vmatmul.msk.bf16.gmra.mxu1 %vm1099_vm2, %v1637_v60 }
 0x188   : > { %v1783_v10 = vpop.permute.xlu1 %1782  ;;  %v1799_v42 = vunpack.i.l.bf16 %v1798_v61  ;;  %v1800_v37 = vunpack.i.h.bf16 %v1798_v61 }
 0x189   : > { %v1785_v14 = vunpack.i.h.bf16 %v1783_v10  ;;  %v1784_v7 = vunpack.i.l.bf16 %v1783_v10 }
 0x18a   : > { %1513 = vmatmul.msk.f32.gmra.mxu0 %vm826_vm4, %v1790_v18  ;;  %1529 = vmatmul.msk.f32.gmra.mxu3 %vm826_vm4, %v1799_v42 }
 0x18b   : > { %v658_v21 = vmax.f32 %v2152_v29, %v1785_v14  ;;  %v657_v17 = vmax.f32 %v2156_v27, %v1784_v7 }
 0x18d   : > { %v1851_v27 = vpack.i.bf16 %v657_v17, %v2222_v31  ;;  %v1866_v55 = vpack.i.bf16 %v674_v20, %v658_v21 }
 0x18e   : > { %810 = vrot.lane.b32.xlu2 %v721_v35, %s1913_s27  ;;  %v1638_v35 = vld [vmem:[%s1961_s24 + $0x28] sm:$0xff] }
 0x18f   : > { %v1803_v29 = vpop.permute.xlu0 %1802  ;;  %1852 = vrot.lane.b32.xlu1 %v1851_v27, %s1913_s27 }
 0x190   : > { %v1808_v22 = vpop.permute.xlu1 %1807  ;;  %v1805_v13 = vunpack.i.h.bf16 %v1803_v29  ;;  %v1804_v15 = vunpack.i.l.bf16 %v1803_v29  ;;  %v713_v29 = vunpack.c.l.bf16 %v689_v59 }
 0x191   : > { %v1810_v34 = vunpack.i.h.bf16 %v1808_v22  ;;  %v1809_v56 = vunpack.i.l.bf16 %v1808_v22 }
 0x192   : > { %v2298_v31 = vmax.f32 %v280_v52, %v1805_v13  ;;  %v2302_v32 = vmax.f32 %v279_v49, %v1804_v15  ;;  %1530 = vmatmul.msk.f32.gmra.mxu3 %vm826_vm4, %v1814_v36  ;;  %1514 = vmatmul.msk.f32.gmra.mxu0 %vm826_vm4, %v1800_v37  ;;  %v1815_v49 = vunpack.i.h.bf16 %v1813_v8 }
 0x193   : > { %v2288_v38 = vmax.f32 %v296_v26, %v1810_v34  ;;  %v2292_v28 = vmax.f32 %v295_v23, %v1809_v56  ;;  %v675_v23 = vmax.f32 %v2175_v54, %v1824_v57 }
 0x194   : > { %v1856_v45 = vpack.i.bf16 %v2298_v31, %v2302_v32 }
 0x195   : > { %v1861_v52 = vpack.i.bf16 %v2288_v38, %v2292_v28 }
 0x196   : > { %1867 = vrot.lane.b32.xlu2 %v1866_v55, %s1913_s27  ;;  %1857 = vrot.lane.b32.xlu0 %v1856_v45, %s1912_s26 }
 0x197   : > { %v1828_v4 = vpop.permute.xlu0 %1827  ;;  %1862 = vrot.lane.b32.xlu1 %v1861_v52, %s1912_s26  ;;  %1620 = vmatmul.msk.bf16.gmra.mxu1 %vm1099_vm2, %v1638_v35 }
 0x198   : > { %v1818_v26 = vpop.permute.xlu1 %1817  ;;  %v1829_v46 = vunpack.i.l.bf16 %v1828_v4  ;;  %v1830_v11 = vunpack.i.h.bf16 %v1828_v4 }
 0x199   : > { %v1820_v33 = vunpack.i.h.bf16 %v1818_v26  ;;  %v1819_v43 = vunpack.i.l.bf16 %v1818_v26 }
 0x19a   : > { %1531 = vmatmul.msk.f32.gmra.mxu3 %vm826_vm4, %v1829_v46  ;;  %1515 = vmatmul.msk.f32.gmra.mxu0 %vm826_vm4, %v1815_v49 }
 0x19b   : > { %v660_v47 = vmax.f32 %v2184_v50, %v1820_v33  ;;  %v659_v48 = vmax.f32 %v2188_v30, %v1819_v43 }
 0x19d   : > { %v1876_v54 = vpack.i.bf16 %v676_v12, %v660_v47  ;;  %v1871_v0 = vpack.i.bf16 %v675_v23, %v659_v48 }
 0x19f   : > { %v1833_v44 = vpop.permute.xlu0 %1832  ;;  %1877 = vrot.lane.b32.xlu1 %v1876_v54, %s1913_s27  ;;  %1872 = vrot.lane.b32.xlu0 %v1871_v0, %s1913_s27 }
 0x1a0   : > { %v1834_v9 = vunpack.i.l.bf16 %v1833_v44  ;;  %v1848_v50 = vpop.permute.xlu1 %1847  ;;  %v1835_v53 = vunpack.i.h.bf16 %v1833_v44  ;;  %v1164_v42 = vpop.f32.mrf.mxu1 }
 0x1a1   : > { %v1849_v30 = vunpack.i.l.bf16 %v1848_v50  ;;  %v1850_v63 = vunpack.i.h.bf16 %v1848_v50 }
 0x1a2   : > { %1532 = vmatmul.msk.f32.gmra.mxu3 %vm826_vm4, %v1834_v9  ;;  %1516 = vmatmul.msk.f32.gmra.mxu0 %vm826_vm4, %v1830_v11 }
 0x1a6   : > { %v2326_v8 = vpop.f32.mrf.mxu2 }
 0x1a7   : > { %v1843_v1 = vpop.permute.xlu0 %1842 }
 0x1a8   : > { %v1845_v5 = vunpack.i.h.bf16 %v1843_v1  ;;  %v1844_v58 = vunpack.i.l.bf16 %v1843_v1  ;;  %v1166_v22 = vpop.f32.mrf.mxu1 }
 0x1aa   : > { %1533 = vmatmul.msk.f32.gmra.mxu3 %vm826_vm4, %v1849_v30  ;;  %1517 = vmatmul.msk.f32.gmra.mxu0 %vm826_vm4, %v1835_v53  ;;  %v678_v18 = vmax.f32 %v2236_v16, %v1845_v5  ;;  %v677_v20 = vmax.f32 %v2240_v24, %v1844_v58  ;;  %v2337_v16 = vld [vmem:[%s2530_s3] ss:$0 sm:$0xff] }
 0x1ae   : > { %v1206_v21 = vpop.f32.mrf.mxu2 }
 0x1b0   : > { %v1169_v15 = vpop.f32.mrf.mxu1 }
 0x1b2   : > { %1518 = vmatmul.msk.f32.gmra.mxu0 %vm826_vm4, %v1850_v63 }
 0x1b6   : > { %v1209_v43 = vpop.f32.mrf.mxu2 }
 0x1b8   : > { %v1171_v49 = vpop.f32.mrf.mxu1 }
 0x1be   : > { %v1211_v58 = vpop.f32.mrf.mxu2 }
 0x1e0   : > { %v1838_v10 = vpop.permute.xlu2 %1837 }
 0x1e1   : > { %v1840_v62 = vunpack.i.h.bf16 %v1838_v10  ;;  %v1839_v14 = vunpack.i.l.bf16 %v1838_v10 }
 0x1e3   : > { %v662_v7 = vmax.f32 %v2265_v2, %v1840_v62  ;;  %v661_v61 = vmax.f32 %v2269_v3, %v1839_v14  ;;  %v2342_v2 = vld [vmem:[%s2531_s4] ss:$0 sm:$0xff] }
 0x1e4   : > { %v1645_v3 = vld [vmem:[%s1961_s24 + $0x60] sm:$0xff] }
 0x1e5   : > { %v1886_v17 = vpack.i.bf16 %v678_v18, %v662_v7  ;;  %v1881_v19 = vpack.i.bf16 %v677_v20, %v661_v61  ;;  %1627 = vmatmul.msk.bf16.gmra.mxu2 %vm1099_vm2, %v1645_v3 }
 0x1e7   : > { %1887 = vrot.lane.b32.xlu0 %v1886_v17, %s1913_s27  ;;  %1882 = vrot.lane.b32.xlu2 %v1881_v19, %s1913_s27 }
 0x1e8   : > { %v811_v59 = vpop.permute.xlu2 %810 }
 0x1ee   : > { %v963_v24 = vpop.f32.mrf.mxu3 }
 0x1ef   : > { %v1207_v39 = vadd.f32 %v1206_v21, %v963_v24  ;;  %794 = vrot.lane.b32.xlu0 %v713_v29, %s1913_s27  ;;  %v1174_v21 = vpop.f32.mrf.mxu1  ;;  %v1214_v29 = vpop.f32.mrf.mxu2 }
 0x1f0   : > { %v1868_v48 = vpop.permute.xlu2 %1867 }
 0x1f1   : > { %v1265_v40 = vadd.f32 %v2337_v16, %v1207_v39  ;;  %v1869_v9 = vunpack.i.l.bf16 %v1868_v48  ;;  %v1870_v17 = vunpack.i.h.bf16 %v1868_v48 }
 0x1f3   : > { %vm1297_vm5 = vcmp.ge.f32.partialorder %v1265_v40, 0.0  ;;  %v1333_v51 = vmul.f32 %v2342_v2, %v1265_v40 }
 0x1f5   : > { %v1365_v34 = vsel %vm1297_vm5, %v1265_v40, %v1333_v51  ;;  %1628 = vmatmul.msk.bf16.gmra.mxu2 %vm1099_vm2, %v1646_v41 }
 0x1f6   : > { %v1397_v56 = vpack.c.bf16 %v1365_v34, %v1365_v34 }
 0x1f7   : > { %v912_v27 = vpop.f32.mrf.mxu0 }
 0x1f8   : > { %1430 = vst.msk [vmem:[%s2355_s17 + $0x44] sm:$0xf] %vm1412_vm6, %v1397_v56  ;;  %v1165_v36 = vadd.f32 %v1164_v42, %v912_v27 }
 0x1fa   : > { %v1248_v37 = vadd.f32 %v2337_v16, %v1165_v36 }
 0x1fc   : > { %vm1280_vm7 = vcmp.ge.f32.partialorder %v1248_v37, 0.0  ;;  %v1316_v13 = vmul.f32 %v2342_v2, %v1248_v37 }
 0x1fe   : > { %v1348_v25 = vsel %vm1280_vm7, %v1248_v37, %v1316_v13 }
 0x1ff   : > { %v1380_v57 = vpack.c.bf16 %v1348_v25, %v1348_v25  ;;  %v915_v6 = vpop.f32.mrf.mxu0 }
 0x200   : > { %v1167_v12 = vadd.f32 %v1166_v22, %v915_v6 }
 0x201   : > { %1413 = vst.msk [vmem:[%s2355_s17] sm:$0xf] %vm1412_vm6, %v1380_v57  ;;  %v1853_v33 = vpop.permute.xlu1 %1852 }
 0x202   : > { %v1249_v23 = vadd.f32 %v2337_v16, %v1167_v12  ;;  %v1855_v4 = vunpack.i.h.bf16 %v1853_v33  ;;  %v1854_v52 = vunpack.i.l.bf16 %v1853_v33 }
 0x204   : > { %vm1281_vm8 = vcmp.ge.f32.partialorder %v1249_v23, 0.0  ;;  %v1317_v26 = vmul.f32 %v2342_v2, %v1249_v23  ;;  %1519 = vmatmul.msk.f32.gmra.mxu0 %vm826_vm4, %v1855_v4  ;;  %1534 = vmatmul.msk.f32.gmra.mxu3 %vm826_vm4, %v1854_v52 }
 0x206   : > { %v1349_v55 = vsel %vm1281_vm8, %v1249_v23, %v1317_v26 }
 0x207   : > { %v1381_v46 = vpack.c.bf16 %v1349_v55, %v1349_v55  ;;  %v918_v45 = vpop.f32.mrf.mxu0 }
 0x208   : > { %v1170_v47 = vadd.f32 %v1169_v15, %v918_v45  ;;  %v1858_v30 = vpop.permute.xlu0 %1857  ;;  %v1176_v15 = vpop.f32.mrf.mxu1 }
 0x209   : > { %1414 = vst.msk [vmem:[%s2355_s17 + $0x4] sm:$0xf] %vm1412_vm6, %v1381_v46  ;;  %v1863_v0 = vpop.permute.xlu1 %1862  ;;  %v1860_v63 = vunpack.i.h.bf16 %v1858_v30  ;;  %v1859_v1 = vunpack.i.l.bf16 %v1858_v30  ;;  %v1216_v46 = vpop.f32.mrf.mxu2 }
 0x20a   : > { %v1250_v44 = vadd.f32 %v2337_v16, %v1170_v47  ;;  %v1865_v11 = vunpack.i.h.bf16 %v1863_v0  ;;  %v1864_v50 = vunpack.i.l.bf16 %v1863_v0 }
 0x20b   : > { %v664_v14 = vmax.f32 %v2298_v31, %v1860_v63  ;;  %v663_v7 = vmax.f32 %v2302_v32, %v1859_v1 }
 0x20c   : > { %vm1282_vm9 = vcmp.ge.f32.partialorder %v1250_v44, 0.0  ;;  %v1318_v54 = vmul.f32 %v2342_v2, %v1250_v44  ;;  %v680_v20 = vmax.f32 %v2288_v38, %v1865_v11  ;;  %v679_v10 = vmax.f32 %v2292_v28, %v1864_v50  ;;  %1520 = vmatmul.msk.f32.gmra.mxu0 %vm826_vm4, %v1869_v9  ;;  %1535 = vmatmul.msk.f32.gmra.mxu3 %vm826_vm4, %v811_v59 }
 0x20d   : > { %v966_v5 = vpop.f32.mrf.mxu3 }
 0x20e   : > { %v1350_v53 = vsel %vm1282_vm9, %v1250_v44, %v1318_v54  ;;  %v1210_v62 = vadd.f32 %v1209_v43, %v966_v5  ;;  %v1891_v22 = vpack.i.bf16 %v679_v10, %v663_v7  ;;  %v1896_v34 = vpack.i.bf16 %v680_v20, %v664_v14  ;;  %v1639_v20 = vld [vmem:[%s1961_s24 + $0x30] sm:$0xff] }
 0x20f   : > { %v1382_v18 = vpack.c.bf16 %v1350_v53, %v1350_v53  ;;  %v921_v61 = vpop.f32.mrf.mxu0  ;;  %v1647_v10 = vld [vmem:[%s1961_s24 + $0x70] sm:$0xff]  ;;  %1621 = vmatmul.msk.bf16.gmra.mxu1 %vm1099_vm2, %v1639_v20 }
 0x210   : > { %v1266_v60 = vadd.f32 %v2337_v16, %v1210_v62  ;;  %v1172_v42 = vadd.f32 %v1171_v49, %v921_v61  ;;  %1892 = vrot.lane.b32.xlu1 %v1891_v22, %s1913_s27  ;;  %1897 = vrot.lane.b32.xlu2 %v1896_v34, %s1913_s27  ;;  %v1179_v48 = vpop.f32.mrf.mxu1 }
 0x211   : > { %1415 = vst.msk [vmem:[%s2355_s17 + $0x8] sm:$0xf] %vm1412_vm6, %v1382_v18  ;;  %v1873_v32 = vpop.permute.xlu0 %1872  ;;  %v1878_v36 = vpop.permute.xlu1 %1877  ;;  %1629 = vmatmul.msk.bf16.gmra.mxu2 %vm1099_vm2, %v1647_v10 }
 0x212   : > { %vm1298_vm10 = vcmp.ge.f32.partialorder %v1266_v60, 0.0  ;;  %v1334_v38 = vmul.f32 %v2342_v2, %v1266_v60  ;;  %v1251_v28 = vadd.f32 %v2337_v16, %v1172_v42  ;;  %v1874_v39 = vunpack.i.l.bf16 %v1873_v32  ;;  %v1219_v18 = vpop.f32.mrf.mxu2 }
 0x213   : > { %v1879_v57 = vunpack.i.l.bf16 %v1878_v36  ;;  %v1875_v41 = vunpack.i.h.bf16 %v1873_v32  ;;  %v1880_v44 = vunpack.i.h.bf16 %v1878_v36  ;;  %v1648_v36 = vld [vmem:[%s1961_s24 + $0x78] sm:$0xff] }
 0x214   : > { %v1366_v24 = vsel %vm1298_vm10, %v1266_v60, %v1334_v38  ;;  %vm1283_vm11 = vcmp.ge.f32.partialorder %v1251_v28, 0.0  ;;  %v1319_v31 = vmul.f32 %v2342_v2, %v1251_v28  ;;  %1536 = vmatmul.msk.f32.gmra.mxu3 %vm826_vm4, %v1870_v17  ;;  %1521 = vmatmul.msk.f32.gmra.mxu0 %vm826_vm4, %v1874_v39 }
 0x215   : > { %v1398_v19 = vpack.c.bf16 %v1366_v24, %v1366_v24  ;;  %v969_v3 = vpop.f32.mrf.mxu3 }
 0x216   : > { %v1351_v40 = vsel %vm1283_vm11, %v1251_v28, %v1319_v31  ;;  %v1212_v51 = vadd.f32 %v1211_v58, %v969_v3 }
 0x217   : > { %1431 = vst.msk [vmem:[%s2355_s17 + $0x48] sm:$0xf] %vm1412_vm6, %v1398_v19  ;;  %v1383_v56 = vpack.c.bf16 %v1351_v40, %v1351_v40  ;;  %v924_v35 = vpop.f32.mrf.mxu0 }
 0x218   : > { %v1267_v27 = vadd.f32 %v2337_v16, %v1212_v51  ;;  %v1175_v37 = vadd.f32 %v1174_v21, %v924_v35  ;;  %v1181_v42 = vpop.f32.mrf.mxu1 }
 0x219   : > { %1416 = vst.msk [vmem:[%s2355_s17 + $0xc] sm:$0xf] %vm1412_vm6, %v1383_v56 }
 0x21a   : > { %vm1299_vm12 = vcmp.ge.f32.partialorder %v1267_v27, 0.0  ;;  %v1335_v13 = vmul.f32 %v2342_v2, %v1267_v27  ;;  %v1252_v25 = vadd.f32 %v2337_v16, %v1175_v37  ;;  %v1640_v37 = vld [vmem:[%s1961_s24 + $0x38] sm:$0xff] }
 0x21c   : > { %v1367_v6 = vsel %vm1299_vm12, %v1267_v27, %v1335_v13  ;;  %vm1284_vm13 = vcmp.ge.f32.partialorder %v1252_v25, 0.0  ;;  %v1320_v12 = vmul.f32 %v2342_v2, %v1252_v25  ;;  %1522 = vmatmul.msk.f32.gmra.mxu0 %vm826_vm4, %v1879_v57  ;;  %1537 = vmatmul.msk.f32.gmra.mxu3 %vm826_vm4, %v1875_v41 }
 0x21d   : > { %v1399_v59 = vpack.c.bf16 %v1367_v6, %v1367_v6  ;;  %v972_v23 = vpop.f32.mrf.mxu3 }
 0x21e   : > { %v1215_v26 = vadd.f32 %v1214_v29, %v972_v23  ;;  %v1352_v33 = vsel %vm1284_vm13, %v1252_v25, %v1320_v12 }
 0x21f   : > { %1432 = vst.msk [vmem:[%s2355_s17 + $0x4c] sm:$0xf] %vm1412_vm6, %v1399_v59  ;;  %v1384_v43 = vpack.c.bf16 %v1352_v33, %v1352_v33  ;;  %v927_v52 = vpop.f32.mrf.mxu0  ;;  %1622 = vmatmul.msk.bf16.gmra.mxu1 %vm1099_vm2, %v1640_v37 }
 0x220   : > { %v1268_v4 = vadd.f32 %v2337_v16, %v1215_v26  ;;  %v1177_v55 = vadd.f32 %v1176_v15, %v927_v52  ;;  %v1184_v13 = vpop.f32.mrf.mxu1  ;;  %v1221_v15 = vpop.f32.mrf.mxu2 }
 0x221   : > { %1417 = vst.msk [vmem:[%s2355_s17 + $0x10] sm:$0xf] %vm1412_vm6, %v1384_v43  ;;  %1630 = vmatmul.msk.bf16.gmra.mxu2 %vm1099_vm2, %v1648_v36 }
 0x222   : > { %vm1300_vm14 = vcmp.ge.f32.partialorder %v1268_v4, 0.0  ;;  %v1336_v45 = vmul.f32 %v2342_v2, %v1268_v4  ;;  %v1253_v49 = vadd.f32 %v2337_v16, %v1177_v55 }
 0x224   : > { %v1368_v47 = vsel %vm1300_vm14, %v1268_v4, %v1336_v45  ;;  %vm1285_vm15 = vcmp.ge.f32.partialorder %v1253_v49, 0.0  ;;  %v1321_v0 = vmul.f32 %v2342_v2, %v1253_v49  ;;  %1538 = vmatmul.msk.f32.gmra.mxu3 %vm826_vm4, %v1880_v44 }
 0x225   : > { %v1400_v54 = vpack.c.bf16 %v1368_v47, %v1368_v47  ;;  %v975_v9 = vpop.f32.mrf.mxu3 }
 0x226   : > { %v1217_v11 = vadd.f32 %v1216_v46, %v975_v9  ;;  %v1353_v50 = vsel %vm1285_vm15, %v1253_v49, %v1321_v0 }
 0x227   : > { %1433 = vst.msk [vmem:[%s2355_s17 + $0x50] sm:$0xf] %vm1412_vm6, %v1400_v54  ;;  %v1385_v30 = vpack.c.bf16 %v1353_v50, %v1353_v50  ;;  %v930_v63 = vpop.f32.mrf.mxu0 }
 0x228   : > { %v1269_v53 = vadd.f32 %v2337_v16, %v1217_v11  ;;  %v1180_v1 = vadd.f32 %v1179_v48, %v930_v63  ;;  %v1186_v41 = vpop.f32.mrf.mxu1 }
 0x229   : > { %1418 = vst.msk [vmem:[%s2355_s17 + $0x14] sm:$0xf] %vm1412_vm6, %v1385_v30 }
 0x22a   : > { %vm1301_vm0 = vcmp.ge.f32.partialorder %v1269_v53, 0.0  ;;  %v1337_v5 = vmul.f32 %v2342_v2, %v1269_v53  ;;  %v1254_v58 = vadd.f32 %v2337_v16, %v1180_v1 }
 0x22c   : > { %v1369_v62 = vsel %vm1301_vm0, %v1269_v53, %v1337_v5  ;;  %vm1286_vm1 = vcmp.ge.f32.partialorder %v1254_v58, 0.0  ;;  %v1322_v7 = vmul.f32 %v2342_v2, %v1254_v58 }
 0x22d   : > { %v1401_v14 = vpack.c.bf16 %v1369_v62, %v1369_v62  ;;  %v978_v61 = vpop.f32.mrf.mxu3 }
 0x22e   : > { %v1220_v60 = vadd.f32 %v1219_v18, %v978_v61  ;;  %v1354_v21 = vsel %vm1286_vm1, %v1254_v58, %v1322_v7 }
 0x22f   : > { %1434 = vst.msk [vmem:[%s2355_s17 + $0x54] sm:$0xf] %vm1412_vm6, %v1401_v14  ;;  %v1386_v38 = vpack.c.bf16 %v1354_v21, %v1354_v21  ;;  %v933_v24 = vpop.f32.mrf.mxu0 }
 0x230   : > { %v1270_v28 = vadd.f32 %v2337_v16, %v1220_v60  ;;  %v1182_v31 = vadd.f32 %v1181_v42, %v933_v24  ;;  %v1189_v9 = vpop.f32.mrf.mxu1 }
 0x231   : > { %1419 = vst.msk [vmem:[%s2355_s17 + $0x18] sm:$0xf] %vm1412_vm6, %v1386_v38 }
 0x232   : > { %vm1302_vm3 = vcmp.ge.f32.partialorder %v1270_v28, 0.0  ;;  %v1338_v32 = vmul.f32 %v2342_v2, %v1270_v28  ;;  %v1255_v17 = vadd.f32 %v2337_v16, %v1182_v31 }
 0x234   : > { %v1370_v19 = vsel %vm1302_vm3, %v1270_v28, %v1338_v32  ;;  %vm1287_vm5 = vcmp.ge.f32.partialorder %v1255_v17, 0.0  ;;  %v1323_v3 = vmul.f32 %v2342_v2, %v1255_v17 }
 0x235   : > { %v1402_v39 = vpack.c.bf16 %v1370_v19, %v1370_v19 }
 0x236   : > { %v1355_v40 = vsel %vm1287_vm5, %v1255_v17, %v1323_v3 }
 0x237   : > { %1435 = vst.msk [vmem:[%s2355_s17 + $0x58] sm:$0xf] %vm1412_vm6, %v1402_v39  ;;  %v1387_v51 = vpack.c.bf16 %v1355_v40, %v1355_v40 }
 0x238   : > { %v1191_v21 = vpop.f32.mrf.mxu1 }
 0x239   : > { %1420 = vst.msk [vmem:[%s2355_s17 + $0x1c] sm:$0xf] %vm1412_vm6, %v1387_v51 }
 0x241   : > { %v1883_v22 = vpop.permute.xlu2 %1882 }
 0x242   : > { %v1885_v34 = vunpack.i.h.bf16 %v1883_v22  ;;  %v1884_v56 = vunpack.i.l.bf16 %v1883_v22 }
 0x244   : > { %1523 = vmatmul.msk.f32.gmra.mxu0 %vm826_vm4, %v1884_v56  ;;  %1539 = vmatmul.msk.f32.gmra.mxu3 %vm826_vm4, %v1885_v34 }
 0x259   : > { %v1888_v29 = vpop.permute.xlu0 %1887 }
 0x25a   : > { %v1890_v27 = vunpack.i.h.bf16 %v1888_v29  ;;  %v1889_v35 = vunpack.i.l.bf16 %v1888_v29 }
 0x25c   : > { %1524 = vmatmul.msk.f32.gmra.mxu0 %vm826_vm4, %v1889_v35  ;;  %1540 = vmatmul.msk.f32.gmra.mxu3 %vm826_vm4, %v1890_v27 }
 0x261   : > { %v795_v24 = vpop.permute.xlu0 %794 }
 0x268   : > { %v1224_v43 = vpop.f32.mrf.mxu2 }
 0x26a   : > { %v1898_v44 = vpop.permute.xlu2 %1897 }
 0x26b   : > { %v1900_v53 = vunpack.i.h.bf16 %v1898_v44  ;;  %v1899_v63 = vunpack.i.l.bf16 %v1898_v44 }
 0x270   : > { %v1226_v18 = vpop.f32.mrf.mxu2 }
 0x278   : > { %v1229_v39 = vpop.f32.mrf.mxu2 }
 0x281   : > { %v936_v25 = vpop.f32.mrf.mxu0 }
 0x282   : > { %v1185_v57 = vadd.f32 %v1184_v13, %v936_v25  ;;  %v1893_v26 = vpop.permute.xlu1 %1892  ;;  %v1231_v13 = vpop.f32.mrf.mxu2 }
 0x283   : > { %v1895_v52 = vunpack.i.h.bf16 %v1893_v26  ;;  %v1894_v55 = vunpack.i.l.bf16 %v1893_v26 }
 0x284   : > { %v1256_v6 = vadd.f32 %v2337_v16, %v1185_v57 }
 0x285   : > { %1525 = vmatmul.msk.f32.gmra.mxu0 %vm826_vm4, %v1894_v55  ;;  %1541 = vmatmul.msk.f32.gmra.mxu3 %vm826_vm4, %v1895_v52 }
 0x286   : > { %vm1288_vm7 = vcmp.ge.f32.partialorder %v1256_v6, 0.0  ;;  %v1324_v59 = vmul.f32 %v2342_v2, %v1256_v6 }
 0x287   : > { %v981_v12 = vpop.f32.mrf.mxu3 }
 0x288   : > { %v1356_v23 = vsel %vm1288_vm7, %v1256_v6, %v1324_v59  ;;  %v1222_v33 = vadd.f32 %v1221_v15, %v981_v12 }
 0x289   : > { %v1388_v4 = vpack.c.bf16 %v1356_v23, %v1356_v23  ;;  %v939_v46 = vpop.f32.mrf.mxu0 }
 0x28a   : > { %v1271_v45 = vadd.f32 %v2337_v16, %v1222_v33  ;;  %v1187_v49 = vadd.f32 %v1186_v41, %v939_v46 }
 0x28b   : > { %1421 = vst.msk [vmem:[%s2355_s17 + $0x20] sm:$0xf] %vm1412_vm6, %v1388_v4 }
 0x28c   : > { %vm1303_vm2 = vcmp.ge.f32.partialorder %v1271_v45, 0.0  ;;  %v1339_v47 = vmul.f32 %v2342_v2, %v1271_v45  ;;  %v1257_v48 = vadd.f32 %v2337_v16, %v1187_v49  ;;  %v1194_v26 = vpop.f32.mrf.mxu1 }
 0x28d   : > { %1526 = vmatmul.msk.f32.gmra.mxu0 %vm826_vm4, %v1899_v63  ;;  %1542 = vmatmul.msk.f32.gmra.mxu3 %vm826_vm4, %v1900_v53 }
 0x28e   : > { %v1371_v54 = vsel %vm1303_vm2, %v1271_v45, %v1339_v47  ;;  %vm1289_vm8 = vcmp.ge.f32.partialorder %v1257_v48, 0.0  ;;  %v1325_v0 = vmul.f32 %v2342_v2, %v1257_v48 }
 0x28f   : > { %v1403_v11 = vpack.c.bf16 %v1371_v54, %v1371_v54  ;;  %v984_v30 = vpop.f32.mrf.mxu3 }
 0x290   : > { %v1357_v50 = vsel %vm1289_vm8, %v1257_v48, %v1325_v0  ;;  %v1225_v5 = vadd.f32 %v1224_v43, %v984_v30 }
 0x291   : > { %1436 = vst.msk [vmem:[%s2355_s17 + $0x5c] sm:$0xf] %vm1412_vm6, %v1403_v11  ;;  %v1389_v1 = vpack.c.bf16 %v1357_v50, %v1357_v50  ;;  %v942_v58 = vpop.f32.mrf.mxu0 }
 0x292   : > { %v1272_v20 = vadd.f32 %v2337_v16, %v1225_v5  ;;  %v1190_v10 = vadd.f32 %v1189_v9, %v942_v58 }
 0x293   : > { %1422 = vst.msk [vmem:[%s2355_s17 + $0x24] sm:$0xf] %vm1412_vm6, %v1389_v1 }
 0x294   : > { %vm1304_vm9 = vcmp.ge.f32.partialorder %v1272_v20, 0.0  ;;  %v1340_v62 = vmul.f32 %v2342_v2, %v1272_v20  ;;  %v1258_v14 = vadd.f32 %v2337_v16, %v1190_v10  ;;  %v1234_v52 = vpop.f32.mrf.mxu2  ;;  %v1196_v9 = vpop.f32.mrf.mxu1 }
 0x295   : > { %1527 = vmatmul.msk.f32.gmra.mxu0 %vm826_vm4, %v795_v24 }
 0x296   : > { %v1372_v7 = vsel %vm1304_vm9, %v1272_v20, %v1340_v62  ;;  %vm1290_vm10 = vcmp.ge.f32.partialorder %v1258_v14, 0.0  ;;  %v1326_v61 = vmul.f32 %v2342_v2, %v1258_v14 }
 0x297   : > { %v1404_v60 = vpack.c.bf16 %v1372_v7, %v1372_v7  ;;  %v987_v42 = vpop.f32.mrf.mxu3 }
 0x298   : > { %v1358_v38 = vsel %vm1290_vm10, %v1258_v14, %v1326_v61  ;;  %v1227_v28 = vadd.f32 %v1226_v18, %v987_v42 }
 0x299   : > { %1437 = vst.msk [vmem:[%s2355_s17 + $0x60] sm:$0xf] %vm1412_vm6, %v1404_v60  ;;  %v1390_v31 = vpack.c.bf16 %v1358_v38, %v1358_v38  ;;  %v945_v32 = vpop.f32.mrf.mxu0 }
 0x29a   : > { %v1273_v17 = vadd.f32 %v2337_v16, %v1227_v28  ;;  %v1192_v19 = vadd.f32 %v1191_v21, %v945_v32 }
 0x29b   : > { %1423 = vst.msk [vmem:[%s2355_s17 + $0x28] sm:$0xf] %vm1412_vm6, %v1390_v31 }
 0x29c   : > { %vm1305_vm11 = vcmp.ge.f32.partialorder %v1273_v17, 0.0  ;;  %v1341_v3 = vmul.f32 %v2342_v2, %v1273_v17  ;;  %v1259_v40 = vadd.f32 %v2337_v16, %v1192_v19  ;;  %v1236_v53 = vpop.f32.mrf.mxu2  ;;  %v1199_v7 = vpop.f32.mrf.mxu1 }
 0x29e   : > { %v1373_v51 = vsel %vm1305_vm11, %v1273_v17, %v1341_v3  ;;  %vm1291_vm12 = vcmp.ge.f32.partialorder %v1259_v40, 0.0  ;;  %v1327_v22 = vmul.f32 %v2342_v2, %v1259_v40 }
 0x29f   : > { %v1405_v34 = vpack.c.bf16 %v1373_v51, %v1373_v51  ;;  %v990_v56 = vpop.f32.mrf.mxu3 }
 0x2a0   : > { %v1359_v29 = vsel %vm1291_vm12, %v1259_v40, %v1327_v22  ;;  %v1230_v27 = vadd.f32 %v1229_v39, %v990_v56 }
 0x2a1   : > { %1438 = vst.msk [vmem:[%s2355_s17 + $0x64] sm:$0xf] %vm1412_vm6, %v1405_v34  ;;  %v1391_v35 = vpack.c.bf16 %v1359_v29, %v1359_v29 }
 0x2a2   : > { %v1274_v36 = vadd.f32 %v2337_v16, %v1230_v27 }
 0x2a3   : > { %1424 = vst.msk [vmem:[%s2355_s17 + $0x2c] sm:$0xf] %vm1412_vm6, %v1391_v35 }
 0x2a4   : > { %vm1306_vm4 = vcmp.ge.f32.partialorder %v1274_v36, 0.0  ;;  %v1342_v37 = vmul.f32 %v2342_v2, %v1274_v36  ;;  %v1239_v21 = vpop.f32.mrf.mxu2  ;;  %v1201_v24 = vpop.f32.mrf.mxu1 }
 0x2a6   : > { %v1374_v15 = vsel %vm1306_vm4, %v1274_v36, %v1342_v37 }
 0x2a7   : > { %v1406_v25 = vpack.c.bf16 %v1374_v15, %v1374_v15  ;;  %v993_v57 = vpop.f32.mrf.mxu3 }
 0x2a8   : > { %v1232_v6 = vadd.f32 %v1231_v13, %v993_v57 }
 0x2a9   : > { %1439 = vst.msk [vmem:[%s2355_s17 + $0x68] sm:$0xf] %vm1412_vm6, %v1406_v25 }
 0x2aa   : > { %v1275_v41 = vadd.f32 %v2337_v16, %v1232_v6 }
 0x2ac   : > { %vm1307_vm13 = vcmp.ge.f32.partialorder %v1275_v41, 0.0  ;;  %v1343_v59 = vmul.f32 %v2342_v2, %v1275_v41  ;;  %v1241_v29 = vpop.f32.mrf.mxu2 }
 0x2ae   : > { %v1375_v12 = vsel %vm1307_vm13, %v1275_v41, %v1343_v59 }
 0x2af   : > { %v1407_v23 = vpack.c.bf16 %v1375_v12, %v1375_v12 }
 0x2b1   : > { %1440 = vst.msk [vmem:[%s2355_s17 + $0x6c] sm:$0xf] %vm1412_vm6, %v1407_v23 }
 0x2c1   : > { %v948_v33 = vpop.f32.mrf.mxu0 }
 0x2c2   : > { %v1195_v43 = vadd.f32 %v1194_v26, %v948_v33 }
 0x2c4   : > { %v1260_v4 = vadd.f32 %v2337_v16, %v1195_v43 }
 0x2c6   : > { %vm1292_vm14 = vcmp.ge.f32.partialorder %v1260_v4, 0.0  ;;  %v1328_v55 = vmul.f32 %v2342_v2, %v1260_v4 }
 0x2c7   : > { %v996_v46 = vpop.f32.mrf.mxu3 }
 0x2c8   : > { %v1360_v45 = vsel %vm1292_vm14, %v1260_v4, %v1328_v55  ;;  %v1235_v49 = vadd.f32 %v1234_v52, %v996_v46 }
 0x2c9   : > { %v1392_v47 = vpack.c.bf16 %v1360_v45, %v1360_v45 }
 0x2ca   : > { %v1276_v48 = vadd.f32 %v2337_v16, %v1235_v49 }
 0x2cb   : > { %1425 = vst.msk [vmem:[%s2355_s17 + $0x30] sm:$0xf] %vm1412_vm6, %v1392_v47 }
 0x2cc   : > { %vm1308_vm15 = vcmp.ge.f32.partialorder %v1276_v48, 0.0  ;;  %v1344_v44 = vmul.f32 %v2342_v2, %v1276_v48 }
 0x2ce   : > { %v1376_v54 = vsel %vm1308_vm15, %v1276_v48, %v1344_v44 }
 0x2cf   : > { %v1408_v0 = vpack.c.bf16 %v1376_v54, %v1376_v54 }
 0x2d1   : > { %1441 = vst.msk [vmem:[%s2355_s17 + $0x70] sm:$0xf] %vm1412_vm6, %v1408_v0 }
 0x2d9   : > { %v951_v11 = vpop.f32.mrf.mxu0 }
 0x2da   : > { %v1197_v50 = vadd.f32 %v1196_v9, %v951_v11 }
 0x2dc   : > { %v1261_v30 = vadd.f32 %v2337_v16, %v1197_v50 }
 0x2de   : > { %vm1293_vm0 = vcmp.ge.f32.partialorder %v1261_v30, 0.0  ;;  %v1329_v63 = vmul.f32 %v2342_v2, %v1261_v30 }
 0x2df   : > { %v999_v1 = vpop.f32.mrf.mxu3 }
 0x2e0   : > { %v1361_v5 = vsel %vm1293_vm0, %v1261_v30, %v1329_v63  ;;  %v1237_v58 = vadd.f32 %v1236_v53, %v999_v1 }
 0x2e1   : > { %v1393_v18 = vpack.c.bf16 %v1361_v5, %v1361_v5 }
 0x2e2   : > { %v1277_v20 = vadd.f32 %v2337_v16, %v1237_v58 }
 0x2e3   : > { %1426 = vst.msk [vmem:[%s2355_s17 + $0x34] sm:$0xf] %vm1412_vm6, %v1393_v18 }
 0x2e4   : > { %vm1309_vm1 = vcmp.ge.f32.partialorder %v1277_v20, 0.0  ;;  %v1345_v10 = vmul.f32 %v2342_v2, %v1277_v20 }
 0x2e6   : > { %v1377_v62 = vsel %vm1309_vm1, %v1277_v20, %v1345_v10 }
 0x2e7   : > { %v1409_v14 = vpack.c.bf16 %v1377_v62, %v1377_v62 }
 0x2e9   : > { %1442 = vst.msk [vmem:[%s2355_s17 + $0x74] sm:$0xf] %vm1412_vm6, %v1409_v14 }
 0x302   : > { %v954_v61 = vpop.f32.mrf.mxu0 }
 0x303   : > { %v1200_v60 = vadd.f32 %v1199_v7, %v954_v61 }
 0x305   : > { %v1262_v42 = vadd.f32 %v2337_v16, %v1200_v60 }
 0x307   : > { %vm1294_vm3 = vcmp.ge.f32.partialorder %v1262_v42, 0.0  ;;  %v1330_v38 = vmul.f32 %v2342_v2, %v1262_v42 }
 0x308   : > { %v1002_v28 = vpop.f32.mrf.mxu3 }
 0x309   : > { %v1362_v31 = vsel %vm1294_vm3, %v1262_v42, %v1330_v38  ;;  %v1240_v32 = vadd.f32 %v1239_v21, %v1002_v28 }
 0x30a   : > { %v1394_v17 = vpack.c.bf16 %v1362_v31, %v1362_v31  ;;  %v957_v19 = vpop.f32.mrf.mxu0 }
 0x30b   : > { %v1278_v39 = vadd.f32 %v2337_v16, %v1240_v32  ;;  %v1202_v3 = vadd.f32 %v1201_v24, %v957_v19 }
 0x30c   : > { %1427 = vst.msk [vmem:[%s2355_s17 + $0x38] sm:$0xf] %vm1412_vm6, %v1394_v17 }
 0x30d   : > { %vm1310_vm5 = vcmp.ge.f32.partialorder %v1278_v39, 0.0  ;;  %v1346_v40 = vmul.f32 %v2342_v2, %v1278_v39  ;;  %v1263_v51 = vadd.f32 %v2337_v16, %v1202_v3 }
 0x30f   : > { %v1378_v22 = vsel %vm1310_vm5, %v1278_v39, %v1346_v40  ;;  %vm1295_vm7 = vcmp.ge.f32.partialorder %v1263_v51, 0.0  ;;  %v1331_v34 = vmul.f32 %v2342_v2, %v1263_v51 }
 0x310   : > { %v1410_v56 = vpack.c.bf16 %v1378_v22, %v1378_v22  ;;  %v1005_v27 = vpop.f32.mrf.mxu3 }
 0x311   : > { %v1363_v35 = vsel %vm1295_vm7, %v1263_v51, %v1331_v34  ;;  %v1242_v36 = vadd.f32 %v1241_v29, %v1005_v27 }
 0x312   : > { %1443 = vst.msk [vmem:[%s2355_s17 + $0x78] sm:$0xf] %vm1412_vm6, %v1410_v56  ;;  %v1395_v37 = vpack.c.bf16 %v1363_v35, %v1363_v35  ;;  %v960_v13 = vpop.f32.mrf.mxu0 }
 0x313   : > { %v1279_v15 = vadd.f32 %v2337_v16, %v1242_v36  ;;  %v1205_v25 = vadd.f32 %v2326_v8, %v960_v13 }
 0x314   : > { %1428 = vst.msk [vmem:[%s2355_s17 + $0x3c] sm:$0xf] %vm1412_vm6, %v1395_v37 }
 0x315   : > { %vm1311_vm2 = vcmp.ge.f32.partialorder %v1279_v15, 0.0  ;;  %v1347_v57 = vmul.f32 %v2342_v2, %v1279_v15  ;;  %v1264_v6 = vadd.f32 %v2337_v16, %v1205_v25 }
 0x317   : > { %v1379_v41 = vsel %vm1311_vm2, %v1279_v15, %v1347_v57  ;;  %vm1296_vm8 = vcmp.ge.f32.partialorder %v1264_v6, 0.0  ;;  %v1332_v59 = vmul.f32 %v2342_v2, %v1264_v6 }
 0x318   : > { %v1411_v12 = vpack.c.bf16 %v1379_v41, %v1379_v41 }
 0x319   : > { %v1364_v23 = vsel %vm1296_vm8, %v1264_v6, %v1332_v59 }
 0x31a   : > { %1444 = vst.msk [vmem:[%s2355_s17 + $0x7c] sm:$0xf] %vm1412_vm6, %v1411_v12  ;;  %v1396_v26 = vpack.c.bf16 %v1364_v23, %v1364_v23 }
 0x31c   : > { %1429 = vst.msk [vmem:[%s2355_s17 + $0x40] sm:$0xf] %vm1412_vm6, %v1396_v26 }
 0x31d PF: > { %s15_s18 = sadd.s32 1, %s1909_s18  }
 0x31e   : > { %p12_p4 = scmp.ge.s32.totalorder %s15_s18, 4  }
 0x320   :  { %14 = sbr.rel (!%p12_p4) target bundleno = 1 (0x1), region = 70 }

// kernel: _lambda_.53
= control target key start
LH: loop header
LB: loop body
LE: loop exit
PB: predicated region body
PF: predicated region fallthrough
CT: control target
= control target key end

     0   :  { %s489_s18 = smov 0   ;;  %s525_s0 = inlined_call_operand.vmem [shape: bf16[16,128], index: 0, kind: input, shape index: {}]   ;;  %s526_s1 = inlined_call_operand.vmem [shape: bf16[16,128], index: 1, kind: input, shape index: {}]   ;;  %s527_s2 = inlined_call_operand.vmem [shape: bf16[16,128], index: 2, kind: input, shape index: {}]   ;;  %s528_s3 = inlined_call_operand.vmem [shape: bf16[16,128], index: 3, kind: input, shape index: {}]   ;;  %s529_s4 = inlined_call_operand.vmem [shape: bf16[16,128], index: 4, kind: output, shape index: {0}]   ;;  %s530_s5 = inlined_call_operand.vmem [shape: s32[16,128], index: 5, kind: output, shape index: {1}]  }
   0x1 LB: > { %s426_s19 = sadd.s32 4294967295, %s455_s18   ;;  %p430_p0 = scmp.ge.s32.totalorder %s455_s18, 1  ;;  %s455_s18 = sphi %s489_s18, %s16_s18  }
   0x2   : > { %p216_p1 = scmp.lt.s32.totalorder %s455_s18, 3 }
   0x4   : > { %p217_p2 = pnand %p430_p0, %p216_p1 }
   0x5   : > { %p258_p3 = scmp.lt.s32.totalorder (!%p217_p2), %s426_s19, 1 }
   0x6   : > { %220 = sbr.rel (%p217_p2) target bundleno = 31 (0x1f), region = 36 }
   0xb   : > { %s532_s19 = smov (!%p258_p3, %s426_s19), 1  ;;  %v457_v14 = vmov 0   ;;  %v458_v16 = vmov 2  }
   0xc   : > { %s497_s20 = sshll.u32 %s532_s19, 2  ;;  %s436_s8 = sshll.u32 %s532_s19, 3 }
   0xd   : > { %s261_s23 = scalar_lea.vmem %s525_s0, %s497_s20  ;;  %s265_s26 = scalar_lea.vmem %s526_s1, %s497_s20 }
   0xe   : > { %s269_s29 = scalar_lea.vmem %s527_s2, %s497_s20  ;;  %s273_s7 = scalar_lea.vmem %s528_s3, %s497_s20  ;;  %v282_v0 = vld [vmem:[%s261_s23] sm:$0xf] }
   0xf   : > { %v283_v1 = vld [vmem:[%s265_s26] sm:$0xf]  ;;  %v286_v4 = vunpack.c.l.bf16 %v282_v0  ;;  %s281_s11 = scalar_lea.vmem %s530_s5, %s436_s8  ;;  %s277_s14 = scalar_lea.vmem %s529_s4, %s497_s20 }
  0x10   : > { %v284_v2 = vld [vmem:[%s269_s29] sm:$0xf]  ;;  %v287_v5 = vunpack.c.l.bf16 %v283_v1 }
  0x11   : > { %v285_v3 = vld [vmem:[%s273_s7] sm:$0xf]  ;;  %v292_v6 = vunpack.c.l.bf16 %v284_v2 }
  0x12   : > { %v293_v7 = vunpack.c.l.bf16 %v285_v3  ;;  %v288_v8 = vmax.f32 %v286_v4, %v287_v5  ;;  %vm290_vm0 = vcmp.gt.f32.partialorder %v287_v5, %v286_v4 }
  0x13   : > { %v291_v15 = vsel %vm290_vm0, 1, %v457_v14 }
  0x14   : > { %v294_v9 = vmax.f32 %v292_v6, %v293_v7  ;;  %v289_v10 = vpack.c.bf16 %v288_v8, %v288_v8  ;;  %vm296_vm1 = vcmp.gt.f32.partialorder %v293_v7, %v292_v6 }
  0x15   : > { %v297_v17 = vsel %vm296_vm1, 3, %v458_v16 }
  0x16   : > { %v295_v11 = vpack.c.bf16 %v294_v9, %v294_v9  ;;  %v298_v12 = vunpack.c.l.bf16 %v289_v10 }
  0x18   : > { %v299_v13 = vunpack.c.l.bf16 %v295_v11 }
  0x1a   : > { %v300_v18 = vmax.f32 %v298_v12, %v299_v13  ;;  %vm303_vm2 = vcmp.gt.f32.partialorder %v299_v13, %v298_v12 }
  0x1b   : > { %v304_v19 = vsel %vm303_vm2, %v297_v17, %v291_v15 }
  0x1c   : > { %v301_v20 = vpack.c.bf16 %v300_v18, %v300_v18  ;;  %305 = vst [vmem:[%s281_s11] sm:$0xff] %v304_v19 }
  0x1e   : > { %302 = vst [vmem:[%s277_s14] sm:$0xf] %v301_v20 }
  0x1f PF: > { %s16_s18 = sadd.s32 1, %s455_s18  }
  0x20   : > { %p13_p4 = scmp.ge.s32.totalorder %s16_s18, 4  }
  0x22   :  { %15 = sbr.rel (!%p13_p4) target bundleno = 1 (0x1), region = 87 }

// kernel: _lambda_.54
= control target key start
LH: loop header
LB: loop body
LE: loop exit
PB: predicated region body
PF: predicated region fallthrough
CT: control target
= control target key end

     0   :  { %s1014_s30 = smov 0   ;;  %s1163_s0 = inlined_call_operand.vmem [shape: bf16[128,144], index: 0, kind: input, shape index: {}]   ;;  %s1164_s1 = inlined_call_operand.vmem [shape: bf16[144,16], index: 1, kind: input, shape index: {}]   ;;  %s1165_s2 = inlined_call_operand.vmem [shape: f32[1,16], index: 2, kind: input, shape index: {}]   ;;  %s1166_s3 = inlined_call_operand.vmem [shape: f32[1,16], index: 3, kind: input, shape index: {}]   ;;  %s1167_s4 = inlined_call_operand.vmem [shape: bf16[16,64], index: 4, kind: input, shape index: {}]   ;;  %s1168_s5 = inlined_call_operand.vmem [shape: f32[1,64], index: 5, kind: input, shape index: {}]   ;;  %s1169_s6 = inlined_call_operand.vmem [shape: f32[1,64], index: 6, kind: input, shape index: {}, may-alias: {6,8}]   ;;  %s1170_s7 = inlined_call_operand.vmem [shape: bf16[128,64], index: 7, kind: input, shape index: {}]   ;;  %s1171_s8 = inlined_call_operand.vmem [shape: f32[1,64], index: 8, kind: input, shape index: {}, may-alias: {6,8}]   ;;  %s1172_s9 = inlined_call_operand.vmem [shape: bf16[128,64], index: 9, kind: output, shape index: {}]  }
   0x1 LB: > { %s803_s10 = sadd.s32 4294967295, %s962_s30   ;;  %p807_p0 = scmp.ge.s32.totalorder %s962_s30, 1  ;;  %s962_s30 = sphi %s1014_s30, %s19_s30  }
   0x2   : > { %p300_p1 = scmp.lt.s32.totalorder %s962_s30, 3 }
   0x4   : > { %p301_p2 = pnand %p807_p0, %p300_p1 }
   0x5   : > { %s808_s13 = sshll.u32 (!%p301_p2), %s803_s10, 3 }
   0x6   : > { %304 = sbr.rel (%p301_p2) target bundleno = 387 (0x183), region = 56  ;;  %p343_p3 = scmp.lt.s32.totalorder (!%p301_p2), %s808_s13, 15 }
   0xb   : > { %v913_v0 = vld [vmem:[%s1164_s1 + $0x38] sm:$0xff]  ;;  %v912_v1 = vld [vmem:[%s1164_s1 + $0x30] sm:$0xff]  ;;  %v914_v2 = vld [vmem:[%s1164_s1 + $0x40] sm:$0xff]  ;;  %s1174_s13 = smov (!%p343_p3, %s808_s13), 15  ;;  %vm482_vm0 = vcmask 130048   ;;  %vm726_vm11 = vcmask 519168  }
   0xc   : > { %495 = vmatpush.bf16.msra.mxu0 %v913_v0  ;;  %935 = vmatpush.bf16.msra.mxu3 %v913_v0  ;;  %s897_s18 = sshll.u32 %s1174_s13, 3  ;;  %v911_v3 = vld [vmem:[%s1164_s1 + $0x28] sm:$0xff]  ;;  %v910_v7 = vld [vmem:[%s1164_s1 + $0x20] sm:$0xff]  ;;  %v909_v8 = vld [vmem:[%s1164_s1 + $0x18] sm:$0xff]  ;;  %s812_s21 = sshll.u32 %s1174_s13, 2 }
   0xd   : > { %531 = vmatpush.bf16.msra.mxu1 %v914_v2  ;;  %s1040_s23 = scalar_lea.vmem %s1163_s0, %s897_s18  ;;  %v908_v9 = vld [vmem:[%s1164_s1 + $0x10] sm:$0xff]  ;;  %v907_v12 = vld [vmem:[%s1164_s1 + $0x8] sm:$0xff]  ;;  %v906_v14 = vld [vmem:[%s1164_s1] sm:$0xff]  ;;  %s1094_s24 = scalar_lea.vmem %s1170_s7, %s812_s21 }
   0xe   : > { %v898_v4 = vld [vmem:[%s1040_s23 + $0x4] sm:$0xf]  ;;  %v819_v5 = vld [vmem:[%s1040_s23 + $0x8] sm:$0xf0]  ;;  %v900_v10 = vld [vmem:[%s1040_s23 + $0x14] sm:$0xf]  ;;  %s1119_s12 = scalar_lea.vmem %s1172_s9, %s812_s21 }
   0xf   : > { %v822_v6 = vor.u32 %v898_v4, %v819_v5  ;;  %v827_v11 = vld [vmem:[%s1040_s23 + $0x18] sm:$0xf0]  ;;  %v817_v15 = vld [vmem:[%s1040_s23] sm:$0xf]  ;;  %v899_v16 = vld [vmem:[%s1040_s23 + $0x4] sm:$0xf0] }
  0x10   : > { %496 = vmatpush.bf16.msra.mxu0 %v912_v1  ;;  %936 = vmatpush.bf16.msra.mxu3 %v912_v1  ;;  %v830_v13 = vor.u32 %v900_v10, %v827_v11  ;;  %v825_v17 = vld [vmem:[%s1040_s23 + $0x10] sm:$0xf]  ;;  %v901_v18 = vld [vmem:[%s1040_s23 + $0x14] sm:$0xf0]  ;;  %v818_v19 = vor.u32 %v899_v16, %v817_v15  ;;  %v902_v21 = vld [vmem:[%s1040_s23 + $0x24] sm:$0xf] }
  0x11   : > { %883 = vmatmul.msk.bf16.vlgmr.msra.gmra.mxu1 %vm482_vm0, %v822_v6  ;;  %v826_v20 = vor.u32 %v901_v18, %v825_v17  ;;  %v835_v22 = vld [vmem:[%s1040_s23 + $0x28] sm:$0xf0]  ;;  %v833_v24 = vld [vmem:[%s1040_s23 + $0x20] sm:$0xf]  ;;  %v903_v25 = vld [vmem:[%s1040_s23 + $0x24] sm:$0xf0] }
  0x12   : > { %v838_v23 = vor.u32 %v902_v21, %v835_v22  ;;  %v834_v26 = vor.u32 %v903_v25, %v833_v24  ;;  %v904_v27 = vld [vmem:[%s1040_s23 + $0x34] sm:$0xf]  ;;  %v843_v28 = vld [vmem:[%s1040_s23 + $0x38] sm:$0xf0]  ;;  %v841_v30 = vld [vmem:[%s1040_s23 + $0x30] sm:$0xf] }
  0x13   : > { %v846_v29 = vor.u32 %v904_v27, %v843_v28  ;;  %v905_v31 = vld [vmem:[%s1040_s23 + $0x34] sm:$0xf0]  ;;  %v915_v34 = vld [vmem:[%s1167_s4] sm:$0xff] }
  0x14   : > { %497 = vmatpush.bf16.msra.mxu0 %v911_v3  ;;  %937 = vmatpush.bf16.msra.mxu3 %v911_v3  ;;  %v842_v32 = vor.u32 %v905_v31, %v841_v30  ;;  %v951_v36 = vld [vmem:[%s1165_s2] ss:$0 sm:$0xff] }
  0x15   : > { %616 = vmatpush.bf16.msra.mxu2 %v915_v34  ;;  %v952_v42 = vld [vmem:[%s1166_s3] ss:$0 sm:$0xff] }
  0x16   : > { %v1099_v24 = vld [vmem:[%s1168_s5] ss:$0 sm:$0xff] }
  0x17   : > { %v1104_v25 = vld [vmem:[%s1169_s6] ss:$0 sm:$0xff] }
  0x18   : > { %498 = vmatpush.bf16.msra.mxu0 %v910_v7  ;;  %938 = vmatpush.bf16.msra.mxu3 %v910_v7  ;;  %v1112_v31 = vld [vmem:[%s1171_s8] ss:$0 sm:$0xff] }
  0x1c   : > { %499 = vmatpush.bf16.msra.mxu0 %v909_v8  ;;  %939 = vmatpush.bf16.msra.mxu3 %v909_v8 }
  0x20   : > { %500 = vmatpush.bf16.msra.mxu0 %v908_v9  ;;  %940 = vmatpush.bf16.msra.mxu3 %v908_v9 }
  0x21   : > { %884 = vmatmul.msk.bf16.gmra.mxu1 %vm482_vm0, %v830_v13 }
  0x24   : > { %501 = vmatpush.bf16.msra.mxu0 %v907_v12  ;;  %941 = vmatpush.bf16.msra.mxu3 %v907_v12 }
  0x28   : > { %502 = vmatpush.bf16.msra.mxu0 %v906_v14  ;;  %942 = vmatpush.bf16.msra.mxu3 %v906_v14 }
  0x2b   : > { %503 = vmatmul.bf16.vlgmr.msra.gmra.mxu0 %v818_v19  ;;  %508 = vmatmul.bf16.vlgmr.msra.gmra.mxu3 %v826_v20 }
  0x31   : > { %885 = vmatmul.msk.bf16.gmra.mxu1 %vm482_vm0, %v838_v23 }
  0x3b   : > { %513 = vmatmul.bf16.gmra.mxu3 %v834_v26  ;;  %v917_v26 = vld [vmem:[%s1094_s24] sm:$0xff]  }
  0x41   : > { %886 = vmatmul.msk.bf16.gmra.mxu1 %vm482_vm0, %v846_v29  ;;  %v918_v29 = vunpack.c.l.bf16 %v917_v26 }
  0x4b   : > { %518 = vmatmul.bf16.gmra.mxu3 %v842_v32 }
  0x8e   : > { %v533_v33 = vpop.f32.mrf.mxu1 }
  0x96   : > { %v535_v35 = vpop.f32.mrf.mxu1 }
  0x9e   : > { %v538_v38 = vpop.f32.mrf.mxu1 }
  0xa6   : > { %v540_v45 = vpop.f32.mrf.mxu1 }
  0xa8   : > { %v504_v37 = vpop.f32.mrf.mxu0 }
  0xa9   : > { %v505_v39 = vadd.f32 %v951_v36, %v504_v37 }
  0xab   : > { %v534_v41 = vadd.f32 %v533_v33, %v505_v39 }
  0xad   : > { %v565_v46 = vmul.f32 %v952_v42, %v534_v41  ;;  %vm553_vm1 = vcmp.ge.f32.partialorder %v534_v41, 0.0 }
  0xae   : > { %v509_v40 = vpop.f32.mrf.mxu3  ;;  %v543_v55 = vpop.f32.mrf.mxu1 }
  0xaf   : > { %v573_v50 = vsel %vm553_vm1, %v534_v41, %v565_v46  ;;  %v510_v53 = vadd.f32 %v951_v36, %v509_v40 }
  0xb0   : > { %v506_v43 = vpop.f32.mrf.mxu0 }
  0xb1   : > { %v507_v44 = vadd.f32 %v951_v36, %v506_v43  ;;  %v539_v56 = vadd.f32 %v538_v38, %v510_v53  ;;  %v919_v38 = vunpack.c.h.bf16 %v917_v26  ;;  %v932_v43 = vld [vmem:[%s1094_s24 + $0x8] sm:$0xff]  }
  0xb3   : > { %v536_v47 = vadd.f32 %v535_v35, %v507_v44  ;;  %v567_v59 = vmul.f32 %v952_v42, %v539_v56  ;;  %vm555_vm3 = vcmp.ge.f32.partialorder %v539_v56, 0.0 }
  0xb5   : > { %vm554_vm2 = vcmp.ge.f32.partialorder %v536_v47, 0.0  ;;  %v566_v48 = vmul.f32 %v952_v42, %v536_v47  ;;  %v575_v61 = vsel %vm555_vm3, %v539_v56, %v567_v59 }
  0xb6   : > { %v511_v49 = vpop.f32.mrf.mxu3  ;;  %v545_v0 = vpop.f32.mrf.mxu1 }
  0xb7   : > { %v574_v51 = vsel %vm554_vm2, %v536_v47, %v566_v48  ;;  %v512_v54 = vadd.f32 %v951_v36, %v511_v49  ;;  %v922_v48 = vunpack.c.l.bf16 %v932_v43 }
  0xb8   : > { %v581_v52 = vpack.c.bf16 %v574_v51, %v573_v50 }
  0xb9   : > { %v541_v57 = vadd.f32 %v540_v45, %v512_v54 }
  0xba   : > { %891 = vmatmul.msk.bf16.vlgmr.msra.gmra.mxu2 %vm482_vm0, %v581_v52 }
  0xbb   : > { %v568_v60 = vmul.f32 %v952_v42, %v541_v57  ;;  %vm556_vm4 = vcmp.ge.f32.partialorder %v541_v57, 0.0 }
  0xbd   : > { %v576_v62 = vsel %vm556_vm4, %v541_v57, %v568_v60  ;;  %v923_v57 = vunpack.c.h.bf16 %v932_v43 }
  0xbe   : > { %v514_v58 = vpop.f32.mrf.mxu3  ;;  %v582_v1 = vpack.c.bf16 %v576_v62, %v575_v61  ;;  %v548_v7 = vpop.f32.mrf.mxu1  ;;  %v933_v62 = vld [vmem:[%s1094_s24 + $0x10] sm:$0xff]  }
  0xbf   : > { %v515_v2 = vadd.f32 %v951_v36, %v514_v58 }
  0xc1   : > { %v544_v4 = vadd.f32 %v543_v55, %v515_v2 }
  0xc3   : > { %v569_v8 = vmul.f32 %v952_v42, %v544_v4  ;;  %vm557_vm5 = vcmp.ge.f32.partialorder %v544_v4, 0.0 }
  0xc5   : > { %v577_v10 = vsel %vm557_vm5, %v544_v4, %v569_v8 }
  0xc6   : > { %v516_v63 = vpop.f32.mrf.mxu3  ;;  %v550_v16 = vpop.f32.mrf.mxu1 }
  0xc7   : > { %v517_v3 = vadd.f32 %v951_v36, %v516_v63 }
  0xc9   : > { %v546_v5 = vadd.f32 %v545_v0, %v517_v3  ;;  %v926_v3 = vunpack.c.l.bf16 %v933_v62 }
  0xca   : > { %892 = vmatmul.msk.bf16.gmra.mxu2 %vm482_vm0, %v582_v1 }
  0xcb   : > { %v570_v9 = vmul.f32 %v952_v42, %v546_v5  ;;  %vm558_vm6 = vcmp.ge.f32.partialorder %v546_v5, 0.0 }
  0xcd   : > { %v578_v11 = vsel %vm558_vm6, %v546_v5, %v570_v9 }
  0xce   : > { %v519_v6 = vpop.f32.mrf.mxu3  ;;  %v583_v13 = vpack.c.bf16 %v578_v11, %v577_v10 }
  0xcf   : > { %v520_v14 = vadd.f32 %v951_v36, %v519_v6 }
  0xd1   : > { %v549_v17 = vadd.f32 %v548_v7, %v520_v14 }
  0xd3   : > { %v571_v19 = vmul.f32 %v952_v42, %v549_v17  ;;  %vm559_vm7 = vcmp.ge.f32.partialorder %v549_v17, 0.0 }
  0xd5   : > { %v579_v21 = vsel %vm559_vm7, %v549_v17, %v571_v19  ;;  %v934_v17 = vld [vmem:[%s1094_s24 + $0x18] sm:$0xff]  }
  0xd6   : > { %v521_v12 = vpop.f32.mrf.mxu3 }
  0xd7   : > { %v522_v15 = vadd.f32 %v951_v36, %v521_v12  ;;  %v927_v12 = vunpack.c.h.bf16 %v933_v62 }
  0xd9   : > { %v551_v18 = vadd.f32 %v550_v16, %v522_v15 }
  0xda   : > { %893 = vmatmul.msk.bf16.gmra.mxu2 %vm482_vm0, %v583_v13 }
  0xdb   : > { %v572_v20 = vmul.f32 %v952_v42, %v551_v18  ;;  %vm560_vm8 = vcmp.ge.f32.partialorder %v551_v18, 0.0 }
  0xdd   : > { %v580_v22 = vsel %vm560_vm8, %v551_v18, %v572_v20 }
  0xde   : > { %v584_v23 = vpack.c.bf16 %v580_v22, %v579_v21  ;;  %v930_v22 = vunpack.c.l.bf16 %v934_v17 }
  0xea   : > { %894 = vmatmul.msk.bf16.gmra.mxu2 %vm482_vm0, %v584_v23 }
 0x13d   : > { %v618_v27 = vpop.f32.mrf.mxu2 }
 0x13e   : > { %v619_v28 = vadd.f32 %v1099_v24, %v618_v27 }
 0x140   : > { %vm638_vm9 = vcmp.ge.f32.partialorder %v619_v28, 0.0  ;;  %v650_v30 = vmul.f32 %v1104_v25, %v619_v28 }
 0x142   : > { %v658_v32 = vsel %vm638_vm9, %v619_v28, %v650_v30 }
 0x143   : > { %v682_v33 = vadd.f32 %v918_v29, %v658_v32 }
 0x145   : > { %vm690_vm10 = vcmp.ge.f32.partialorder %v682_v33, 0.0  ;;  %v702_v34 = vmul.f32 %v1112_v31, %v682_v33  ;;  %v620_v35 = vpop.f32.mrf.mxu2 }
 0x146   : > { %v621_v36 = vadd.f32 %v1099_v24, %v620_v35 }
 0x147   : > { %v710_v37 = vsel %vm690_vm10, %v682_v33, %v702_v34  ;;  %v931_v34 = vunpack.c.h.bf16 %v934_v17 }
 0x148   : > { %v718_v39 = vpack.c.bf16 %v710_v37, %v710_v37  ;;  %vm639_vm12 = vcmp.ge.f32.partialorder %v621_v36, 0.0  ;;  %v651_v40 = vmul.f32 %v1104_v25, %v621_v36 }
 0x14a   : > { %727 = vst.msk [vmem:[%s1119_s12] sm:$0xf] %vm726_vm11, %v718_v39  ;;  %v659_v41 = vsel %vm639_vm12, %v621_v36, %v651_v40 }
 0x14b   : > { %v683_v42 = vadd.f32 %v919_v38, %v659_v41 }
 0x14d   : > { %vm691_vm13 = vcmp.ge.f32.partialorder %v683_v42, 0.0  ;;  %v703_v44 = vmul.f32 %v1112_v31, %v683_v42  ;;  %v623_v45 = vpop.f32.mrf.mxu2 }
 0x14e   : > { %v624_v46 = vadd.f32 %v1099_v24, %v623_v45 }
 0x14f   : > { %v711_v47 = vsel %vm691_vm13, %v683_v42, %v703_v44 }
 0x150   : > { %v719_v49 = vpack.c.bf16 %v711_v47, %v711_v47  ;;  %vm640_vm14 = vcmp.ge.f32.partialorder %v624_v46, 0.0  ;;  %v652_v50 = vmul.f32 %v1104_v25, %v624_v46 }
 0x152   : > { %728 = vst.msk [vmem:[%s1119_s12 + $0x4] sm:$0xf] %vm726_vm11, %v719_v49  ;;  %v660_v51 = vsel %vm640_vm14, %v624_v46, %v652_v50 }
 0x153   : > { %v684_v52 = vadd.f32 %v922_v48, %v660_v51 }
 0x155   : > { %vm692_vm15 = vcmp.ge.f32.partialorder %v684_v52, 0.0  ;;  %v704_v53 = vmul.f32 %v1112_v31, %v684_v52  ;;  %v625_v54 = vpop.f32.mrf.mxu2 }
 0x156   : > { %v626_v55 = vadd.f32 %v1099_v24, %v625_v54 }
 0x157   : > { %v712_v56 = vsel %vm692_vm15, %v684_v52, %v704_v53 }
 0x158   : > { %v720_v58 = vpack.c.bf16 %v712_v56, %v712_v56  ;;  %vm641_vm0 = vcmp.ge.f32.partialorder %v626_v55, 0.0  ;;  %v653_v59 = vmul.f32 %v1104_v25, %v626_v55 }
 0x15a   : > { %729 = vst.msk [vmem:[%s1119_s12 + $0x8] sm:$0xf] %vm726_vm11, %v720_v58  ;;  %v661_v60 = vsel %vm641_vm0, %v626_v55, %v653_v59 }
 0x15b   : > { %v685_v61 = vadd.f32 %v923_v57, %v661_v60 }
 0x15d   : > { %vm693_vm1 = vcmp.ge.f32.partialorder %v685_v61, 0.0  ;;  %v705_v63 = vmul.f32 %v1112_v31, %v685_v61  ;;  %v628_v0 = vpop.f32.mrf.mxu2 }
 0x15e   : > { %v629_v1 = vadd.f32 %v1099_v24, %v628_v0 }
 0x15f   : > { %v713_v2 = vsel %vm693_vm1, %v685_v61, %v705_v63 }
 0x160   : > { %v721_v4 = vpack.c.bf16 %v713_v2, %v713_v2  ;;  %vm642_vm2 = vcmp.ge.f32.partialorder %v629_v1, 0.0  ;;  %v654_v5 = vmul.f32 %v1104_v25, %v629_v1 }
 0x162   : > { %730 = vst.msk [vmem:[%s1119_s12 + $0xc] sm:$0xf] %vm726_vm11, %v721_v4  ;;  %v662_v6 = vsel %vm642_vm2, %v629_v1, %v654_v5 }
 0x163   : > { %v686_v7 = vadd.f32 %v926_v3, %v662_v6 }
 0x165   : > { %vm694_vm3 = vcmp.ge.f32.partialorder %v686_v7, 0.0  ;;  %v706_v8 = vmul.f32 %v1112_v31, %v686_v7  ;;  %v630_v9 = vpop.f32.mrf.mxu2 }
 0x166   : > { %v631_v10 = vadd.f32 %v1099_v24, %v630_v9 }
 0x167   : > { %v714_v11 = vsel %vm694_vm3, %v686_v7, %v706_v8 }
 0x168   : > { %v722_v13 = vpack.c.bf16 %v714_v11, %v714_v11  ;;  %vm643_vm4 = vcmp.ge.f32.partialorder %v631_v10, 0.0  ;;  %v655_v14 = vmul.f32 %v1104_v25, %v631_v10 }
 0x16a   : > { %731 = vst.msk [vmem:[%s1119_s12 + $0x10] sm:$0xf] %vm726_vm11, %v722_v13  ;;  %v663_v15 = vsel %vm643_vm4, %v631_v10, %v655_v14 }
 0x16b   : > { %v687_v16 = vadd.f32 %v927_v12, %v663_v15 }
 0x16d   : > { %vm695_vm5 = vcmp.ge.f32.partialorder %v687_v16, 0.0  ;;  %v707_v18 = vmul.f32 %v1112_v31, %v687_v16  ;;  %v633_v19 = vpop.f32.mrf.mxu2 }
 0x16e   : > { %v634_v20 = vadd.f32 %v1099_v24, %v633_v19 }
 0x16f   : > { %v715_v21 = vsel %vm695_vm5, %v687_v16, %v707_v18 }
 0x170   : > { %v723_v23 = vpack.c.bf16 %v715_v21, %v715_v21  ;;  %vm644_vm6 = vcmp.ge.f32.partialorder %v634_v20, 0.0  ;;  %v656_v26 = vmul.f32 %v1104_v25, %v634_v20 }
 0x172   : > { %732 = vst.msk [vmem:[%s1119_s12 + $0x14] sm:$0xf] %vm726_vm11, %v723_v23  ;;  %v664_v27 = vsel %vm644_vm6, %v634_v20, %v656_v26 }
 0x173   : > { %v688_v28 = vadd.f32 %v930_v22, %v664_v27 }
 0x175   : > { %vm696_vm7 = vcmp.ge.f32.partialorder %v688_v28, 0.0  ;;  %v708_v29 = vmul.f32 %v1112_v31, %v688_v28  ;;  %v635_v30 = vpop.f32.mrf.mxu2 }
 0x176   : > { %v636_v32 = vadd.f32 %v1099_v24, %v635_v30 }
 0x177   : > { %v716_v33 = vsel %vm696_vm7, %v688_v28, %v708_v29 }
 0x178   : > { %v724_v35 = vpack.c.bf16 %v716_v33, %v716_v33  ;;  %vm645_vm8 = vcmp.ge.f32.partialorder %v636_v32, 0.0  ;;  %v657_v36 = vmul.f32 %v1104_v25, %v636_v32 }
 0x17a   : > { %733 = vst.msk [vmem:[%s1119_s12 + $0x18] sm:$0xf] %vm726_vm11, %v724_v35  ;;  %v665_v37 = vsel %vm645_vm8, %v636_v32, %v657_v36 }
 0x17b   : > { %v689_v38 = vadd.f32 %v931_v34, %v665_v37 }
 0x17d   : > { %vm697_vm9 = vcmp.ge.f32.partialorder %v689_v38, 0.0  ;;  %v709_v39 = vmul.f32 %v1112_v31, %v689_v38 }
 0x17f   : > { %v717_v40 = vsel %vm697_vm9, %v689_v38, %v709_v39 }
 0x180   : > { %v725_v41 = vpack.c.bf16 %v717_v40, %v717_v40 }
 0x182   : > { %734 = vst.msk [vmem:[%s1119_s12 + $0x1c] sm:$0xf] %vm726_vm11, %v725_v41 }
 0x183 PF: > { %s19_s30 = sadd.s32 1, %s962_s30  }
 0x184   : > { %p16_p4 = scmp.ge.s32.totalorder %s19_s30, 4  }
 0x186   :  { %18 = sbr.rel (!%p16_p4) target bundleno = 1 (0x1), region = 89 }

// kernel: _lambda_.63
= control target key start
LH: loop header
LB: loop body
LE: loop exit
PB: predicated region body
PF: predicated region fallthrough
CT: control target
= control target key end

     0   :  { %s593_s15 = smov 0   ;;  %s668_s0 = inlined_call_operand.vmem [shape: bf16[32,256], index: 0, kind: input, shape index: {}]   ;;  %s669_s1 = inlined_call_operand.vmem [shape: bf16[256,32], index: 1, kind: input, shape index: {}]   ;;  %s670_s2 = inlined_call_operand.vmem [shape: f32[1,32], index: 2, kind: input, shape index: {}]   ;;  %s671_s3 = inlined_call_operand.vmem [shape: f32[1,32], index: 3, kind: input, shape index: {}]   ;;  %s672_s4 = inlined_call_operand.vmem [shape: bf16[32,32], index: 4, kind: output, shape index: {}]  }
   0x1 LB: > { %s447_s16 = sadd.s32 4294967295, %s566_s15   ;;  %p451_p0 = scmp.ge.s32.totalorder %s566_s15, 1  ;;  %s566_s15 = sphi %s593_s15, %s14_s15  }
   0x2   : > { %p164_p1 = scmp.lt.s32.totalorder %s566_s15, 3 }
   0x4   : > { %p165_p2 = pnand %p451_p0, %p164_p1 }
   0x5   : > { %s452_s29 = sshll.u32 (!%p165_p2), %s447_s16, 1 }
   0x6   : > { %168 = sbr.rel (%p165_p2) target bundleno = 187 (0xbb), region = 36  ;;  %p192_p3 = scmp.lt.s32.totalorder (!%p165_p2), %s452_s29, 3 }
   0xb   : > { %v541_v0 = vld [vmem:[%s669_s1 + $0x38] sm:$0xff]  ;;  %v540_v2 = vld [vmem:[%s669_s1 + $0x30] sm:$0xff]  ;;  %v539_v4 = vld [vmem:[%s669_s1 + $0x28] sm:$0xff]  ;;  %s674_s29 = smov (!%p192_p3, %s452_s29), 3  ;;  %vm388_vm1 = vcmask 257024  }
   0xc   : > { %v549_v1 = vld [vmem:[%s669_s1 + $0x78] sm:$0xff]  ;;  %348 = vmatpush.bf16.msra.mxu0 %v541_v0  ;;  %v548_v3 = vld [vmem:[%s669_s1 + $0x70] sm:$0xff]  ;;  %v547_v5 = vld [vmem:[%s669_s1 + $0x68] sm:$0xff]  ;;  %s531_s17 = sshll.u32 %s674_s29, 3  ;;  %s456_s8 = sshll.u32 %s674_s29, 2 }
   0xd   : > { %362 = vmatpush.bf16.msra.mxu1 %v549_v1  ;;  %v538_v6 = vld [vmem:[%s669_s1 + $0x20] sm:$0xff]  ;;  %v537_v8 = vld [vmem:[%s669_s1 + $0x18] sm:$0xff]  ;;  %v536_v10 = vld [vmem:[%s669_s1 + $0x10] sm:$0xff]  ;;  %s196_s24 = scalar_lea.vmem %s668_s0, %s531_s17  ;;  %s202_s11 = scalar_lea.vmem %s672_s4, %s456_s8 }
   0xe   : > { %v546_v7 = vld [vmem:[%s669_s1 + $0x60] sm:$0xff]  ;;  %v545_v9 = vld [vmem:[%s669_s1 + $0x58] sm:$0xff]  ;;  %v544_v11 = vld [vmem:[%s669_s1 + $0x50] sm:$0xff] }
   0xf   : > { %v535_v12 = vld [vmem:[%s669_s1 + $0x8] sm:$0xff]  ;;  %v534_v14 = vld [vmem:[%s669_s1] sm:$0xff] }
  0x10   : > { %349 = vmatpush.bf16.msra.mxu0 %v540_v2  ;;  %v543_v13 = vld [vmem:[%s669_s1 + $0x48] sm:$0xff]  ;;  %v542_v15 = vld [vmem:[%s669_s1 + $0x40] sm:$0xff] }
  0x11   : > { %363 = vmatpush.bf16.msra.mxu1 %v548_v3  ;;  %v459_v16 = vld [vmem:[%s196_s24] sm:$0xf]  ;;  %v533_v17 = vld [vmem:[%s196_s24 + $0x4] sm:$0xf0]  ;;  %v532_v18 = vld [vmem:[%s196_s24 + $0x4] sm:$0xf] }
  0x12   : > { %v461_v19 = vld [vmem:[%s196_s24 + $0x8] sm:$0xf0]  ;;  %v460_v20 = vor.u32 %v533_v17, %v459_v16  ;;  %v558_v22 = vld [vmem:[%s670_s2] ss:$0 sm:$0xff] }
  0x13   : > { %v464_v21 = vor.u32 %v532_v18, %v461_v19  ;;  %v559_v26 = vld [vmem:[%s671_s3] ss:$0 sm:$0xff] }
  0x14   : > { %350 = vmatpush.bf16.msra.mxu0 %v539_v4 }
  0x15   : > { %364 = vmatpush.bf16.msra.mxu1 %v547_v5 }
  0x18   : > { %351 = vmatpush.bf16.msra.mxu0 %v538_v6 }
  0x19   : > { %365 = vmatpush.bf16.msra.mxu1 %v546_v7 }
  0x1c   : > { %352 = vmatpush.bf16.msra.mxu0 %v537_v8 }
  0x1d   : > { %366 = vmatpush.bf16.msra.mxu1 %v545_v9 }
  0x20   : > { %353 = vmatpush.bf16.msra.mxu0 %v536_v10 }
  0x21   : > { %367 = vmatpush.bf16.msra.mxu1 %v544_v11 }
  0x24   : > { %354 = vmatpush.bf16.msra.mxu0 %v535_v12 }
  0x25   : > { %368 = vmatpush.bf16.msra.mxu1 %v543_v13 }
  0x28   : > { %355 = vmatpush.bf16.msra.mxu0 %v534_v14 }
  0x29   : > { %369 = vmatpush.bf16.msra.mxu1 %v542_v15 }
  0x2b   : > { %356 = vmatmul.bf16.vlgmr.msra.gmra.mxu0 %v460_v20 }
  0x2c   : > { %370 = vmatmul.bf16.vlgmr.msra.gmra.mxu1 %v464_v21 }
  0xa8   : > { %v357_v23 = vpop.f32.mrf.mxu0 }
  0xa9   : > { %v371_v24 = vpop.f32.mrf.mxu1  ;;  %v358_v25 = vadd.f32 %v558_v22, %v357_v23 }
  0xab   : > { %v372_v27 = vadd.f32 %v371_v24, %v358_v25 }
  0xad   : > { %vm376_vm0 = vcmp.ge.f32.partialorder %v372_v27, 0.0  ;;  %v382_v28 = vmul.f32 %v559_v26, %v372_v27 }
  0xaf   : > { %v384_v29 = vsel %vm376_vm0, %v372_v27, %v382_v28 }
  0xb0   : > { %v386_v30 = vpack.c.bf16 %v384_v29, %v384_v29  ;;  %v359_v31 = vpop.f32.mrf.mxu0 }
  0xb1   : > { %v360_v32 = vadd.f32 %v558_v22, %v359_v31  ;;  %v373_v33 = vpop.f32.mrf.mxu1 }
  0xb2   : > { %389 = vst.msk [vmem:[%s202_s11] sm:$0xf] %vm388_vm1, %v386_v30 }
  0xb3   : > { %v374_v34 = vadd.f32 %v373_v33, %v360_v32 }
  0xb5   : > { %vm377_vm2 = vcmp.ge.f32.partialorder %v374_v34, 0.0  ;;  %v383_v35 = vmul.f32 %v559_v26, %v374_v34 }
  0xb7   : > { %v385_v36 = vsel %vm377_vm2, %v374_v34, %v383_v35 }
  0xb8   : > { %v387_v37 = vpack.c.bf16 %v385_v36, %v385_v36 }
  0xba   : > { %390 = vst.msk [vmem:[%s202_s11 + $0x4] sm:$0xf] %vm388_vm1, %v387_v37 }
  0xbb PF: > { %s14_s15 = sadd.s32 1, %s566_s15  }
  0xbc   : > { %p11_p4 = scmp.ge.s32.totalorder %s14_s15, 4  }
  0xbe   :  { %13 = sbr.rel (!%p11_p4) target bundleno = 1 (0x1), region = 66 }

// kernel: _lambda_.66
= control target key start
LH: loop header
LB: loop body
LE: loop exit
PB: predicated region body
PF: predicated region fallthrough
CT: control target
= control target key end

     0   :  { %s461_s15 = smov 0   ;;  %s508_s0 = inlined_call_operand.vmem [shape: bf16[32,128], index: 0, kind: input, shape index: {}]   ;;  %s509_s1 = inlined_call_operand.vmem [shape: bf16[128,32], index: 1, kind: input, shape index: {}]   ;;  %s510_s2 = inlined_call_operand.vmem [shape: f32[1,32], index: 2, kind: input, shape index: {}]   ;;  %s511_s3 = inlined_call_operand.vmem [shape: f32[1,32], index: 3, kind: input, shape index: {}]   ;;  %s512_s4 = inlined_call_operand.vmem [shape: bf16[32,32], index: 4, kind: output, shape index: {}]  }
   0x1 LB: > { %s362_s16 = sadd.s32 4294967295, %s434_s15   ;;  %p366_p0 = scmp.ge.s32.totalorder %s434_s15, 1  ;;  %s434_s15 = sphi %s461_s15, %s14_s15  }
   0x2   : > { %p163_p1 = scmp.lt.s32.totalorder %s434_s15, 3 }
   0x4   : > { %p164_p2 = pnand %p366_p0, %p163_p1 }
   0x5   : > { %s367_s25 = sshll.u32 (!%p164_p2), %s362_s16, 1 }
   0x6   : > { %167 = sbr.rel (%p164_p2) target bundleno = 185 (0xb9), region = 36  ;;  %p190_p3 = scmp.lt.s32.totalorder (!%p164_p2), %s367_s25, 3 }
   0xb   : > { %v417_v0 = vld [vmem:[%s509_s1 + $0x38] sm:$0xff]  ;;  %v416_v1 = vld [vmem:[%s509_s1 + $0x30] sm:$0xff]  ;;  %v415_v2 = vld [vmem:[%s509_s1 + $0x28] sm:$0xff]  ;;  %s514_s25 = smov (!%p190_p3, %s367_s25), 3  ;;  %vm303_vm1 = vcmask 257024  }
   0xc   : > { %277 = vmatpush.bf16.msra.mxu0 %v417_v0  ;;  %v414_v3 = vld [vmem:[%s509_s1 + $0x20] sm:$0xff]  ;;  %v413_v4 = vld [vmem:[%s509_s1 + $0x18] sm:$0xff]  ;;  %v412_v5 = vld [vmem:[%s509_s1 + $0x10] sm:$0xff]  ;;  %s368_s6 = sshll.u32 %s514_s25, 2 }
   0xd   : > { %v411_v6 = vld [vmem:[%s509_s1 + $0x8] sm:$0xff]  ;;  %v410_v7 = vld [vmem:[%s509_s1] sm:$0xff]  ;;  %s193_s11 = scalar_lea.vmem %s508_s0, %s368_s6  ;;  %s199_s19 = scalar_lea.vmem %s512_s4, %s368_s6 }
   0xe   : > { %v409_v8 = vld [vmem:[%s193_s11] sm:$0xff] }
   0xf   : > { %v426_v9 = vld [vmem:[%s510_s2] ss:$0 sm:$0xff] }
  0x10   : > { %278 = vmatpush.bf16.msra.mxu0 %v416_v1  ;;  %v427_v10 = vld [vmem:[%s511_s3] ss:$0 sm:$0xff] }
  0x14   : > { %279 = vmatpush.bf16.msra.mxu0 %v415_v2 }
  0x18   : > { %280 = vmatpush.bf16.msra.mxu0 %v414_v3 }
  0x1c   : > { %281 = vmatpush.bf16.msra.mxu0 %v413_v4 }
  0x20   : > { %282 = vmatpush.bf16.msra.mxu0 %v412_v5 }
  0x24   : > { %283 = vmatpush.bf16.msra.mxu0 %v411_v6 }
  0x28   : > { %284 = vmatpush.bf16.msra.mxu0 %v410_v7 }
  0x2b   : > { %285 = vmatmul.bf16.vlgmr.msra.gmra.mxu0 %v409_v8 }
  0xa8   : > { %v286_v11 = vpop.f32.mrf.mxu0 }
  0xa9   : > { %v287_v12 = vadd.f32 %v426_v9, %v286_v11 }
  0xab   : > { %vm291_vm0 = vcmp.ge.f32.partialorder %v287_v12, 0.0  ;;  %v297_v13 = vmul.f32 %v427_v10, %v287_v12 }
  0xad   : > { %v299_v14 = vsel %vm291_vm0, %v287_v12, %v297_v13 }
  0xae   : > { %v301_v15 = vpack.c.bf16 %v299_v14, %v299_v14 }
  0xb0   : > { %304 = vst.msk [vmem:[%s199_s19] sm:$0xf] %vm303_vm1, %v301_v15  ;;  %v288_v16 = vpop.f32.mrf.mxu0 }
  0xb1   : > { %v289_v17 = vadd.f32 %v426_v9, %v288_v16 }
  0xb3   : > { %vm292_vm2 = vcmp.ge.f32.partialorder %v289_v17, 0.0  ;;  %v298_v18 = vmul.f32 %v427_v10, %v289_v17 }
  0xb5   : > { %v300_v19 = vsel %vm292_vm2, %v289_v17, %v298_v18 }
  0xb6   : > { %v302_v20 = vpack.c.bf16 %v300_v19, %v300_v19 }
  0xb8   : > { %305 = vst.msk [vmem:[%s199_s19 + $0x4] sm:$0xf] %vm303_vm1, %v302_v20 }
  0xb9 PF: > { %s14_s15 = sadd.s32 1, %s434_s15  }
  0xba   : > { %p11_p4 = scmp.ge.s32.totalorder %s14_s15, 4  }
  0xbc   :  { %13 = sbr.rel (!%p11_p4) target bundleno = 1 (0x1), region = 66 }

// kernel: _lambda_.65
= control target key start
LH: loop header
LB: loop body
LE: loop exit
PB: predicated region body
PF: predicated region fallthrough
CT: control target
= control target key end

     0   :  { %s932_s30 = smov 0   ;;  %s1033_s0 = inlined_call_operand.vmem [shape: bf16[32,288], index: 0, kind: input, shape index: {}]   ;;  %s1034_s1 = inlined_call_operand.vmem [shape: bf16[288,32], index: 1, kind: input, shape index: {}]   ;;  %s1035_s2 = inlined_call_operand.vmem [shape: f32[1,32], index: 2, kind: input, shape index: {}]   ;;  %s1036_s3 = inlined_call_operand.vmem [shape: f32[1,32], index: 3, kind: input, shape index: {}]   ;;  %s1037_s4 = inlined_call_operand.vmem [shape: bf16[32,128], index: 4, kind: input, shape index: {}]   ;;  %s1038_s5 = inlined_call_operand.vmem [shape: f32[1,128], index: 5, kind: input, shape index: {}]   ;;  %s1039_s6 = inlined_call_operand.vmem [shape: f32[1,128], index: 6, kind: input, shape index: {}, may-alias: {6,8}]   ;;  %s1040_s7 = inlined_call_operand.vmem [shape: bf16[32,128], index: 7, kind: input, shape index: {}]   ;;  %s1041_s8 = inlined_call_operand.vmem [shape: f32[1,128], index: 8, kind: input, shape index: {}, may-alias: {6,8}]   ;;  %s1042_s9 = inlined_call_operand.vmem [shape: bf16[32,128], index: 9, kind: output, shape index: {}]  }
   0x1 LB: > { %s721_s10 = sadd.s32 4294967295, %s880_s30   ;;  %p725_p0 = scmp.ge.s32.totalorder %s880_s30, 1  ;;  %s880_s30 = sphi %s932_s30, %s19_s30  }
   0x2   : > { %p300_p1 = scmp.lt.s32.totalorder %s880_s30, 3 }
   0x4   : > { %p301_p2 = pnand %p725_p0, %p300_p1 }
   0x5   : > { %s726_s15 = sshll.u32 (!%p301_p2), %s721_s10, 1 }
   0x6   : > { %304 = sbr.rel (%p301_p2) target bundleno = 341 (0x155), region = 56  ;;  %p343_p3 = scmp.lt.s32.totalorder (!%p301_p2), %s726_s15, 3 }
   0xb   : > { %v838_v0 = vld [vmem:[%s1034_s1 + $0x38] sm:$0xff]  ;;  %v837_v2 = vld [vmem:[%s1034_s1 + $0x30] sm:$0xff]  ;;  %v848_v4 = vld [vmem:[%s1034_s1 + $0x88] sm:$0xff]  ;;  %s1044_s15 = smov (!%p343_p3, %s726_s15), 3  ;;  %vm529_vm0 = vcmask 261120  }
   0xc   : > { %v846_v1 = vld [vmem:[%s1034_s1 + $0x78] sm:$0xff]  ;;  %533 = vmatpush.bf16.msra.mxu0 %v838_v0  ;;  %v845_v3 = vld [vmem:[%s1034_s1 + $0x70] sm:$0xff]  ;;  %567 = vmatpush.bf16.msra.mxu2 %v848_v4  ;;  %v847_v5 = vld [vmem:[%s1034_s1 + $0x80] sm:$0xff]  ;;  %s860_s28 = smul.u32 12, %s1044_s15  ;;  %s729_s22 = sshll.u32 %s1044_s15, 2 }
   0xd   : > { %547 = vmatpush.bf16.msra.mxu1 %v846_v1  ;;  %v836_v6 = vld [vmem:[%s1034_s1 + $0x28] sm:$0xff]  ;;  %v835_v11 = vld [vmem:[%s1034_s1 + $0x20] sm:$0xff]  ;;  %v834_v13 = vld [vmem:[%s1034_s1 + $0x18] sm:$0xff]  ;;  %s353_s29 = scalar_lea.vmem %s1040_s7, %s729_s22  ;;  %s359_s14 = scalar_lea.vmem %s1042_s9, %s729_s22 }
   0xe   : > { %v844_v7 = vld [vmem:[%s1034_s1 + $0x68] sm:$0xff]  ;;  %s347_s11 = scalar_lea.vmem %s1033_s0, %s860_s28  ;;  %v843_v12 = vld [vmem:[%s1034_s1 + $0x60] sm:$0xff]  ;;  %v842_v14 = vld [vmem:[%s1034_s1 + $0x58] sm:$0xff] }
   0xf   : > { %v742_v8 = vld [vmem:[%s347_s11 + $0x8] sm:$0xf]  ;;  %v830_v9 = vld [vmem:[%s347_s11 + $0x10] sm:$0xf0]  ;;  %v831_v19 = vld [vmem:[%s1034_s1] sm:$0xff] }
  0x10   : > { %534 = vmatpush.bf16.msra.mxu0 %v837_v2  ;;  %568 = vmatpush.bf16.msra.mxu2 %v847_v5  ;;  %v743_v10 = vor.u32 %v830_v9, %v742_v8  ;;  %v833_v15 = vld [vmem:[%s1034_s1 + $0x10] sm:$0xff]  ;;  %v832_v17 = vld [vmem:[%s1034_s1 + $0x8] sm:$0xff]  ;;  %v839_v20 = vld [vmem:[%s1034_s1 + $0x40] sm:$0xff] }
  0x11   : > { %548 = vmatpush.bf16.msra.mxu1 %v845_v3  ;;  %v841_v16 = vld [vmem:[%s1034_s1 + $0x50] sm:$0xff]  ;;  %v840_v18 = vld [vmem:[%s1034_s1 + $0x48] sm:$0xff]  ;;  %v734_v21 = vld [vmem:[%s347_s11] sm:$0xf] }
  0x12   : > { %v829_v22 = vld [vmem:[%s347_s11 + $0x8] sm:$0xf0]  ;;  %v828_v23 = vld [vmem:[%s347_s11 + $0x4] sm:$0xf]  ;;  %v736_v24 = vld [vmem:[%s347_s11 + $0xc] sm:$0xf0] }
  0x13   : > { %816 = vmatmul.msk.bf16.vlgmr.msra.gmra.mxu2 %vm529_vm0, %v743_v10  ;;  %v735_v25 = vor.u32 %v829_v22, %v734_v21  ;;  %v739_v26 = vor.u32 %v828_v23, %v736_v24  ;;  %v850_v27 = vld [vmem:[%s1037_s4 + $0x8] sm:$0xff]  ;;  %v849_v28 = vld [vmem:[%s1037_s4] sm:$0xff] }
  0x14   : > { %535 = vmatpush.bf16.msra.mxu0 %v836_v6  ;;  %615 = vmatpush.bf16.msra.mxu3 %v850_v27  ;;  %v869_v29 = vld [vmem:[%s1035_s2] ss:$0 sm:$0xff] }
  0x15   : > { %549 = vmatpush.bf16.msra.mxu1 %v844_v7  ;;  %v870_v37 = vld [vmem:[%s1036_s3] ss:$0 sm:$0xff] }
  0x16   : > { %v871_v48 = vld [vmem:[%s1038_s5] ss:$0 sm:$0xff] }
  0x17   : > { %v872_v49 = vld [vmem:[%s1039_s6] ss:$0 sm:$0xff] }
  0x18   : > { %536 = vmatpush.bf16.msra.mxu0 %v835_v11  ;;  %616 = vmatpush.bf16.msra.mxu3 %v849_v28  ;;  %v852_v53 = vld [vmem:[%s353_s29] sm:$0xff]  }
  0x19   : > { %550 = vmatpush.bf16.msra.mxu1 %v843_v12  ;;  %v853_v54 = vunpack.c.l.bf16 %v852_v53  ;;  %v873_v59 = vld [vmem:[%s1041_s8] ss:$0 sm:$0xff]  ;;  %v854_v60 = vunpack.c.h.bf16 %v852_v53 }
  0x1c   : > { %537 = vmatpush.bf16.msra.mxu0 %v834_v13 }
  0x1d   : > { %551 = vmatpush.bf16.msra.mxu1 %v842_v14 }
  0x20   : > { %538 = vmatpush.bf16.msra.mxu0 %v833_v15 }
  0x21   : > { %552 = vmatpush.bf16.msra.mxu1 %v841_v16 }
  0x24   : > { %539 = vmatpush.bf16.msra.mxu0 %v832_v17 }
  0x25   : > { %553 = vmatpush.bf16.msra.mxu1 %v840_v18 }
  0x28   : > { %540 = vmatpush.bf16.msra.mxu0 %v831_v19 }
  0x29   : > { %554 = vmatpush.bf16.msra.mxu1 %v839_v20 }
  0x2b   : > { %541 = vmatmul.bf16.vlgmr.msra.gmra.mxu0 %v735_v25 }
  0x2c   : > { %555 = vmatmul.bf16.vlgmr.msra.gmra.mxu1 %v739_v26 }
  0x96   : > { %v570_v33 = vpop.f32.mrf.mxu2 }
  0x9e   : > { %v572_v41 = vpop.f32.mrf.mxu2 }
  0xa8   : > { %v542_v30 = vpop.f32.mrf.mxu0 }
  0xa9   : > { %v556_v31 = vpop.f32.mrf.mxu1  ;;  %v543_v32 = vadd.f32 %v869_v29, %v542_v30 }
  0xab   : > { %v557_v34 = vadd.f32 %v556_v31, %v543_v32 }
  0xad   : > { %v571_v36 = vadd.f32 %v570_v33, %v557_v34 }
  0xaf   : > { %v581_v42 = vmul.f32 %v870_v37, %v571_v36  ;;  %vm575_vm1 = vcmp.ge.f32.partialorder %v571_v36, 0.0 }
  0xb0   : > { %v544_v35 = vpop.f32.mrf.mxu0 }
  0xb1   : > { %v545_v38 = vadd.f32 %v869_v29, %v544_v35  ;;  %v558_v39 = vpop.f32.mrf.mxu1  ;;  %v583_v45 = vsel %vm575_vm1, %v571_v36, %v581_v42 }
  0xb3   : > { %v559_v40 = vadd.f32 %v558_v39, %v545_v38 }
  0xb5   : > { %v573_v43 = vadd.f32 %v572_v41, %v559_v40 }
  0xb7   : > { %vm576_vm2 = vcmp.ge.f32.partialorder %v573_v43, 0.0  ;;  %v582_v44 = vmul.f32 %v870_v37, %v573_v43 }
  0xb9   : > { %v584_v46 = vsel %vm576_vm2, %v573_v43, %v582_v44 }
  0xba   : > { %v585_v47 = vpack.c.bf16 %v584_v46, %v583_v45 }
  0xbc   : > { %825 = vmatmul.msk.bf16.vlgmr.msra.gmra.mxu3 %vm529_vm0, %v585_v47 }
 0x13f   : > { %v618_v50 = vpop.f32.mrf.mxu3 }
 0x140   : > { %v619_v51 = vadd.f32 %v871_v48, %v618_v50 }
 0x142   : > { %v629_v52 = vmul.f32 %v872_v49, %v619_v51  ;;  %vm623_vm3 = vcmp.ge.f32.partialorder %v619_v51, 0.0 }
 0x144   : > { %v631_v55 = vsel %vm623_vm3, %v619_v51, %v629_v52 }
 0x145   : > { %v637_v58 = vadd.f32 %v853_v54, %v631_v55 }
 0x147   : > { %v620_v56 = vpop.f32.mrf.mxu3  ;;  %v645_v63 = vmul.f32 %v873_v59, %v637_v58  ;;  %vm639_vm5 = vcmp.ge.f32.partialorder %v637_v58, 0.0 }
 0x148   : > { %v621_v57 = vadd.f32 %v871_v48, %v620_v56 }
 0x149   : > { %v647_v2 = vsel %vm639_vm5, %v637_v58, %v645_v63 }
 0x14a   : > { %vm624_vm4 = vcmp.ge.f32.partialorder %v621_v57, 0.0  ;;  %v630_v61 = vmul.f32 %v872_v49, %v621_v57 }
 0x14c   : > { %v632_v62 = vsel %vm624_vm4, %v621_v57, %v630_v61 }
 0x14d   : > { %v638_v0 = vadd.f32 %v854_v60, %v632_v62 }
 0x14f   : > { %vm640_vm6 = vcmp.ge.f32.partialorder %v638_v0, 0.0  ;;  %v646_v1 = vmul.f32 %v873_v59, %v638_v0 }
 0x151   : > { %v648_v3 = vsel %vm640_vm6, %v638_v0, %v646_v1 }
 0x152   : > { %v858_v4 = vpack.c.bf16 %v648_v3, %v647_v2 }
 0x154   : > { %859 = vst [vmem:[%s359_s14] sm:$0xff] %v858_v4  }
 0x155 PF: > { %s19_s30 = sadd.s32 1, %s880_s30  }
 0x156   : > { %p16_p4 = scmp.ge.s32.totalorder %s19_s30, 4  }
 0x158   :  { %18 = sbr.rel (!%p16_p4) target bundleno = 1 (0x1), region = 89 }

// kernel: _lambda_.71
= control target key start
LH: loop header
LB: loop body
LE: loop exit
PB: predicated region body
PF: predicated region fallthrough
CT: control target
= control target key end

     0   :  { %s520_s15 = smov 0   ;;  %s577_s0 = inlined_call_operand.vmem [shape: bf16[32,160], index: 0, kind: input, shape index: {}]   ;;  %s578_s1 = inlined_call_operand.vmem [shape: bf16[160,32], index: 1, kind: input, shape index: {}]   ;;  %s579_s2 = inlined_call_operand.vmem [shape: f32[1,32], index: 2, kind: input, shape index: {}]   ;;  %s580_s3 = inlined_call_operand.vmem [shape: f32[1,32], index: 3, kind: input, shape index: {}]   ;;  %s581_s4 = inlined_call_operand.vmem [shape: bf16[32,32], index: 4, kind: output, shape index: {}]  }
   0x1 LB: > { %s403_s16 = sadd.s32 4294967295, %s493_s15   ;;  %p407_p0 = scmp.ge.s32.totalorder %s493_s15, 1  ;;  %s493_s15 = sphi %s520_s15, %s14_s15  }
   0x2   : > { %p164_p1 = scmp.lt.s32.totalorder %s493_s15, 3 }
   0x4   : > { %p165_p2 = pnand %p407_p0, %p164_p1 }
   0x5   : > { %s408_s19 = sshll.u32 (!%p165_p2), %s403_s16, 1 }
   0x6   : > { %168 = sbr.rel (%p165_p2) target bundleno = 187 (0xbb), region = 36  ;;  %p192_p3 = scmp.lt.s32.totalorder (!%p165_p2), %s408_s19, 3 }
   0xb   : > { %v474_v0 = vld [vmem:[%s578_s1 + $0x38] sm:$0xff]  ;;  %v476_v1 = vld [vmem:[%s578_s1 + $0x48] sm:$0xff]  ;;  %v473_v2 = vld [vmem:[%s578_s1 + $0x30] sm:$0xff]  ;;  %s583_s19 = smov (!%p192_p3, %s408_s19), 3  ;;  %vm300_vm0 = vcmask 261120   ;;  %vm344_vm2 = vcmask 257024  }
   0xc   : > { %304 = vmatpush.bf16.msra.mxu0 %v474_v0  ;;  %324 = vmatpush.bf16.msra.mxu1 %v476_v1  ;;  %v475_v3 = vld [vmem:[%s578_s1 + $0x40] sm:$0xff]  ;;  %s464_s26 = sshll.u32 %s583_s19, 3  ;;  %v472_v4 = vld [vmem:[%s578_s1 + $0x28] sm:$0xff]  ;;  %v470_v9 = vld [vmem:[%s578_s1 + $0x18] sm:$0xff]  ;;  %s412_s22 = sshll.u32 %s583_s19, 2 }
   0xd   : > { %s196_s5 = scalar_lea.vmem %s577_s0, %s464_s26  ;;  %v471_v8 = vld [vmem:[%s578_s1 + $0x20] sm:$0xff]  ;;  %v469_v10 = vld [vmem:[%s578_s1 + $0x10] sm:$0xff]  ;;  %v468_v11 = vld [vmem:[%s578_s1 + $0x8] sm:$0xff]  ;;  %s202_s25 = scalar_lea.vmem %s581_s4, %s412_s22 }
   0xe   : > { %v465_v5 = vld [vmem:[%s196_s5 + $0x4] sm:$0xf]  ;;  %v417_v6 = vld [vmem:[%s196_s5 + $0x8] sm:$0xf0]  ;;  %v415_v13 = vld [vmem:[%s196_s5] sm:$0xf] }
   0xf   : > { %v420_v7 = vor.u32 %v465_v5, %v417_v6  ;;  %v467_v12 = vld [vmem:[%s578_s1] sm:$0xff]  ;;  %v466_v14 = vld [vmem:[%s196_s5 + $0x4] sm:$0xf0] }
  0x10   : > { %305 = vmatpush.bf16.msra.mxu0 %v473_v2  ;;  %325 = vmatpush.bf16.msra.mxu1 %v475_v3  ;;  %v416_v15 = vor.u32 %v466_v14, %v415_v13  ;;  %v485_v16 = vld [vmem:[%s579_s2] ss:$0 sm:$0xff] }
  0x11   : > { %v486_v20 = vld [vmem:[%s580_s3] ss:$0 sm:$0xff] }
  0x13   : > { %461 = vmatmul.msk.bf16.vlgmr.msra.gmra.mxu1 %vm300_vm0, %v420_v7 }
  0x14   : > { %306 = vmatpush.bf16.msra.mxu0 %v472_v4 }
  0x18   : > { %307 = vmatpush.bf16.msra.mxu0 %v471_v8 }
  0x1c   : > { %308 = vmatpush.bf16.msra.mxu0 %v470_v9 }
  0x20   : > { %309 = vmatpush.bf16.msra.mxu0 %v469_v10 }
  0x24   : > { %310 = vmatpush.bf16.msra.mxu0 %v468_v11 }
  0x28   : > { %311 = vmatpush.bf16.msra.mxu0 %v467_v12 }
  0x2b   : > { %312 = vmatmul.bf16.vlgmr.msra.gmra.mxu0 %v416_v15 }
  0x90   : > { %v327_v17 = vpop.f32.mrf.mxu1 }
  0x98   : > { %v329_v27 = vpop.f32.mrf.mxu1 }
  0xa8   : > { %v313_v18 = vpop.f32.mrf.mxu0 }
  0xa9   : > { %v314_v19 = vadd.f32 %v485_v16, %v313_v18 }
  0xab   : > { %v328_v21 = vadd.f32 %v327_v17, %v314_v19 }
  0xad   : > { %vm332_vm1 = vcmp.ge.f32.partialorder %v328_v21, 0.0  ;;  %v338_v22 = vmul.f32 %v486_v20, %v328_v21 }
  0xaf   : > { %v340_v23 = vsel %vm332_vm1, %v328_v21, %v338_v22 }
  0xb0   : > { %v342_v24 = vpack.c.bf16 %v340_v23, %v340_v23  ;;  %v315_v25 = vpop.f32.mrf.mxu0 }
  0xb1   : > { %v316_v26 = vadd.f32 %v485_v16, %v315_v25 }
  0xb2   : > { %345 = vst.msk [vmem:[%s202_s25] sm:$0xf] %vm344_vm2, %v342_v24 }
  0xb3   : > { %v330_v28 = vadd.f32 %v329_v27, %v316_v26 }
  0xb5   : > { %vm333_vm3 = vcmp.ge.f32.partialorder %v330_v28, 0.0  ;;  %v339_v29 = vmul.f32 %v486_v20, %v330_v28 }
  0xb7   : > { %v341_v30 = vsel %vm333_vm3, %v330_v28, %v339_v29 }
  0xb8   : > { %v343_v31 = vpack.c.bf16 %v341_v30, %v341_v30 }
  0xba   : > { %346 = vst.msk [vmem:[%s202_s25 + $0x4] sm:$0xf] %vm344_vm2, %v343_v31 }
  0xbb PF: > { %s14_s15 = sadd.s32 1, %s493_s15  }
  0xbc   : > { %p11_p4 = scmp.ge.s32.totalorder %s14_s15, 4  }
  0xbe   :  { %13 = sbr.rel (!%p11_p4) target bundleno = 1 (0x1), region = 66 }

// kernel: _lambda_.72
= control target key start
LH: loop header
LB: loop body
LE: loop exit
PB: predicated region body
PF: predicated region fallthrough
CT: control target
= control target key end

     0   :  { %s802_s30 = smov 0   ;;  %s879_s0 = inlined_call_operand.vmem [shape: bf16[32,160], index: 0, kind: input, shape index: {}]   ;;  %s880_s1 = inlined_call_operand.vmem [shape: bf16[160,32], index: 1, kind: input, shape index: {}]   ;;  %s881_s2 = inlined_call_operand.vmem [shape: f32[1,32], index: 2, kind: input, shape index: {}]   ;;  %s882_s3 = inlined_call_operand.vmem [shape: f32[1,32], index: 3, kind: input, shape index: {}]   ;;  %s883_s4 = inlined_call_operand.vmem [shape: bf16[32,128], index: 4, kind: input, shape index: {}]   ;;  %s884_s5 = inlined_call_operand.vmem [shape: f32[1,128], index: 5, kind: input, shape index: {}]   ;;  %s885_s6 = inlined_call_operand.vmem [shape: f32[1,128], index: 6, kind: input, shape index: {}, may-alias: {6,8}]   ;;  %s886_s7 = inlined_call_operand.vmem [shape: bf16[32,128], index: 7, kind: input, shape index: {}]   ;;  %s887_s8 = inlined_call_operand.vmem [shape: f32[1,128], index: 8, kind: input, shape index: {}, may-alias: {6,8}]   ;;  %s888_s9 = inlined_call_operand.vmem [shape: bf16[32,128], index: 9, kind: output, shape index: {}]  }
   0x1 LB: > { %s635_s10 = sadd.s32 4294967295, %s750_s30   ;;  %p639_p0 = scmp.ge.s32.totalorder %s750_s30, 1  ;;  %s750_s30 = sphi %s802_s30, %s19_s30  }
   0x2   : > { %p300_p1 = scmp.lt.s32.totalorder %s750_s30, 3 }
   0x4   : > { %p301_p2 = pnand %p639_p0, %p300_p1 }
   0x5   : > { %s640_s13 = sshll.u32 (!%p301_p2), %s635_s10, 1 }
   0x6   : > { %304 = sbr.rel (%p301_p2) target bundleno = 339 (0x153), region = 56  ;;  %p343_p3 = scmp.lt.s32.totalorder (!%p301_p2), %s640_s13, 3 }
   0xb   : > { %v717_v0 = vld [vmem:[%s880_s1 + $0x38] sm:$0xff]  ;;  %v719_v1 = vld [vmem:[%s880_s1 + $0x48] sm:$0xff]  ;;  %v716_v2 = vld [vmem:[%s880_s1 + $0x30] sm:$0xff]  ;;  %s890_s13 = smov (!%p343_p3, %s640_s13), 3  ;;  %vm457_vm0 = vcmask 261120  }
   0xc   : > { %461 = vmatpush.bf16.msra.mxu0 %v717_v0  ;;  %481 = vmatpush.bf16.msra.mxu1 %v719_v1  ;;  %v718_v3 = vld [vmem:[%s880_s1 + $0x40] sm:$0xff]  ;;  %s707_s20 = sshll.u32 %s890_s13, 3  ;;  %v715_v4 = vld [vmem:[%s880_s1 + $0x28] sm:$0xff]  ;;  %v713_v9 = vld [vmem:[%s880_s1 + $0x18] sm:$0xff] }
   0xd   : > { %s347_s25 = scalar_lea.vmem %s879_s0, %s707_s20  ;;  %v714_v8 = vld [vmem:[%s880_s1 + $0x20] sm:$0xff]  ;;  %v712_v10 = vld [vmem:[%s880_s1 + $0x10] sm:$0xff]  ;;  %v711_v11 = vld [vmem:[%s880_s1 + $0x8] sm:$0xff] }
   0xe   : > { %v708_v5 = vld [vmem:[%s347_s25 + $0x4] sm:$0xf]  ;;  %v651_v6 = vld [vmem:[%s347_s25 + $0x8] sm:$0xf0]  ;;  %v649_v13 = vld [vmem:[%s347_s25] sm:$0xf] }
   0xf   : > { %v654_v7 = vor.u32 %v708_v5, %v651_v6  ;;  %v710_v12 = vld [vmem:[%s880_s1] sm:$0xff]  ;;  %v709_v14 = vld [vmem:[%s347_s25 + $0x4] sm:$0xf0]  ;;  %s644_s25 = sshll.u32 %s890_s13, 2 }
  0x10   : > { %462 = vmatpush.bf16.msra.mxu0 %v716_v2  ;;  %482 = vmatpush.bf16.msra.mxu1 %v718_v3  ;;  %v650_v15 = vor.u32 %v709_v14, %v649_v13  ;;  %v721_v16 = vld [vmem:[%s883_s4 + $0x8] sm:$0xff]  ;;  %v720_v17 = vld [vmem:[%s883_s4] sm:$0xff]  ;;  %s353_s12 = scalar_lea.vmem %s886_s7, %s644_s25  ;;  %s359_s17 = scalar_lea.vmem %s888_s9, %s644_s25 }
  0x11   : > { %529 = vmatpush.bf16.msra.mxu2 %v721_v16  ;;  %v739_v18 = vld [vmem:[%s881_s2] ss:$0 sm:$0xff] }
  0x12   : > { %v740_v23 = vld [vmem:[%s882_s3] ss:$0 sm:$0xff] }
  0x13   : > { %695 = vmatmul.msk.bf16.vlgmr.msra.gmra.mxu1 %vm457_vm0, %v654_v7  ;;  %v741_v33 = vld [vmem:[%s884_s5] ss:$0 sm:$0xff] }
  0x14   : > { %463 = vmatpush.bf16.msra.mxu0 %v715_v4  ;;  %v742_v34 = vld [vmem:[%s885_s6] ss:$0 sm:$0xff] }
  0x15   : > { %530 = vmatpush.bf16.msra.mxu2 %v720_v17  ;;  %v723_v38 = vld [vmem:[%s353_s12] sm:$0xff]  }
  0x16   : > { %v724_v39 = vunpack.c.l.bf16 %v723_v38  ;;  %v743_v44 = vld [vmem:[%s887_s8] ss:$0 sm:$0xff]  ;;  %v725_v45 = vunpack.c.h.bf16 %v723_v38 }
  0x18   : > { %464 = vmatpush.bf16.msra.mxu0 %v714_v8 }
  0x1c   : > { %465 = vmatpush.bf16.msra.mxu0 %v713_v9 }
  0x20   : > { %466 = vmatpush.bf16.msra.mxu0 %v712_v10 }
  0x24   : > { %467 = vmatpush.bf16.msra.mxu0 %v711_v11 }
  0x28   : > { %468 = vmatpush.bf16.msra.mxu0 %v710_v12 }
  0x2b   : > { %469 = vmatmul.bf16.vlgmr.msra.gmra.mxu0 %v650_v15 }
  0x90   : > { %v484_v19 = vpop.f32.mrf.mxu1 }
  0x98   : > { %v486_v26 = vpop.f32.mrf.mxu1 }
  0xa8   : > { %v470_v20 = vpop.f32.mrf.mxu0 }
  0xa9   : > { %v471_v21 = vadd.f32 %v739_v18, %v470_v20 }
  0xab   : > { %v485_v22 = vadd.f32 %v484_v19, %v471_v21 }
  0xad   : > { %v495_v27 = vmul.f32 %v740_v23, %v485_v22  ;;  %vm489_vm1 = vcmp.ge.f32.partialorder %v485_v22, 0.0 }
  0xaf   : > { %v497_v30 = vsel %vm489_vm1, %v485_v22, %v495_v27 }
  0xb0   : > { %v472_v24 = vpop.f32.mrf.mxu0 }
  0xb1   : > { %v473_v25 = vadd.f32 %v739_v18, %v472_v24 }
  0xb3   : > { %v487_v28 = vadd.f32 %v486_v26, %v473_v25 }
  0xb5   : > { %vm490_vm2 = vcmp.ge.f32.partialorder %v487_v28, 0.0  ;;  %v496_v29 = vmul.f32 %v740_v23, %v487_v28 }
  0xb7   : > { %v498_v31 = vsel %vm490_vm2, %v487_v28, %v496_v29 }
  0xb8   : > { %v499_v32 = vpack.c.bf16 %v498_v31, %v497_v30 }
  0xba   : > { %704 = vmatmul.msk.bf16.vlgmr.msra.gmra.mxu2 %vm457_vm0, %v499_v32 }
 0x13d   : > { %v532_v35 = vpop.f32.mrf.mxu2 }
 0x13e   : > { %v533_v36 = vadd.f32 %v741_v33, %v532_v35 }
 0x140   : > { %v543_v37 = vmul.f32 %v742_v34, %v533_v36  ;;  %vm537_vm3 = vcmp.ge.f32.partialorder %v533_v36, 0.0 }
 0x142   : > { %v545_v40 = vsel %vm537_vm3, %v533_v36, %v543_v37 }
 0x143   : > { %v551_v43 = vadd.f32 %v724_v39, %v545_v40 }
 0x145   : > { %v534_v41 = vpop.f32.mrf.mxu2  ;;  %v559_v48 = vmul.f32 %v743_v44, %v551_v43  ;;  %vm553_vm5 = vcmp.ge.f32.partialorder %v551_v43, 0.0 }
 0x146   : > { %v535_v42 = vadd.f32 %v741_v33, %v534_v41 }
 0x147   : > { %v561_v51 = vsel %vm553_vm5, %v551_v43, %v559_v48 }
 0x148   : > { %vm538_vm4 = vcmp.ge.f32.partialorder %v535_v42, 0.0  ;;  %v544_v46 = vmul.f32 %v742_v34, %v535_v42 }
 0x14a   : > { %v546_v47 = vsel %vm538_vm4, %v535_v42, %v544_v46 }
 0x14b   : > { %v552_v49 = vadd.f32 %v725_v45, %v546_v47 }
 0x14d   : > { %vm554_vm6 = vcmp.ge.f32.partialorder %v552_v49, 0.0  ;;  %v560_v50 = vmul.f32 %v743_v44, %v552_v49 }
 0x14f   : > { %v562_v52 = vsel %vm554_vm6, %v552_v49, %v560_v50 }
 0x150   : > { %v729_v53 = vpack.c.bf16 %v562_v52, %v561_v51 }
 0x152   : > { %730 = vst [vmem:[%s359_s17] sm:$0xff] %v729_v53  }
 0x153 PF: > { %s19_s30 = sadd.s32 1, %s750_s30  }
 0x154   : > { %p16_p4 = scmp.ge.s32.totalorder %s19_s30, 4  }
 0x156   :  { %18 = sbr.rel (!%p16_p4) target bundleno = 1 (0x1), region = 89 }

</bundles_post_ra>
